<compile_context>
chip_gen: v7x
topology: tpu7x:2x2x1
jax: 0.10.0
libtpu: 0.0.40
codegen_flags: <defaults>
</compile_context>

<pallas_src>
import functools

import jax
import jax.numpy as jnp
from jax.experimental import pallas as pl
from jax.experimental.pallas import tpu as pltpu

SOBEL_X = jnp.array([[1., 0., -1.], [2., 0., -2.], [1., 0., -1.]], jnp.float32)
SOBEL_Y = jnp.array([[1., 2., 1.], [0., 0., 0.], [-1., -2., -1.]], jnp.float32)
LAPLACIAN = jnp.array([[0., 1., 0.], [1., -4., 1.], [0., 1., 0.]], jnp.float32)


def _round_up(x, m):
    return (x + m - 1) // m * m


def _pick_chunk(span):
    """Largest multiple-of-8 divisor of span that is <= 128 (bounds vreg live ranges)."""
    best = span
    for c in range(8, min(span, 128) + 1, 8):
        if span % c == 0:
            best = c
    return best


# ----------------------------- fused Pallas kernel -----------------------------

def _conv_sae_kernel(x_ref, w_zin_ref, b_zin_ref, w_main_ref, w_sk_ref, b_out_ref,
                     o_ref, z_ref, acc_ref, *, H, W, c_out, chunk):
    """One batch element of Conv_SAE.

    x_ref   : (1, NPZ, c_in) f32   zero-padded image, flattened pixel-major (+ zero tail rows)
    z_ref   : (NPZ, cpad)    bf16  scratch: [y0 | u13 | 0] over the padded pixel grid
    acc_ref : (SPAN, copad)  f32   scratch: per-pixel output channels (padded to 128 lanes)
    o_ref   : (1, c_out, SPAN) f32 lane-dense (channel-major) output
    """
    Wp = W + 2
    span = H * Wp                    # output rows (flattened, incl. 2 junk cols per row)
    pad_off = W + 3                  # flat offset of interior pixel (0,0) in the padded grid
    npz = z_ref.shape[0]
    bf16 = jnp.bfloat16
    f32 = jnp.float32

    # ---- stage 1: fused expand(1x1,pad=1) + inner 1x1 of conv1x1-conv3x3, over the whole
    #      zero-padded grid -> one lane-dense bf16 slab, aligned full-width stores. ----
    for r0 in range(0, npz, chunk):
        rs = min(chunk, npz - r0)
        xb = x_ref[0, r0:r0 + rs, :].astype(bf16)
        zc = jnp.dot(xb, w_zin_ref[...], preferred_element_type=f32) + b_zin_ref[...]
        z_ref[r0:r0 + rs, :] = zc.astype(bf16)

    # ---- stage 2: all five 3x3-style TDE branches + x1 + conv1x1(x1) + reduce(1x1)
    #      (folded into w_main on the host) + attn*sk(x) + biases.
    #      Every 3x3 tap is a contiguous row-range slice of the flat z slab. ----
    for c0 in range(0, span, chunk):
        xsk = x_ref[0, pad_off + c0:pad_off + c0 + chunk, :].astype(bf16)
        acc = jnp.dot(xsk, w_sk_ref[...], preferred_element_type=f32) + b_out_ref[...]
        for t in range(9):
            dy, dx = divmod(t, 3)
            sh = c0 + dy * Wp + dx
            acc = acc + jnp.dot(z_ref[sh:sh + chunk, :], w_main_ref[t],
                                preferred_element_type=f32)
        acc_ref[c0:c0 + chunk, :] = acc

    # ---- stage 3: lane-dense output: (span, 128) -> (c_out, span) and one store. ----
    o_ref[0] = jnp.transpose(acc_ref[...])[:c_out, :]


# ----------------------------- wrapper / pallas_call -----------------------------

@functools.partial(jax.jit, static_argnames=("c_out",))
def conv_sae_forward(x_nchw, fused, *, c_out):
    """Conv_SAE forward.  x_nchw: (N, c_in, H, W) f32 -> (N, c_out, H, W) f32."""
    N, c_in, H, W = x_nchw.shape
    Wp = W + 2
    NPIX = (H + 2) * Wp                       # padded pixel count
    SPAN = H * Wp                             # kernel output rows (wrapper slices :W cols)
    NPZ = _round_up(NPIX + 2, 8)              # +2 halo rows needed by the largest tap shift
    chunk = _pick_chunk(SPAN)

    cpad = fused['w_zin'].shape[1]
    copad = fused['w_main'].shape[2]

    # zero-pad spatially (this *is* the `padding=1` of expand) and flatten pixel-major.
    x_nhwc = jnp.transpose(x_nchw, (0, 2, 3, 1))
    xp = jnp.pad(x_nhwc, ((0, 0), (1, 1), (1, 1), (0, 0))).reshape(N, NPIX, c_in)
    xp = jnp.pad(xp, ((0, 0), (0, NPZ - NPIX), (0, 0)))            # zero tail rows

    def wspec(a):
        nd = a.ndim
        return pl.BlockSpec(a.shape, lambda n: (0,) * nd)          # resident, loaded once

    weights = (fused['w_zin'], fused['b_zin'], fused['w_main'], fused['w_sk'],
               fused['b_out'])
    in_specs = [pl.BlockSpec((1, NPZ, c_in), lambda n: (n, 0, 0))]
    in_specs += [wspec(a) for a in weights]

    flops = N * (2 * NPZ * c_in * cpad + 2 * SPAN * c_in * copad
                 + 9 * 2 * SPAN * cpad * copad)
    bytes_accessed = (N * NPZ * c_in * 4 + N * c_out * SPAN * 4
                      + 2 * (c_in * cpad + 9 * cpad * copad + c_in * copad)
                      + 4 * (cpad + copad))

    out = pl.pallas_call(
        functools.partial(_conv_sae_kernel, H=H, W=W, c_out=c_out, chunk=chunk),
        grid=(N,),
        in_specs=in_specs,
        out_specs=pl.BlockSpec((1, c_out, SPAN), lambda n: (n, 0, 0)),
        out_shape=jax.ShapeDtypeStruct((N, c_out, SPAN), jnp.float32),
        scratch_shapes=[
            pltpu.VMEM((NPZ, cpad), jnp.bfloat16),       # z = [y0 | u13 | 0] slab
            pltpu.VMEM((SPAN, copad), jnp.float32),      # output-channel accumulator
        ],
        compiler_params=pltpu.CompilerParams(dimension_semantics=("parallel",)),
        cost_estimate=pl.CostEstimate(flops=flops, transcendentals=0,
                                      bytes_accessed=bytes_accessed),
    )(xp, *weights)

    # (N, c_out, H*(W+2)) -> NCHW with only a reshape + slice (no transpose pass).
    return out.reshape(N, c_out, H, Wp)[:, :, :, :W]


# ----------------------------- parameters & host-side folding -----------------------------

def init_conv_sae_params(key, c_in, c_out, gain=2, depth_multiplier=2):
    """Raw parameters mirroring the PyTorch Conv_SAE module (requires c_in == c_out,
    exactly as the PyTorch Scale_Atttention forward does)."""
    mid = int(c_in * gain)
    mid13 = int(mid * depth_multiplier)
    keys = iter(jax.random.split(key, 32))

    def rnd(shape, std=0.1):
        return jax.random.normal(next(keys), shape, jnp.float32) * std

    p = {
        # Scale_Atttention (two 1x1 convs applied to the constant `scale * ones` tensor)
        'attn_w1': rnd((c_in, c_out)), 'attn_b1': rnd((c_out,)),
        'attn_w2': rnd((c_out, c_out)), 'attn_b2': rnd((c_out,)),
        # sk (1x1)
        'sk_w': rnd((c_in, c_out)), 'sk_b': rnd((c_out,)),
        # expand (1x1 conv with padding=1)
        'expand_w': rnd((c_in, mid)), 'expand_b': rnd((mid,)),
        # TDE: dense conv3x3   (tap layout: index t = 3*dy + dx, weight (Cin, Cout))
        'k0': rnd((9, mid, mid)), 'b0': rnd((mid,)),
        # TDE: conv1x1
        'c11_w': rnd((mid, mid)), 'c11_b': rnd((mid,)),
        # TDE: conv1x1-conv3x3 (depth_multiplier = 2)
        'c13_k0': rnd((mid, mid13)), 'c13_b0': rnd((mid13,)),
        'c13_k1': rnd((9, mid13, mid)), 'c13_b1': rnd((mid,)),
        # reduce (1x1)
        'reduce_w': rnd((mid, c_out)), 'reduce_b': rnd((c_out,)),
    }
    # TDE: conv1x1-sobelx / -sobely / -laplacian (1x1 conv then depthwise scale*mask)
    for name in ('sbx', 'sby', 'lpl'):
        p[name + '_k0'] = rnd((mid, mid))
        p[name + '_b0'] = rnd((mid,))
        p[name + '_scale'] = rnd((mid,), 0.001)
        p[name + '_bias'] = rnd((mid,), 0.001)
    return p, mid, mid13


def prepare_fused_weights(p, c_in, c_out, mid, mid13, attn_scale=2.0):
    """Exact host-side re-association of every linear branch of Conv_SAE into the five
    operands the fused kernel needs (no change to the forward-pass math)."""
    cz = mid + mid13
    cpad = _round_up(cz, 128)            # z channels padded to a full lane tile
    copad = _round_up(c_out, 128)        # output channels padded for the aligned transpose

    # Scale_Atttention attention vector: depends only on parameters.
    tens = jnp.full((1, c_out), attn_scale, jnp.float32)
    h = tens @ p['attn_w1'] + p['attn_b1']
    h = h * jax.nn.sigmoid(h)                                     # SiLU
    attn = jax.nn.sigmoid(h @ p['attn_w2'] + p['attn_b2'])[0]     # (c_out,)

    # Stage-1 fused weight: x -> [y0 | u13 | 0]   (u13 = conv1x1 of y0 inside c13 branch)
    w_zin = jnp.zeros((c_in, cpad), jnp.float32)
    w_zin = w_zin.at[:, :mid].set(p['expand_w'])
    w_zin = w_zin.at[:, mid:cz].set(p['expand_w'] @ p['c13_k0'])
    b_zin = jnp.zeros((cpad,), jnp.float32)
    b_zin = b_zin.at[:mid].set(p['expand_b'])
    b_zin = b_zin.at[mid:cz].set(p['expand_b'] @ p['c13_k0'] + p['c13_b0'])

    # Per-tap combined weight over [y0 | u13] channels, with the reduce 1x1 folded in:
    #   conv3x3 + sobel/laplacian (depthwise(scale*mask) o conv1x1 == shift-add of k0*scale)
    #   + center-tap identity (x1) + center-tap conv1x1 (x2) ; u13 rows carry c13_k1.
    masks = (('sbx', SOBEL_X), ('sby', SOBEL_Y), ('lpl', LAPLACIAN))
    eye = jnp.eye(mid, dtype=jnp.float32)
    w_main = jnp.zeros((9, cpad, copad), jnp.float32)
    for t in range(9):
        dy, dx = divmod(t, 3)
        blk = p['k0'][t]
        for name, m in masks:
            blk = blk + m[dy, dx] * (p[name + '_k0'] * p[name + '_scale'][None, :])
        if t == 4:                                   # center tap: x1 + conv1x1(x1)
            blk = blk + eye + p['c11_w']
        w_main = w_main.at[t, :mid, :c_out].set(blk @ p['reduce_w'])
        w_main = w_main.at[t, mid:cz, :c_out].set(p['c13_k1'][t] @ p['reduce_w'])

    b_y = p['b0'] + p['c13_b1'] + p['c11_b']
    for name, m in masks:
        b_y = b_y + p[name + '_scale'] * p[name + '_b0'] * jnp.sum(m) + p[name + '_bias']

    # attn * sk(x) and all remaining biases, folded into one weight + one bias vector.
    w_sk = jnp.zeros((c_in, copad), jnp.float32)
    w_sk = w_sk.at[:, :c_out].set(p['sk_w'] * attn[None, :])
    b_out = jnp.zeros((copad,), jnp.float32)
    b_out = b_out.at[:c_out].set(b_y @ p['reduce_w'] + p['reduce_b'] + attn * p['sk_b'])

    bf = jnp.bfloat16
    return dict(
        w_zin=w_zin.astype(bf),
        b_zin=b_zin.reshape(1, cpad),
        w_main=w_main.astype(bf),
        w_sk=w_sk.astype(bf),
        b_out=b_out.reshape(1, copad),
    )


# ----------------------------- pure-JAX reference (literal PyTorch forward) -----------------------------

def conv_sae_reference(x_nchw, p, c_out, attn_scale):
    x = jnp.transpose(x_nchw, (0, 2, 3, 1)).astype(jnp.float32)   # NHWC
    N, H, W, c_in = x.shape

    def conv1x1(t, w, b):
        return t @ w + b

    def conv3x3_valid(t, w9, b):
        Hp, Wp = t.shape[1], t.shape[2]
        acc = 0.
        for idx in range(9):
            dy, dx = idx // 3, idx % 3
            acc = acc + t[:, dy:dy + Hp - 2, dx:dx + Wp - 2, :] @ w9[idx]
        return acc + b

    tens = jnp.full((1, c_out), attn_scale, jnp.float32)
    h = tens @ p['attn_w1'] + p['attn_b1']
    h = h * jax.nn.sigmoid(h)
    attn = jax.nn.sigmoid(h @ p['attn_w2'] + p['attn_b2'])[0]

    xp = jnp.pad(x, ((0, 0), (1, 1), (1, 1), (0, 0)))
    y0 = conv1x1(xp, p['expand_w'], p['expand_b'])                 # expand, padding=1

    x1 = y0[:, 1:-1, 1:-1, :]
    x2 = conv1x1(x1, p['c11_w'], p['c11_b'])
    a = conv3x3_valid(y0, p['k0'], p['b0'])
    b_ = conv3x3_valid(conv1x1(y0, p['c13_k0'], p['c13_b0']), p['c13_k1'], p['c13_b1'])

    def edge(name, mask):
        u = conv1x1(y0, p[name + '_k0'], p[name + '_b0'])
        acc = 0.
        for idx in range(9):
            dy, dx = idx // 3, idx % 3
            acc = acc + mask[dy, dx] * u[:, dy:dy + H, dx:dx + W, :]
        return acc * p[name + '_scale'] + p[name + '_bias']

    y = a + b_ + edge('sbx', SOBEL_X) + edge('sby', SOBEL_Y) + edge('lpl', LAPLACIAN) + x1 + x2
    x_1 = conv1x1(y, p['reduce_w'], p['reduce_b'])
    sk = attn * conv1x1(x, p['sk_w'], p['sk_b'])
    out = x_1 + sk
    return jnp.transpose(out, (0, 3, 1, 2))


# ----------------------------- main -----------------------------

if __name__ == "__main__":
    c_in = c_out = 16        # Conv_SAE requires c_in == c_out (Scale_Atttention forward)
    gain = 2                 # gain1 as used in EdgeSR -> mid = 32, mid13 = 64
    attn_scale = 2.0         # the 'scale' argument of Conv_SAE
    N, H, W = 2, 16, 16

    key = jax.random.PRNGKey(0)
    kp, kx = jax.random.split(key)
    params, mid, mid13 = init_conv_sae_params(kp, c_in, c_out, gain=gain, depth_multiplier=2)
    fused = prepare_fused_weights(params, c_in, c_out, mid, mid13, attn_scale)

    x = jax.random.normal(kx, (N, c_in, H, W), jnp.float32)

    out = jax.block_until_ready(conv_sae_forward(x, fused, c_out=c_out))
    assert out.shape == (N, c_out, H, W)

    ref = jax.block_until_ready(conv_sae_reference(x, params, c_out, attn_scale))
    # bf16 operands / f32 accumulation should land at a few 1e-3 global-relative error;
    # tightened from 0.1 so host-side folding bugs are not masked.
    rel_err = float(jnp.max(jnp.abs(out - ref)) / (jnp.max(jnp.abs(ref)) + 1e-6))
    assert rel_err < 1e-2, f"mismatch vs pure-JAX reference: rel-max err {rel_err:.2e}"

    print("KERNEL_OK")
</pallas_src>

<mosaic_0001>
module attributes {stable_mosaic.version = 11 : i64} {
  func.func @_conv_sae_kernel(%arg0: i32, %arg1: memref<1x328x16xf32, #tpu.memory_space<vmem>>, %arg2: memref<16x128xbf16, #tpu.memory_space<vmem>>, %arg3: memref<1x128xf32, #tpu.memory_space<vmem>>, %arg4: memref<9x128x128xbf16, #tpu.memory_space<vmem>>, %arg5: memref<16x128xbf16, #tpu.memory_space<vmem>>, %arg6: memref<1x128xf32, #tpu.memory_space<vmem>>, %arg7: memref<1x16x288xf32, #tpu.memory_space<vmem>>, %arg8: memref<328x128xbf16, #tpu.memory_space<vmem>>, %arg9: memref<288x128xf32, #tpu.memory_space<vmem>>) attributes {dimension_semantics = [#tpu.dimension_semantics<parallel>], iteration_bounds = array<i64: 2>, scalar_prefetch = 0 : i64, scratch_operands = 2 : i64, tpu.core_type = #tpu.core_type<tc>, window_params = [{transform_indices = @transform_0, window_bounds = array<i64: 1, 328, 16>}, {pipeline_mode = #tpu.pipeline_mode<synchronous>, transform_indices = @transform_1, window_bounds = array<i64: 16, 128>}, {pipeline_mode = #tpu.pipeline_mode<synchronous>, transform_indices = @transform_2, window_bounds = array<i64: 1, 128>}, {pipeline_mode = #tpu.pipeline_mode<synchronous>, transform_indices = @transform_3, window_bounds = array<i64: 9, 128, 128>}, {pipeline_mode = #tpu.pipeline_mode<synchronous>, transform_indices = @transform_4, window_bounds = array<i64: 16, 128>}, {pipeline_mode = #tpu.pipeline_mode<synchronous>, transform_indices = @transform_5, window_bounds = array<i64: 1, 128>}, {transform_indices = @transform_6, window_bounds = array<i64: 1, 16, 288>}]} {
    %c0 = arith.constant 0 : index
    %c0_0 = arith.constant 0 : index
    %c0_1 = arith.constant 0 : index
    %0 = vector.load %arg1[%c0, %c0_0, %c0_1] : memref<1x328x16xf32, #tpu.memory_space<vmem>>, vector<1x96x16xf32>
    %1 = vector.shape_cast %0 : vector<1x96x16xf32> to vector<96x16xf32>
    %2 = arith.truncf %1 : vector<96x16xf32> to vector<96x16xbf16>
    %c0_2 = arith.constant 0 : index
    %c0_3 = arith.constant 0 : index
    %3 = vector.load %arg2[%c0_2, %c0_3] : memref<16x128xbf16, #tpu.memory_space<vmem>>, vector<16x128xbf16>
    %cst = arith.constant dense<0.000000e+00> : vector<96x128xf32>
    %4 = tpu.matmul %2, %3, %cst {dimension_numbers = #tpu.dot_dimension_numbers<[1], [0], [0], [1], [0, 0, 1, 1], [], []>} : vector<96x16xbf16>, vector<16x128xbf16>, vector<96x128xf32> -> vector<96x128xf32>
    %c0_4 = arith.constant 0 : index
    %c0_5 = arith.constant 0 : index
    %5 = vector.load %arg3[%c0_4, %c0_5] : memref<1x128xf32, #tpu.memory_space<vmem>>, vector<1x128xf32>
    %6 = vector.broadcast %5 : vector<1x128xf32> to vector<96x128xf32>
    %7 = arith.addf %4, %6 : vector<96x128xf32>
    %8 = arith.truncf %7 : vector<96x128xf32> to vector<96x128xbf16>
    %c0_6 = arith.constant 0 : index
    %c0_7 = arith.constant 0 : index
    %9 = vector.load %arg8[%c0_6, %c0_7] : memref<328x128xbf16, #tpu.memory_space<vmem>>, vector<96x128xbf16>
    tpu.vector_store %arg8[%c0_6, %c0_7], %8 {strides = array<i32>} : memref<328x128xbf16, #tpu.memory_space<vmem>>, vector<96x128xbf16>,
    %c0_8 = arith.constant 0 : index
    %c96 = arith.constant 96 : index
    %c0_9 = arith.constant 0 : index
    %10 = vector.load %arg1[%c0_8, %c96, %c0_9] : memref<1x328x16xf32, #tpu.memory_space<vmem>>, vector<1x96x16xf32>
    %11 = vector.shape_cast %10 : vector<1x96x16xf32> to vector<96x16xf32>
    %12 = arith.truncf %11 : vector<96x16xf32> to vector<96x16xbf16>
    %c0_10 = arith.constant 0 : index
    %c0_11 = arith.constant 0 : index
    %13 = vector.load %arg2[%c0_10, %c0_11] : memref<16x128xbf16, #tpu.memory_space<vmem>>, vector<16x128xbf16>
    %cst_12 = arith.constant dense<0.000000e+00> : vector<96x128xf32>
    %14 = tpu.matmul %12, %13, %cst_12 {dimension_numbers = #tpu.dot_dimension_numbers<[1], [0], [0], [1], [0, 0, 1, 1], [], []>} : vector<96x16xbf16>, vector<16x128xbf16>, vector<96x128xf32> -> vector<96x128xf32>
    %c0_13 = arith.constant 0 : index
    %c0_14 = arith.constant 0 : index
    %15 = vector.load %arg3[%c0_13, %c0_14] : memref<1x128xf32, #tpu.memory_space<vmem>>, vector<1x128xf32>
    %16 = vector.broadcast %15 : vector<1x128xf32> to vector<96x128xf32>
    %17 = arith.addf %14, %16 : vector<96x128xf32>
    %18 = arith.truncf %17 : vector<96x128xf32> to vector<96x128xbf16>
    %c96_15 = arith.constant 96 : index
    %c0_16 = arith.constant 0 : index
    %19 = vector.load %arg8[%c96_15, %c0_16] : memref<328x128xbf16, #tpu.memory_space<vmem>>, vector<96x128xbf16>
    tpu.vector_store %arg8[%c96_15, %c0_16], %18 {strides = array<i32>} : memref<328x128xbf16, #tpu.memory_space<vmem>>, vector<96x128xbf16>,
    %c0_17 = arith.constant 0 : index
    %c192 = arith.constant 192 : index
    %c0_18 = arith.constant 0 : index
    %20 = vector.load %arg1[%c0_17, %c192, %c0_18] : memref<1x328x16xf32, #tpu.memory_space<vmem>>, vector<1x96x16xf32>
    %21 = vector.shape_cast %20 : vector<1x96x16xf32> to vector<96x16xf32>
    %22 = arith.truncf %21 : vector<96x16xf32> to vector<96x16xbf16>
    %c0_19 = arith.constant 0 : index
    %c0_20 = arith.constant 0 : index
    %23 = vector.load %arg2[%c0_19, %c0_20] : memref<16x128xbf16, #tpu.memory_space<vmem>>, vector<16x128xbf16>
    %cst_21 = arith.constant dense<0.000000e+00> : vector<96x128xf32>
    %24 = tpu.matmul %22, %23, %cst_21 {dimension_numbers = #tpu.dot_dimension_numbers<[1], [0], [0], [1], [0, 0, 1, 1], [], []>} : vector<96x16xbf16>, vector<16x128xbf16>, vector<96x128xf32> -> vector<96x128xf32>
    %c0_22 = arith.constant 0 : index
    %c0_23 = arith.constant 0 : index
    %25 = vector.load %arg3[%c0_22, %c0_23] : memref<1x128xf32, #tpu.memory_space<vmem>>, vector<1x128xf32>
    %26 = vector.broadcast %25 : vector<1x128xf32> to vector<96x128xf32>
    %27 = arith.addf %24, %26 : vector<96x128xf32>
    %28 = arith.truncf %27 : vector<96x128xf32> to vector<96x128xbf16>
    %c192_24 = arith.constant 192 : index
    %c0_25 = arith.constant 0 : index
    %29 = vector.load %arg8[%c192_24, %c0_25] : memref<328x128xbf16, #tpu.memory_space<vmem>>, vector<96x128xbf16>
    tpu.vector_store %arg8[%c192_24, %c0_25], %28 {strides = array<i32>} : memref<328x128xbf16, #tpu.memory_space<vmem>>, vector<96x128xbf16>,
    %c0_26 = arith.constant 0 : index
    %c288 = arith.constant 288 : index
    %c0_27 = arith.constant 0 : index
    %30 = vector.load %arg1[%c0_26, %c288, %c0_27] : memref<1x328x16xf32, #tpu.memory_space<vmem>>, vector<1x40x16xf32>
    %31 = vector.shape_cast %30 : vector<1x40x16xf32> to vector<40x16xf32>
    %32 = arith.truncf %31 : vector<40x16xf32> to vector<40x16xbf16>
    %c0_28 = arith.constant 0 : index
    %c0_29 = arith.constant 0 : index
    %33 = vector.load %arg2[%c0_28, %c0_29] : memref<16x128xbf16, #tpu.memory_space<vmem>>, vector<16x128xbf16>
    %cst_30 = arith.constant dense<0.000000e+00> : vector<40x128xf32>
    %34 = tpu.matmul %32, %33, %cst_30 {dimension_numbers = #tpu.dot_dimension_numbers<[1], [0], [0], [1], [0, 0, 1, 1], [], []>} : vector<40x16xbf16>, vector<16x128xbf16>, vector<40x128xf32> -> vector<40x128xf32>
    %c0_31 = arith.constant 0 : index
    %c0_32 = arith.constant 0 : index
    %35 = vector.load %arg3[%c0_31, %c0_32] : memref<1x128xf32, #tpu.memory_space<vmem>>, vector<1x128xf32>
    %36 = vector.broadcast %35 : vector<1x128xf32> to vector<40x128xf32>
    %37 = arith.addf %34, %36 : vector<40x128xf32>
    %38 = arith.truncf %37 : vector<40x128xf32> to vector<40x128xbf16>
    %c288_33 = arith.constant 288 : index
    %c0_34 = arith.constant 0 : index
    %39 = vector.load %arg8[%c288_33, %c0_34] : memref<328x128xbf16, #tpu.memory_space<vmem>>, vector<40x128xbf16>
    tpu.vector_store %arg8[%c288_33, %c0_34], %38 {strides = array<i32>} : memref<328x128xbf16, #tpu.memory_space<vmem>>, vector<40x128xbf16>,
    %c0_35 = arith.constant 0 : index
    %c19 = arith.constant 19 : index
    %c0_36 = arith.constant 0 : index
    %40 = vector.load %arg1[%c0_35, %c19, %c0_36] : memref<1x328x16xf32, #tpu.memory_space<vmem>>, vector<1x96x16xf32>
    %41 = vector.shape_cast %40 : vector<1x96x16xf32> to vector<96x16xf32>
    %42 = arith.truncf %41 : vector<96x16xf32> to vector<96x16xbf16>
    %c0_37 = arith.constant 0 : index
    %c0_38 = arith.constant 0 : index
    %43 = vector.load %arg5[%c0_37, %c0_38] : memref<16x128xbf16, #tpu.memory_space<vmem>>, vector<16x128xbf16>
    %cst_39 = arith.constant dense<0.000000e+00> : vector<96x128xf32>
    %44 = tpu.matmul %42, %43, %cst_39 {dimension_numbers = #tpu.dot_dimension_numbers<[1], [0], [0], [1], [0, 0, 1, 1], [], []>} : vector<96x16xbf16>, vector<16x128xbf16>, vector<96x128xf32> -> vector<96x128xf32>
    %c0_40 = arith.constant 0 : index
    %c0_41 = arith.constant 0 : index
    %45 = vector.load %arg6[%c0_40, %c0_41] : memref<1x128xf32, #tpu.memory_space<vmem>>, vector<1x128xf32>
    %46 = vector.broadcast %45 : vector<1x128xf32> to vector<96x128xf32>
    %47 = arith.addf %44, %46 : vector<96x128xf32>
    %c0_42 = arith.constant 0 : index
    %c0_43 = arith.constant 0 : index
    %48 = vector.load %arg8[%c0_42, %c0_43] : memref<328x128xbf16, #tpu.memory_space<vmem>>, vector<96x128xbf16>
    %c0_44 = arith.constant 0 : index
    %c0_45 = arith.constant 0 : index
    %c0_46 = arith.constant 0 : index
    %49 = vector.load %arg4[%c0_44, %c0_45, %c0_46] : memref<9x128x128xbf16, #tpu.memory_space<vmem>>, vector<1x128x128xbf16>
    %50 = vector.shape_cast %49 : vector<1x128x128xbf16> to vector<128x128xbf16>
    %cst_47 = arith.constant dense<0.000000e+00> : vector<96x128xf32>
    %51 = tpu.matmul %48, %50, %cst_47 {dimension_numbers = #tpu.dot_dimension_numbers<[1], [0], [0], [1], [0, 0, 1, 1], [], []>} : vector<96x128xbf16>, vector<128x128xbf16>, vector<96x128xf32> -> vector<96x128xf32>
    %52 = arith.addf %47, %51 : vector<96x128xf32>
    %c1 = arith.constant 1 : index
    %c0_48 = arith.constant 0 : index
    %53 = vector.load %arg8[%c1, %c0_48] : memref<328x128xbf16, #tpu.memory_space<vmem>>, vector<96x128xbf16>
    %c1_49 = arith.constant 1 : index
    %c0_50 = arith.constant 0 : index
    %c0_51 = arith.constant 0 : index
    %54 = vector.load %arg4[%c1_49, %c0_50, %c0_51] : memref<9x128x128xbf16, #tpu.memory_space<vmem>>, vector<1x128x128xbf16>
    %55 = vector.shape_cast %54 : vector<1x128x128xbf16> to vector<128x128xbf16>
    %cst_52 = arith.constant dense<0.000000e+00> : vector<96x128xf32>
    %56 = tpu.matmul %53, %55, %cst_52 {dimension_numbers = #tpu.dot_dimension_numbers<[1], [0], [0], [1], [0, 0, 1, 1], [], []>} : vector<96x128xbf16>, vector<128x128xbf16>, vector<96x128xf32> -> vector<96x128xf32>
    %57 = arith.addf %52, %56 : vector<96x128xf32>
    %c2 = arith.constant 2 : index
    %c0_53 = arith.constant 0 : index
    %58 = vector.load %arg8[%c2, %c0_53] : memref<328x128xbf16, #tpu.memory_space<vmem>>, vector<96x128xbf16>
    %c2_54 = arith.constant 2 : index
    %c0_55 = arith.constant 0 : index
    %c0_56 = arith.constant 0 : index
    %59 = vector.load %arg4[%c2_54, %c0_55, %c0_56] : memref<9x128x128xbf16, #tpu.memory_space<vmem>>, vector<1x128x128xbf16>
    %60 = vector.shape_cast %59 : vector<1x128x128xbf16> to vector<128x128xbf16>
    %cst_57 = arith.constant dense<0.000000e+00> : vector<96x128xf32>
    %61 = tpu.matmul %58, %60, %cst_57 {dimension_numbers = #tpu.dot_dimension_numbers<[1], [0], [0], [1], [0, 0, 1, 1], [], []>} : vector<96x128xbf16>, vector<128x128xbf16>, vector<96x128xf32> -> vector<96x128xf32>
    %62 = arith.addf %57, %61 : vector<96x128xf32>
    %c18 = arith.constant 18 : index
    %c0_58 = arith.constant 0 : index
    %63 = vector.load %arg8[%c18, %c0_58] : memref<328x128xbf16, #tpu.memory_space<vmem>>, vector<96x128xbf16>
    %c3 = arith.constant 3 : index
    %c0_59 = arith.constant 0 : index
    %c0_60 = arith.constant 0 : index
    %64 = vector.load %arg4[%c3, %c0_59, %c0_60] : memref<9x128x128xbf16, #tpu.memory_space<vmem>>, vector<1x128x128xbf16>
    %65 = vector.shape_cast %64 : vector<1x128x128xbf16> to vector<128x128xbf16>
    %cst_61 = arith.constant dense<0.000000e+00> : vector<96x128xf32>
    %66 = tpu.matmul %63, %65, %cst_61 {dimension_numbers = #tpu.dot_dimension_numbers<[1], [0], [0], [1], [0, 0, 1, 1], [], []>} : vector<96x128xbf16>, vector<128x128xbf16>, vector<96x128xf32> -> vector<96x128xf32>
    %67 = arith.addf %62, %66 : vector<96x128xf32>
    %c19_62 = arith.constant 19 : index
    %c0_63 = arith.constant 0 : index
    %68 = vector.load %arg8[%c19_62, %c0_63] : memref<328x128xbf16, #tpu.memory_space<vmem>>, vector<96x128xbf16>
    %c4 = arith.constant 4 : index
    %c0_64 = arith.constant 0 : index
    %c0_65 = arith.constant 0 : index
    %69 = vector.load %arg4[%c4, %c0_64, %c0_65] : memref<9x128x128xbf16, #tpu.memory_space<vmem>>, vector<1x128x128xbf16>
    %70 = vector.shape_cast %69 : vector<1x128x128xbf16> to vector<128x128xbf16>
    %cst_66 = arith.constant dense<0.000000e+00> : vector<96x128xf32>
    %71 = tpu.matmul %68, %70, %cst_66 {dimension_numbers = #tpu.dot_dimension_numbers<[1], [0], [0], [1], [0, 0, 1, 1], [], []>} : vector<96x128xbf16>, vector<128x128xbf16>, vector<96x128xf32> -> vector<96x128xf32>
    %72 = arith.addf %67, %71 : vector<96x128xf32>
    %c20 = arith.constant 20 : index
    %c0_67 = arith.constant 0 : index
    %73 = vector.load %arg8[%c20, %c0_67] : memref<328x128xbf16, #tpu.memory_space<vmem>>, vector<96x128xbf16>
    %c5 = arith.constant 5 : index
    %c0_68 = arith.constant 0 : index
    %c0_69 = arith.constant 0 : index
    %74 = vector.load %arg4[%c5, %c0_68, %c0_69] : memref<9x128x128xbf16, #tpu.memory_space<vmem>>, vector<1x128x128xbf16>
    %75 = vector.shape_cast %74 : vector<1x128x128xbf16> to vector<128x128xbf16>
    %cst_70 = arith.constant dense<0.000000e+00> : vector<96x128xf32>
    %76 = tpu.matmul %73, %75, %cst_70 {dimension_numbers = #tpu.dot_dimension_numbers<[1], [0], [0], [1], [0, 0, 1, 1], [], []>} : vector<96x128xbf16>, vector<128x128xbf16>, vector<96x128xf32> -> vector<96x128xf32>
    %77 = arith.addf %72, %76 : vector<96x128xf32>
    %c36 = arith.constant 36 : index
    %c0_71 = arith.constant 0 : index
    %78 = vector.load %arg8[%c36, %c0_71] : memref<328x128xbf16, #tpu.memory_space<vmem>>, vector<96x128xbf16>
    %c6 = arith.constant 6 : index
    %c0_72 = arith.constant 0 : index
    %c0_73 = arith.constant 0 : index
    %79 = vector.load %arg4[%c6, %c0_72, %c0_73] : memref<9x128x128xbf16, #tpu.memory_space<vmem>>, vector<1x128x128xbf16>
    %80 = vector.shape_cast %79 : vector<1x128x128xbf16> to vector<128x128xbf16>
    %cst_74 = arith.constant dense<0.000000e+00> : vector<96x128xf32>
    %81 = tpu.matmul %78, %80, %cst_74 {dimension_numbers = #tpu.dot_dimension_numbers<[1], [0], [0], [1], [0, 0, 1, 1], [], []>} : vector<96x128xbf16>, vector<128x128xbf16>, vector<96x128xf32> -> vector<96x128xf32>
    %82 = arith.addf %77, %81 : vector<96x128xf32>
    %c37 = arith.constant 37 : index
    %c0_75 = arith.constant 0 : index
    %83 = vector.load %arg8[%c37, %c0_75] : memref<328x128xbf16, #tpu.memory_space<vmem>>, vector<96x128xbf16>
    %c7 = arith.constant 7 : index
    %c0_76 = arith.constant 0 : index
    %c0_77 = arith.constant 0 : index
    %84 = vector.load %arg4[%c7, %c0_76, %c0_77] : memref<9x128x128xbf16, #tpu.memory_space<vmem>>, vector<1x128x128xbf16>
    %85 = vector.shape_cast %84 : vector<1x128x128xbf16> to vector<128x128xbf16>
    %cst_78 = arith.constant dense<0.000000e+00> : vector<96x128xf32>
    %86 = tpu.matmul %83, %85, %cst_78 {dimension_numbers = #tpu.dot_dimension_numbers<[1], [0], [0], [1], [0, 0, 1, 1], [], []>} : vector<96x128xbf16>, vector<128x128xbf16>, vector<96x128xf32> -> vector<96x128xf32>
    %87 = arith.addf %82, %86 : vector<96x128xf32>
    %c38 = arith.constant 38 : index
    %c0_79 = arith.constant 0 : index
    %88 = vector.load %arg8[%c38, %c0_79] : memref<328x128xbf16, #tpu.memory_space<vmem>>, vector<96x128xbf16>
    %c8 = arith.constant 8 : index
    %c0_80 = arith.constant 0 : index
    %c0_81 = arith.constant 0 : index
    %89 = vector.load %arg4[%c8, %c0_80, %c0_81] : memref<9x128x128xbf16, #tpu.memory_space<vmem>>, vector<1x128x128xbf16>
    %90 = vector.shape_cast %89 : vector<1x128x128xbf16> to vector<128x128xbf16>
    %cst_82 = arith.constant dense<0.000000e+00> : vector<96x128xf32>
    %91 = tpu.matmul %88, %90, %cst_82 {dimension_numbers = #tpu.dot_dimension_numbers<[1], [0], [0], [1], [0, 0, 1, 1], [], []>} : vector<96x128xbf16>, vector<128x128xbf16>, vector<96x128xf32> -> vector<96x128xf32>
    %92 = arith.addf %87, %91 : vector<96x128xf32>
    %c0_83 = arith.constant 0 : index
    %c0_84 = arith.constant 0 : index
    %93 = vector.load %arg9[%c0_83, %c0_84] : memref<288x128xf32, #tpu.memory_space<vmem>>, vector<96x128xf32>
    tpu.vector_store %arg9[%c0_83, %c0_84], %92 {strides = array<i32>} : memref<288x128xf32, #tpu.memory_space<vmem>>, vector<96x128xf32>,
    %c0_85 = arith.constant 0 : index
    %c115 = arith.constant 115 : index
    %c0_86 = arith.constant 0 : index
    %94 = vector.load %arg1[%c0_85, %c115, %c0_86] : memref<1x328x16xf32, #tpu.memory_space<vmem>>, vector<1x96x16xf32>
    %95 = vector.shape_cast %94 : vector<1x96x16xf32> to vector<96x16xf32>
    %96 = arith.truncf %95 : vector<96x16xf32> to vector<96x16xbf16>
    %c0_87 = arith.constant 0 : index
    %c0_88 = arith.constant 0 : index
    %97 = vector.load %arg5[%c0_87, %c0_88] : memref<16x128xbf16, #tpu.memory_space<vmem>>, vector<16x128xbf16>
    %cst_89 = arith.constant dense<0.000000e+00> : vector<96x128xf32>
    %98 = tpu.matmul %96, %97, %cst_89 {dimension_numbers = #tpu.dot_dimension_numbers<[1], [0], [0], [1], [0, 0, 1, 1], [], []>} : vector<96x16xbf16>, vector<16x128xbf16>, vector<96x128xf32> -> vector<96x128xf32>
    %c0_90 = arith.constant 0 : index
    %c0_91 = arith.constant 0 : index
    %99 = vector.load %arg6[%c0_90, %c0_91] : memref<1x128xf32, #tpu.memory_space<vmem>>, vector<1x128xf32>
    %100 = vector.broadcast %99 : vector<1x128xf32> to vector<96x128xf32>
    %101 = arith.addf %98, %100 : vector<96x128xf32>
    %c96_92 = arith.constant 96 : index
    %c0_93 = arith.constant 0 : index
    %102 = vector.load %arg8[%c96_92, %c0_93] : memref<328x128xbf16, #tpu.memory_space<vmem>>, vector<96x128xbf16>
    %c0_94 = arith.constant 0 : index
    %c0_95 = arith.constant 0 : index
    %c0_96 = arith.constant 0 : index
    %103 = vector.load %arg4[%c0_94, %c0_95, %c0_96] : memref<9x128x128xbf16, #tpu.memory_space<vmem>>, vector<1x128x128xbf16>
    %104 = vector.shape_cast %103 : vector<1x128x128xbf16> to vector<128x128xbf16>
    %cst_97 = arith.constant dense<0.000000e+00> : vector<96x128xf32>
    %105 = tpu.matmul %102, %104, %cst_97 {dimension_numbers = #tpu.dot_dimension_numbers<[1], [0], [0], [1], [0, 0, 1, 1], [], []>} : vector<96x128xbf16>, vector<128x128xbf16>, vector<96x128xf32> -> vector<96x128xf32>
    %106 = arith.addf %101, %105 : vector<96x128xf32>
    %c97 = arith.constant 97 : index
    %c0_98 = arith.constant 0 : index
    %107 = vector.load %arg8[%c97, %c0_98] : memref<328x128xbf16, #tpu.memory_space<vmem>>, vector<96x128xbf16>
    %c1_99 = arith.constant 1 : index
    %c0_100 = arith.constant 0 : index
    %c0_101 = arith.constant 0 : index
    %108 = vector.load %arg4[%c1_99, %c0_100, %c0_101] : memref<9x128x128xbf16, #tpu.memory_space<vmem>>, vector<1x128x128xbf16>
    %109 = vector.shape_cast %108 : vector<1x128x128xbf16> to vector<128x128xbf16>
    %cst_102 = arith.constant dense<0.000000e+00> : vector<96x128xf32>
    %110 = tpu.matmul %107, %109, %cst_102 {dimension_numbers = #tpu.dot_dimension_numbers<[1], [0], [0], [1], [0, 0, 1, 1], [], []>} : vector<96x128xbf16>, vector<128x128xbf16>, vector<96x128xf32> -> vector<96x128xf32>
    %111 = arith.addf %106, %110 : vector<96x128xf32>
    %c98 = arith.constant 98 : index
    %c0_103 = arith.constant 0 : index
    %112 = vector.load %arg8[%c98, %c0_103] : memref<328x128xbf16, #tpu.memory_space<vmem>>, vector<96x128xbf16>
    %c2_104 = arith.constant 2 : index
    %c0_105 = arith.constant 0 : index
    %c0_106 = arith.constant 0 : index
    %113 = vector.load %arg4[%c2_104, %c0_105, %c0_106] : memref<9x128x128xbf16, #tpu.memory_space<vmem>>, vector<1x128x128xbf16>
    %114 = vector.shape_cast %113 : vector<1x128x128xbf16> to vector<128x128xbf16>
    %cst_107 = arith.constant dense<0.000000e+00> : vector<96x128xf32>
    %115 = tpu.matmul %112, %114, %cst_107 {dimension_numbers = #tpu.dot_dimension_numbers<[1], [0], [0], [1], [0, 0, 1, 1], [], []>} : vector<96x128xbf16>, vector<128x128xbf16>, vector<96x128xf32> -> vector<96x128xf32>
    %116 = arith.addf %111, %115 : vector<96x128xf32>
    %c114 = arith.constant 114 : index
    %c0_108 = arith.constant 0 : index
    %117 = vector.load %arg8[%c114, %c0_108] : memref<328x128xbf16, #tpu.memory_space<vmem>>, vector<96x128xbf16>
    %c3_109 = arith.constant 3 : index
    %c0_110 = arith.constant 0 : index
    %c0_111 = arith.constant 0 : index
    %118 = vector.load %arg4[%c3_109, %c0_110, %c0_111] : memref<9x128x128xbf16, #tpu.memory_space<vmem>>, vector<1x128x128xbf16>
    %119 = vector.shape_cast %118 : vector<1x128x128xbf16> to vector<128x128xbf16>
    %cst_112 = arith.constant dense<0.000000e+00> : vector<96x128xf32>
    %120 = tpu.matmul %117, %119, %cst_112 {dimension_numbers = #tpu.dot_dimension_numbers<[1], [0], [0], [1], [0, 0, 1, 1], [], []>} : vector<96x128xbf16>, vector<128x128xbf16>, vector<96x128xf32> -> vector<96x128xf32>
    %121 = arith.addf %116, %120 : vector<96x128xf32>
    %c115_113 = arith.constant 115 : index
    %c0_114 = arith.constant 0 : index
    %122 = vector.load %arg8[%c115_113, %c0_114] : memref<328x128xbf16, #tpu.memory_space<vmem>>, vector<96x128xbf16>
    %c4_115 = arith.constant 4 : index
    %c0_116 = arith.constant 0 : index
    %c0_117 = arith.constant 0 : index
    %123 = vector.load %arg4[%c4_115, %c0_116, %c0_117] : memref<9x128x128xbf16, #tpu.memory_space<vmem>>, vector<1x128x128xbf16>
    %124 = vector.shape_cast %123 : vector<1x128x128xbf16> to vector<128x128xbf16>
    %cst_118 = arith.constant dense<0.000000e+00> : vector<96x128xf32>
    %125 = tpu.matmul %122, %124, %cst_118 {dimension_numbers = #tpu.dot_dimension_numbers<[1], [0], [0], [1], [0, 0, 1, 1], [], []>} : vector<96x128xbf16>, vector<128x128xbf16>, vector<96x128xf32> -> vector<96x128xf32>
    %126 = arith.addf %121, %125 : vector<96x128xf32>
    %c116 = arith.constant 116 : index
    %c0_119 = arith.constant 0 : index
    %127 = vector.load %arg8[%c116, %c0_119] : memref<328x128xbf16, #tpu.memory_space<vmem>>, vector<96x128xbf16>
    %c5_120 = arith.constant 5 : index
    %c0_121 = arith.constant 0 : index
    %c0_122 = arith.constant 0 : index
    %128 = vector.load %arg4[%c5_120, %c0_121, %c0_122] : memref<9x128x128xbf16, #tpu.memory_space<vmem>>, vector<1x128x128xbf16>
    %129 = vector.shape_cast %128 : vector<1x128x128xbf16> to vector<128x128xbf16>
    %cst_123 = arith.constant dense<0.000000e+00> : vector<96x128xf32>
    %130 = tpu.matmul %127, %129, %cst_123 {dimension_numbers = #tpu.dot_dimension_numbers<[1], [0], [0], [1], [0, 0, 1, 1], [], []>} : vector<96x128xbf16>, vector<128x128xbf16>, vector<96x128xf32> -> vector<96x128xf32>
    %131 = arith.addf %126, %130 : vector<96x128xf32>
    %c132 = arith.constant 132 : index
    %c0_124 = arith.constant 0 : index
    %132 = vector.load %arg8[%c132, %c0_124] : memref<328x128xbf16, #tpu.memory_space<vmem>>, vector<96x128xbf16>
    %c6_125 = arith.constant 6 : index
    %c0_126 = arith.constant 0 : index
    %c0_127 = arith.constant 0 : index
    %133 = vector.load %arg4[%c6_125, %c0_126, %c0_127] : memref<9x128x128xbf16, #tpu.memory_space<vmem>>, vector<1x128x128xbf16>
    %134 = vector.shape_cast %133 : vector<1x128x128xbf16> to vector<128x128xbf16>
    %cst_128 = arith.constant dense<0.000000e+00> : vector<96x128xf32>
    %135 = tpu.matmul %132, %134, %cst_128 {dimension_numbers = #tpu.dot_dimension_numbers<[1], [0], [0], [1], [0, 0, 1, 1], [], []>} : vector<96x128xbf16>, vector<128x128xbf16>, vector<96x128xf32> -> vector<96x128xf32>
    %136 = arith.addf %131, %135 : vector<96x128xf32>
    %c133 = arith.constant 133 : index
    %c0_129 = arith.constant 0 : index
    %137 = vector.load %arg8[%c133, %c0_129] : memref<328x128xbf16, #tpu.memory_space<vmem>>, vector<96x128xbf16>
    %c7_130 = arith.constant 7 : index
    %c0_131 = arith.constant 0 : index
    %c0_132 = arith.constant 0 : index
    %138 = vector.load %arg4[%c7_130, %c0_131, %c0_132] : memref<9x128x128xbf16, #tpu.memory_space<vmem>>, vector<1x128x128xbf16>
    %139 = vector.shape_cast %138 : vector<1x128x128xbf16> to vector<128x128xbf16>
    %cst_133 = arith.constant dense<0.000000e+00> : vector<96x128xf32>
    %140 = tpu.matmul %137, %139, %cst_133 {dimension_numbers = #tpu.dot_dimension_numbers<[1], [0], [0], [1], [0, 0, 1, 1], [], []>} : vector<96x128xbf16>, vector<128x128xbf16>, vector<96x128xf32> -> vector<96x128xf32>
    %141 = arith.addf %136, %140 : vector<96x128xf32>
    %c134 = arith.constant 134 : index
    %c0_134 = arith.constant 0 : index
    %142 = vector.load %arg8[%c134, %c0_134] : memref<328x128xbf16, #tpu.memory_space<vmem>>, vector<96x128xbf16>
    %c8_135 = arith.constant 8 : index
    %c0_136 = arith.constant 0 : index
    %c0_137 = arith.constant 0 : index
    %143 = vector.load %arg4[%c8_135, %c0_136, %c0_137] : memref<9x128x128xbf16, #tpu.memory_space<vmem>>, vector<1x128x128xbf16>
    %144 = vector.shape_cast %143 : vector<1x128x128xbf16> to vector<128x128xbf16>
    %cst_138 = arith.constant dense<0.000000e+00> : vector<96x128xf32>
    %145 = tpu.matmul %142, %144, %cst_138 {dimension_numbers = #tpu.dot_dimension_numbers<[1], [0], [0], [1], [0, 0, 1, 1], [], []>} : vector<96x128xbf16>, vector<128x128xbf16>, vector<96x128xf32> -> vector<96x128xf32>
    %146 = arith.addf %141, %145 : vector<96x128xf32>
    %c96_139 = arith.constant 96 : index
    %c0_140 = arith.constant 0 : index
    %147 = vector.load %arg9[%c96_139, %c0_140] : memref<288x128xf32, #tpu.memory_space<vmem>>, vector<96x128xf32>
    tpu.vector_store %arg9[%c96_139, %c0_140], %146 {strides = array<i32>} : memref<288x128xf32, #tpu.memory_space<vmem>>, vector<96x128xf32>,
    %c0_141 = arith.constant 0 : index
    %c211 = arith.constant 211 : index
    %c0_142 = arith.constant 0 : index
    %148 = vector.load %arg1[%c0_141, %c211, %c0_142] : memref<1x328x16xf32, #tpu.memory_space<vmem>>, vector<1x96x16xf32>
    %149 = vector.shape_cast %148 : vector<1x96x16xf32> to vector<96x16xf32>
    %150 = arith.truncf %149 : vector<96x16xf32> to vector<96x16xbf16>
    %c0_143 = arith.constant 0 : index
    %c0_144 = arith.constant 0 : index
    %151 = vector.load %arg5[%c0_143, %c0_144] : memref<16x128xbf16, #tpu.memory_space<vmem>>, vector<16x128xbf16>
    %cst_145 = arith.constant dense<0.000000e+00> : vector<96x128xf32>
    %152 = tpu.matmul %150, %151, %cst_145 {dimension_numbers = #tpu.dot_dimension_numbers<[1], [0], [0], [1], [0, 0, 1, 1], [], []>} : vector<96x16xbf16>, vector<16x128xbf16>, vector<96x128xf32> -> vector<96x128xf32>
    %c0_146 = arith.constant 0 : index
    %c0_147 = arith.constant 0 : index
    %153 = vector.load %arg6[%c0_146, %c0_147] : memref<1x128xf32, #tpu.memory_space<vmem>>, vector<1x128xf32>
    %154 = vector.broadcast %153 : vector<1x128xf32> to vector<96x128xf32>
    %155 = arith.addf %152, %154 : vector<96x128xf32>
    %c192_148 = arith.constant 192 : index
    %c0_149 = arith.constant 0 : index
    %156 = vector.load %arg8[%c192_148, %c0_149] : memref<328x128xbf16, #tpu.memory_space<vmem>>, vector<96x128xbf16>
    %c0_150 = arith.constant 0 : index
    %c0_151 = arith.constant 0 : index
    %c0_152 = arith.constant 0 : index
    %157 = vector.load %arg4[%c0_150, %c0_151, %c0_152] : memref<9x128x128xbf16, #tpu.memory_space<vmem>>, vector<1x128x128xbf16>
    %158 = vector.shape_cast %157 : vector<1x128x128xbf16> to vector<128x128xbf16>
    %cst_153 = arith.constant dense<0.000000e+00> : vector<96x128xf32>
    %159 = tpu.matmul %156, %158, %cst_153 {dimension_numbers = #tpu.dot_dimension_numbers<[1], [0], [0], [1], [0, 0, 1, 1], [], []>} : vector<96x128xbf16>, vector<128x128xbf16>, vector<96x128xf32> -> vector<96x128xf32>
    %160 = arith.addf %155, %159 : vector<96x128xf32>
    %c193 = arith.constant 193 : index
    %c0_154 = arith.constant 0 : index
    %161 = vector.load %arg8[%c193, %c0_154] : memref<328x128xbf16, #tpu.memory_space<vmem>>, vector<96x128xbf16>
    %c1_155 = arith.constant 1 : index
    %c0_156 = arith.constant 0 : index
    %c0_157 = arith.constant 0 : index
    %162 = vector.load %arg4[%c1_155, %c0_156, %c0_157] : memref<9x128x128xbf16, #tpu.memory_space<vmem>>, vector<1x128x128xbf16>
    %163 = vector.shape_cast %162 : vector<1x128x128xbf16> to vector<128x128xbf16>
    %cst_158 = arith.constant dense<0.000000e+00> : vector<96x128xf32>
    %164 = tpu.matmul %161, %163, %cst_158 {dimension_numbers = #tpu.dot_dimension_numbers<[1], [0], [0], [1], [0, 0, 1, 1], [], []>} : vector<96x128xbf16>, vector<128x128xbf16>, vector<96x128xf32> -> vector<96x128xf32>
    %165 = arith.addf %160, %164 : vector<96x128xf32>
    %c194 = arith.constant 194 : index
    %c0_159 = arith.constant 0 : index
    %166 = vector.load %arg8[%c194, %c0_159] : memref<328x128xbf16, #tpu.memory_space<vmem>>, vector<96x128xbf16>
    %c2_160 = arith.constant 2 : index
    %c0_161 = arith.constant 0 : index
    %c0_162 = arith.constant 0 : index
    %167 = vector.load %arg4[%c2_160, %c0_161, %c0_162] : memref<9x128x128xbf16, #tpu.memory_space<vmem>>, vector<1x128x128xbf16>
    %168 = vector.shape_cast %167 : vector<1x128x128xbf16> to vector<128x128xbf16>
    %cst_163 = arith.constant dense<0.000000e+00> : vector<96x128xf32>
    %169 = tpu.matmul %166, %168, %cst_163 {dimension_numbers = #tpu.dot_dimension_numbers<[1], [0], [0], [1], [0, 0, 1, 1], [], []>} : vector<96x128xbf16>, vector<128x128xbf16>, vector<96x128xf32> -> vector<96x128xf32>
    %170 = arith.addf %165, %169 : vector<96x128xf32>
    %c210 = arith.constant 210 : index
    %c0_164 = arith.constant 0 : index
    %171 = vector.load %arg8[%c210, %c0_164] : memref<328x128xbf16, #tpu.memory_space<vmem>>, vector<96x128xbf16>
    %c3_165 = arith.constant 3 : index
    %c0_166 = arith.constant 0 : index
    %c0_167 = arith.constant 0 : index
    %172 = vector.load %arg4[%c3_165, %c0_166, %c0_167] : memref<9x128x128xbf16, #tpu.memory_space<vmem>>, vector<1x128x128xbf16>
    %173 = vector.shape_cast %172 : vector<1x128x128xbf16> to vector<128x128xbf16>
    %cst_168 = arith.constant dense<0.000000e+00> : vector<96x128xf32>
    %174 = tpu.matmul %171, %173, %cst_168 {dimension_numbers = #tpu.dot_dimension_numbers<[1], [0], [0], [1], [0, 0, 1, 1], [], []>} : vector<96x128xbf16>, vector<128x128xbf16>, vector<96x128xf32> -> vector<96x128xf32>
    %175 = arith.addf %170, %174 : vector<96x128xf32>
    %c211_169 = arith.constant 211 : index
    %c0_170 = arith.constant 0 : index
    %176 = vector.load %arg8[%c211_169, %c0_170] : memref<328x128xbf16, #tpu.memory_space<vmem>>, vector<96x128xbf16>
    %c4_171 = arith.constant 4 : index
    %c0_172 = arith.constant 0 : index
    %c0_173 = arith.constant 0 : index
    %177 = vector.load %arg4[%c4_171, %c0_172, %c0_173] : memref<9x128x128xbf16, #tpu.memory_space<vmem>>, vector<1x128x128xbf16>
    %178 = vector.shape_cast %177 : vector<1x128x128xbf16> to vector<128x128xbf16>
    %cst_174 = arith.constant dense<0.000000e+00> : vector<96x128xf32>
    %179 = tpu.matmul %176, %178, %cst_174 {dimension_numbers = #tpu.dot_dimension_numbers<[1], [0], [0], [1], [0, 0, 1, 1], [], []>} : vector<96x128xbf16>, vector<128x128xbf16>, vector<96x128xf32> -> vector<96x128xf32>
    %180 = arith.addf %175, %179 : vector<96x128xf32>
    %c212 = arith.constant 212 : index
    %c0_175 = arith.constant 0 : index
    %181 = vector.load %arg8[%c212, %c0_175] : memref<328x128xbf16, #tpu.memory_space<vmem>>, vector<96x128xbf16>
    %c5_176 = arith.constant 5 : index
    %c0_177 = arith.constant 0 : index
    %c0_178 = arith.constant 0 : index
    %182 = vector.load %arg4[%c5_176, %c0_177, %c0_178] : memref<9x128x128xbf16, #tpu.memory_space<vmem>>, vector<1x128x128xbf16>
    %183 = vector.shape_cast %182 : vector<1x128x128xbf16> to vector<128x128xbf16>
    %cst_179 = arith.constant dense<0.000000e+00> : vector<96x128xf32>
    %184 = tpu.matmul %181, %183, %cst_179 {dimension_numbers = #tpu.dot_dimension_numbers<[1], [0], [0], [1], [0, 0, 1, 1], [], []>} : vector<96x128xbf16>, vector<128x128xbf16>, vector<96x128xf32> -> vector<96x128xf32>
    %185 = arith.addf %180, %184 : vector<96x128xf32>
    %c228 = arith.constant 228 : index
    %c0_180 = arith.constant 0 : index
    %186 = vector.load %arg8[%c228, %c0_180] : memref<328x128xbf16, #tpu.memory_space<vmem>>, vector<96x128xbf16>
    %c6_181 = arith.constant 6 : index
    %c0_182 = arith.constant 0 : index
    %c0_183 = arith.constant 0 : index
    %187 = vector.load %arg4[%c6_181, %c0_182, %c0_183] : memref<9x128x128xbf16, #tpu.memory_space<vmem>>, vector<1x128x128xbf16>
    %188 = vector.shape_cast %187 : vector<1x128x128xbf16> to vector<128x128xbf16>
    %cst_184 = arith.constant dense<0.000000e+00> : vector<96x128xf32>
    %189 = tpu.matmul %186, %188, %cst_184 {dimension_numbers = #tpu.dot_dimension_numbers<[1], [0], [0], [1], [0, 0, 1, 1], [], []>} : vector<96x128xbf16>, vector<128x128xbf16>, vector<96x128xf32> -> vector<96x128xf32>
    %190 = arith.addf %185, %189 : vector<96x128xf32>
    %c229 = arith.constant 229 : index
    %c0_185 = arith.constant 0 : index
    %191 = vector.load %arg8[%c229, %c0_185] : memref<328x128xbf16, #tpu.memory_space<vmem>>, vector<96x128xbf16>
    %c7_186 = arith.constant 7 : index
    %c0_187 = arith.constant 0 : index
    %c0_188 = arith.constant 0 : index
    %192 = vector.load %arg4[%c7_186, %c0_187, %c0_188] : memref<9x128x128xbf16, #tpu.memory_space<vmem>>, vector<1x128x128xbf16>
    %193 = vector.shape_cast %192 : vector<1x128x128xbf16> to vector<128x128xbf16>
    %cst_189 = arith.constant dense<0.000000e+00> : vector<96x128xf32>
    %194 = tpu.matmul %191, %193, %cst_189 {dimension_numbers = #tpu.dot_dimension_numbers<[1], [0], [0], [1], [0, 0, 1, 1], [], []>} : vector<96x128xbf16>, vector<128x128xbf16>, vector<96x128xf32> -> vector<96x128xf32>
    %195 = arith.addf %190, %194 : vector<96x128xf32>
    %c230 = arith.constant 230 : index
    %c0_190 = arith.constant 0 : index
    %196 = vector.load %arg8[%c230, %c0_190] : memref<328x128xbf16, #tpu.memory_space<vmem>>, vector<96x128xbf16>
    %c8_191 = arith.constant 8 : index
    %c0_192 = arith.constant 0 : index
    %c0_193 = arith.constant 0 : index
    %197 = vector.load %arg4[%c8_191, %c0_192, %c0_193] : memref<9x128x128xbf16, #tpu.memory_space<vmem>>, vector<1x128x128xbf16>
    %198 = vector.shape_cast %197 : vector<1x128x128xbf16> to vector<128x128xbf16>
    %cst_194 = arith.constant dense<0.000000e+00> : vector<96x128xf32>
    %199 = tpu.matmul %196, %198, %cst_194 {dimension_numbers = #tpu.dot_dimension_numbers<[1], [0], [0], [1], [0, 0, 1, 1], [], []>} : vector<96x128xbf16>, vector<128x128xbf16>, vector<96x128xf32> -> vector<96x128xf32>
    %200 = arith.addf %195, %199 : vector<96x128xf32>
    %c192_195 = arith.constant 192 : index
    %c0_196 = arith.constant 0 : index
    %201 = vector.load %arg9[%c192_195, %c0_196] : memref<288x128xf32, #tpu.memory_space<vmem>>, vector<96x128xf32>
    tpu.vector_store %arg9[%c192_195, %c0_196], %200 {strides = array<i32>} : memref<288x128xf32, #tpu.memory_space<vmem>>, vector<96x128xf32>,
    %c0_197 = arith.constant 0 : index
    %c0_198 = arith.constant 0 : index
    %202 = vector.load %arg9[%c0_197, %c0_198] : memref<288x128xf32, #tpu.memory_space<vmem>>, vector<288x128xf32>
    %203 = tpu.transpose %202, [1, 0] : vector<288x128xf32> -> vector<128x288xf32>
    %204 = vector.extract_strided_slice %203 {offsets = [0, 0], sizes = [16, 288], strides = [1, 1]} : vector<128x288xf32> to vector<16x288xf32>
    %c0_199 = arith.constant 0 : index
    %c0_200 = arith.constant 0 : index
    %c0_201 = arith.constant 0 : index
    %205 = vector.load %arg7[%c0_199, %c0_200, %c0_201] : memref<1x16x288xf32, #tpu.memory_space<vmem>>, vector<1x16x288xf32>
    %206 = vector.shape_cast %205 : vector<1x16x288xf32> to vector<16x288xf32>
    %207 = vector.shape_cast %204 : vector<16x288xf32> to vector<1x16x288xf32>
    tpu.vector_store %arg7[%c0_199, %c0_200, %c0_201], %207 {strides = array<i32>} : memref<1x16x288xf32, #tpu.memory_space<vmem>>, vector<1x16x288xf32>,
    return
  }
  func.func @transform_0(%arg0: i32) -> (i32, i32, i32) {
    %c0_i32 = arith.constant 0 : i32
    %c0_i32_0 = arith.constant 0 : i32
    %c0_i32_1 = arith.constant 0 : i32
    return %arg0, %c0_i32, %c0_i32_0 : i32, i32, i32
  }
  func.func @transform_1(%arg0: i32) -> (i32, i32) {
    %c0_i32 = arith.constant 0 : i32
    %c0_i32_0 = arith.constant 0 : i32
    %c0_i32_1 = arith.constant 0 : i32
    return %c0_i32, %c0_i32_0 : i32, i32
  }
  func.func @transform_2(%arg0: i32) -> (i32, i32) {
    %c0_i32 = arith.constant 0 : i32
    %c0_i32_0 = arith.constant 0 : i32
    %c0_i32_1 = arith.constant 0 : i32
    return %c0_i32, %c0_i32_0 : i32, i32
  }
  func.func @transform_3(%arg0: i32) -> (i32, i32, i32) {
    %c0_i32 = arith.constant 0 : i32
    %c0_i32_0 = arith.constant 0 : i32
    %c0_i32_1 = arith.constant 0 : i32
    %c0_i32_2 = arith.constant 0 : i32
    return %c0_i32, %c0_i32_0, %c0_i32_1 : i32, i32, i32
  }
  func.func @transform_4(%arg0: i32) -> (i32, i32) {
    %c0_i32 = arith.constant 0 : i32
    %c0_i32_0 = arith.constant 0 : i32
    %c0_i32_1 = arith.constant 0 : i32
    return %c0_i32, %c0_i32_0 : i32, i32
  }
  func.func @transform_5(%arg0: i32) -> (i32, i32) {
    %c0_i32 = arith.constant 0 : i32
    %c0_i32_0 = arith.constant 0 : i32
    %c0_i32_1 = arith.constant 0 : i32
    return %c0_i32, %c0_i32_0 : i32, i32
  }
  func.func @transform_6(%arg0: i32) -> (i32, i32, i32) {
    %c0_i32 = arith.constant 0 : i32
    %c0_i32_0 = arith.constant 0 : i32
    %c0_i32_1 = arith.constant 0 : i32
    return %arg0, %c0_i32, %c0_i32_0 : i32, i32, i32
  }
}

</mosaic_0001>

<bundles_post_ra>
// kernel: conv_sae_forward.1
= control target key start
LH: loop header
LB: loop body
LE: loop exit
PB: predicated region body
PF: predicated region fallthrough
CT: control target
= control target key end

     0   :  { %s10304_s21 = smov 0   ;;  %s11983_s0 = inlined_call_operand.vmem [shape: f32[2,328,16], index: 0, kind: input, shape index: {}]   ;;  %s11984_s1 = inlined_call_operand.vmem [shape: bf16[16,128], index: 1, kind: input, shape index: {}]   ;;  %s11985_s2 = inlined_call_operand.vmem [shape: f32[1,128], index: 2, kind: input, shape index: {}]   ;;  %s11986_s3 = inlined_call_operand.vmem [shape: bf16[9,128,128], index: 3, kind: input, shape index: {}]   ;;  %s11987_s4 = inlined_call_operand.vmem [shape: bf16[16,128], index: 4, kind: input, shape index: {}]   ;;  %s11988_s5 = inlined_call_operand.vmem [shape: f32[1,128], index: 5, kind: input, shape index: {}]   ;;  %s11989_s6 = inlined_call_operand.vmem [shape: f32[2,16,288], index: 6, kind: output, shape index: {}]  }
   0x1 LB: > { %s7308_s22 = sadd.s32 4294967295, %s10265_s21   ;;  %p7312_p0 = scmp.ge.s32.totalorder %s10265_s21, 1  ;;  %s10265_s21 = sphi %s10304_s21, %s16_s21  }
   0x2   : > { %p212_p1 = scmp.lt.s32.totalorder %s10265_s21, 3 }
   0x4   : > { %p213_p2 = pnand %p7312_p0, %p212_p1 }
   0x5   : > { %v9917_v0 = vld [vmem:[%s11984_s1] sm:$0xff] (!%p213_p2)   ;;  %p242_p3 = scmp.lt.s32.totalorder (!%p213_p2), %s7308_s22, 1  ;;  %vm286_vm0 = vcmask (!%p213_p2), 130048   ;;  %v10267_v17 = vmov (!%p213_p2), 0.0   ;;  %vm10268_vm1 = vmmov (!%p213_p2), 0   ;;  %vm2201_vm4 = vcmask (!%p213_p2), 1045504  }
   0x6   : > { %216 = sbr.rel (%p213_p2) target bundleno = 1077 (0x435), region = 44  ;;  %v9918_v1 = vld [vmem:[%s11984_s1] sm:$0xff] (!%p213_p2)   ;;  %8691 = vmatprep.subr.bf16.mxu1 (!%p213_p2), %v9917_v0  ;;  %vm1970_vm2 = vsmask.f32 (!%p213_p2), 6400  ;;  %vm1344_vm3 = vsmask.f32 (!%p213_p2), 7424 }
   0x7   : > { %v9919_v2 = vld [vmem:[%s11984_s1] sm:$0xff] (!%p213_p2)   ;;  %8692 = vmatpush3.bf16.msra.mxu1 (!%p213_p2), %v9917_v0  ;;  %vm1565_vm5 = vcmask (!%p213_p2), 1046528   ;;  %vm2837_vm6 = vcmask (!%p213_p2), 1044480   ;;  %vm2606_vm7 = vsmask.f32 (!%p213_p2), 5376  ;;  %vm7248_vm8 = vcmask (!%p213_p2), 261120  }
   0x8   : > { %v9920_v3 = vld [vmem:[%s11987_s4] sm:$0xff] (!%p213_p2)   ;;  %8705 = vmatprep.subr.bf16.mxu1 (!%p213_p2), %v9918_v1  ;;  %8719 = vmatprep.subr.bf16.mxu0 (!%p213_p2), %v9919_v2 }
   0x9   : > { %8720 = vmatpush3.bf16.msra.mxu0 (!%p213_p2), %v9919_v2  ;;  %v9921_v49 = vld [vmem:[%s11984_s1] sm:$0xff] (!%p213_p2)  }
   0xa   : > { %8747 = vmatprep.subr.bf16.mxu0 (!%p213_p2), %v9920_v3  ;;  %v9922_v52 = vld [vmem:[%s11986_s3] sm:$0xff] (!%p213_p2)  }
   0xd   : > { %s11999_s22 = smov (!%p242_p3, %s7308_s22), 1 }
   0xe   : > { %s9905_s7 = smul.u32 328, %s11999_s22 }
   0xf   : > { %s9906_s27 = smul.u32 48, %s11999_s22 }
  0x10   : > { %s10330_s10 = scalar_lea.vmem %s11983_s0, %s9905_s7 }
  0x11   : > { %v253_v4 = vld [vmem:[%s10330_s10] sm:$0xff]  ;;  %v254_v5 = vld [vmem:[%s10330_s10 + $0x8] sm:$0xff]  ;;  %v255_v6 = vld [vmem:[%s10330_s10 + $0x10] sm:$0xff]  ;;  %s251_s30 = scalar_lea.vmem %s11989_s6, %s9906_s27 }
  0x12   : > { %v265_v7 = vpack.c.bf16 %v254_v5, %v253_v4  ;;  %v256_v8 = vld [vmem:[%s10330_s10 + $0x18] sm:$0xff]  ;;  %v257_v9 = vld [vmem:[%s10330_s10 + $0x20] sm:$0xff]  ;;  %v258_v10 = vld [vmem:[%s10330_s10 + $0x28] sm:$0xff] }
  0x13   : > { %v266_v11 = vpack.c.bf16 %v256_v8, %v255_v6  ;;  %v267_v12 = vpack.c.bf16 %v258_v10, %v257_v9  ;;  %v259_v13 = vld [vmem:[%s10330_s10 + $0x30] sm:$0xff]  ;;  %v260_v14 = vld [vmem:[%s10330_s10 + $0x38] sm:$0xff]  ;;  %v261_v15 = vld [vmem:[%s10330_s10 + $0x40] sm:$0xff] }
  0x14   : > { %8693 = vmatprep.mubr.msk.bf16.mxu1 %vm286_vm0, %v265_v7  ;;  %v262_v16 = vld [vmem:[%s10330_s10 + $0x48] sm:$0xff]  ;;  %v268_v18 = vpack.c.bf16 %v260_v14, %v259_v13  ;;  %v638_v19 = vld [vmem:[%s10330_s10 + $0xc0] sm:$0xff]  ;;  %v640_v21 = vld [vmem:[%s10330_s10 + $0xd0] sm:$0xff] }
  0x15   : > { %8694 = vmatmul.mubr.msk.bf16.vlgmr.msra.gmra.mrb[0].mxu1 %vm286_vm0, %v266_v11  ;;  %v639_v20 = vld [vmem:[%s10330_s10 + $0xc8] sm:$0xff]  ;;  %v269_v22 = vpack.c.bf16 %v262_v16, %v261_v15  ;;  %v641_v24 = vld [vmem:[%s10330_s10 + $0xd8] sm:$0xff]  ;;  %v642_v25 = vld [vmem:[%s10330_s10 + $0xe0] sm:$0xff] }
  0x16   : > { %8697 = vmatprep.mubr.msk.bf16.mxu1 %vm286_vm0, %v267_v12  ;;  %8706 = vmatpush3.bf16.msra.mxu1 %v9918_v1  ;;  %v650_v23 = vpack.c.bf16 %v639_v20, %v638_v19  ;;  %v643_v26 = vld [vmem:[%s10330_s10 + $0xe8] sm:$0xff]  ;;  %v651_v27 = vpack.c.bf16 %v641_v24, %v640_v21  ;;  %v263_v29 = vld [vmem:[%s10330_s10 + $0x50] sm:$0xff]  ;;  %v264_v30 = vld [vmem:[%s10330_s10 + $0x58] sm:$0xff] }
  0x17   : > { %8733 = vmatprep.subr.bf16.mxu1 %v10267_v17  ;;  %v652_v28 = vpack.c.bf16 %v643_v26, %v642_v25  ;;  %v446_v31 = vld [vmem:[%s10330_s10 + $0x60] sm:$0xff]  ;;  %v447_v32 = vld [vmem:[%s10330_s10 + $0x68] sm:$0xff]  ;;  %v644_v33 = vld [vmem:[%s10330_s10 + $0xf0] sm:$0xff]  ;;  %v270_v37 = vpack.c.bf16 %v264_v30, %v263_v29 }
  0x18   : > { %8721 = vmatprep.mubr.msk.bf16.mxu0 %vm286_vm0, %v650_v23  ;;  %v645_v34 = vld [vmem:[%s10330_s10 + $0xf8] sm:$0xff]  ;;  %v646_v35 = vld [vmem:[%s10330_s10 + $0x100] sm:$0xff]  ;;  %v647_v36 = vld [vmem:[%s10330_s10 + $0x108] sm:$0xff]  ;;  %v458_v39 = vpack.c.bf16 %v447_v32, %v446_v31 }
  0x19   : > { %8722 = vmatmul.mubr.msk.bf16.vlgmr.msra.gmra.mrb[0].mxu0 %vm286_vm0, %v651_v27  ;;  %v653_v38 = vpack.c.bf16 %v645_v34, %v644_v33  ;;  %v654_v40 = vpack.c.bf16 %v647_v36, %v646_v35  ;;  %v448_v41 = vld [vmem:[%s10330_s10 + $0x70] sm:$0xff]  ;;  %v449_v42 = vld [vmem:[%s10330_s10 + $0x78] sm:$0xff]  ;;  %v450_v45 = vld [vmem:[%s10330_s10 + $0x80] sm:$0xff] }
  0x1a   : > { %8725 = vmatprep.mubr.msk.bf16.mxu0 %vm286_vm0, %v652_v28  ;;  %8748 = vmatpush3.bf16.msra.mxu0 %v9920_v3  ;;  %v648_v43 = vld [vmem:[%s10330_s10 + $0x110] sm:$0xff]  ;;  %v649_v44 = vld [vmem:[%s10330_s10 + $0x118] sm:$0xff]  ;;  %v451_v46 = vld [vmem:[%s10330_s10 + $0x88] sm:$0xff]  ;;  %v459_v50 = vpack.c.bf16 %v449_v42, %v448_v41 }
  0x1b   : > { %v944_v47 = vld [vmem:[%s10330_s10 + $0x13] sm:$0xff]  ;;  %v945_v48 = vld [vmem:[%s10330_s10 + $0x1b] sm:$0xff]  ;;  %v655_v51 = vpack.c.bf16 %v649_v44, %v648_v43  ;;  %v460_v53 = vpack.c.bf16 %v451_v46, %v450_v45  ;;  %v946_v57 = vld [vmem:[%s10330_s10 + $0x23] sm:$0xff] }
  0x1c   : > { %v956_v54 = vpack.c.bf16 %v945_v48, %v944_v47  ;;  %v452_v55 = vld [vmem:[%s10330_s10 + $0x90] sm:$0xff]  ;;  %v453_v56 = vld [vmem:[%s10330_s10 + $0x98] sm:$0xff]  ;;  %v454_v59 = vld [vmem:[%s10330_s10 + $0xa0] sm:$0xff] }
  0x1d   : > { %8698 = vmatmul.mubr.msk.bf16.gmra.mrb[4].mxu1 %vm286_vm0, %v268_v18  ;;  %v947_v58 = vld [vmem:[%s10330_s10 + $0x2b] sm:$0xff]  ;;  %v461_v61 = vpack.c.bf16 %v453_v56, %v452_v55  ;;  %v457_v1 = vld [vmem:[%s10330_s10 + $0xb8] sm:$0xff]  ;;  %v830_v3 = vld [vmem:[%s10330_s10 + $0x120] sm:$0xff] }
  0x1e   : > { %8701 = vmatprep.mubr.msk.bf16.mxu1 %vm286_vm0, %v269_v22  ;;  %v455_v60 = vld [vmem:[%s10330_s10 + $0xa8] sm:$0xff]  ;;  %v957_v62 = vpack.c.bf16 %v947_v58, %v946_v57  ;;  %v456_v0 = vld [vmem:[%s10330_s10 + $0xb0] sm:$0xff]  ;;  %v9925_v8 = vld [vmem:[%s11986_s3 + $0x18] sm:$0xff]  }
  0x1f   : > { %v462_v63 = vpack.c.bf16 %v455_v60, %v454_v59  ;;  %v463_v2 = vpack.c.bf16 %v457_v1, %v456_v0  ;;  %v831_v4 = vld [vmem:[%s10330_s10 + $0x128] sm:$0xff]  ;;  %v9924_v7 = vld [vmem:[%s11986_s3 + $0x10] sm:$0xff]   ;;  %v9926_v9 = vld [vmem:[%s11986_s3 + $0x100] sm:$0xff]  }
  0x20   : > { %v835_v5 = vpack.c.bf16 %v831_v4, %v830_v3  ;;  %v9923_v6 = vld [vmem:[%s11986_s3 + $0x8] sm:$0xff]   ;;  %v9927_v10 = vld [vmem:[%s11986_s3 + $0x20] sm:$0xff]   ;;  %v832_v11 = vld [vmem:[%s10330_s10 + $0x130] sm:$0xff]  ;;  %8873 = vmatprep.subr.bf16.mxu0 %v9926_v9 }
  0x21   : > { %8726 = vmatmul.mubr.msk.bf16.gmra.mrb[4].mxu0 %vm286_vm0, %v653_v38  ;;  %v833_v12 = vld [vmem:[%s10330_s10 + $0x138] sm:$0xff]  ;;  %v9928_v14 = vld [vmem:[%s11986_s3 + $0x108] sm:$0xff]   ;;  %v9930_v16 = vld [vmem:[%s11986_s3 + $0x110] sm:$0xff]  }
  0x22   : > { %8729 = vmatprep.mubr.msk.bf16.mxu0 %vm286_vm0, %v654_v40  ;;  %v836_v13 = vpack.c.bf16 %v833_v12, %v832_v11  ;;  %v9929_v15 = vld [vmem:[%s11986_s3 + $0x28] sm:$0xff]   ;;  %v9931_v18 = vld [vmem:[%s11986_s3 + $0x30] sm:$0xff]   ;;  %v834_v19 = vld [vmem:[%s10330_s10 + $0x140] sm:$0xff] }
  0x23   : > { %v837_v20 = vpack.c.bf16 %v834_v19, %v834_v19  ;;  %v948_v21 = vld [vmem:[%s10330_s10 + $0x33] sm:$0xff]  ;;  %v949_v22 = vld [vmem:[%s10330_s10 + $0x3b] sm:$0xff]  ;;  %v950_v25 = vld [vmem:[%s10330_s10 + $0x43] sm:$0xff] }
  0x24   : > { %v958_v23 = vpack.c.bf16 %v949_v22, %v948_v21  ;;  %v9933_v24 = vld [vmem:[%s11986_s3 + $0x38] sm:$0xff]   ;;  %v951_v26 = vld [vmem:[%s10330_s10 + $0x4b] sm:$0xff]  ;;  %v9934_v28 = vld [vmem:[%s11986_s3 + $0x120] sm:$0xff]  }
  0x25   : > { %8702 = vmatmul.mubr.msk.bf16.gmra.mrb[8].mxu1 %vm286_vm0, %v270_v37  ;;  %v959_v27 = vpack.c.bf16 %v951_v26, %v950_v25  ;;  %v10458_v29 = vld [vmem:[%s11986_s3 + $0x40] sm:$0xff]   ;;  %v9938_v30 = vld [vmem:[%s11986_s3 + $0x128] sm:$0xff]   ;;  %v952_v31 = vld [vmem:[%s10330_s10 + $0x53] sm:$0xff] }
  0x26   : > { %8707 = vmatprep.mubr.msk.bf16.mxu1 %vm286_vm0, %v458_v39  ;;  %v953_v32 = vld [vmem:[%s10330_s10 + $0x5b] sm:$0xff]  ;;  %v954_v34 = vld [vmem:[%s10330_s10 + $0x63] sm:$0xff]  ;;  %v955_v35 = vld [vmem:[%s10330_s10 + $0x6b] sm:$0xff] }
  0x27   : > { %v960_v33 = vpack.c.bf16 %v953_v32, %v952_v31  ;;  %v961_v36 = vpack.c.bf16 %v955_v35, %v954_v34  ;;  %v9940_v37 = vld [vmem:[%s11986_s3 + $0x130] sm:$0xff]   ;;  %v9944_v38 = vld [vmem:[%s11986_s3 + $0x138] sm:$0xff]   ;;  %v10479_v39 = vld [vmem:[%s11986_s3 + $0x140] sm:$0xff]  }
  0x28   : > { %v10485_v41 = vld [vmem:[%s11985_s2] ss:$0 sm:$0xff]  ;;  %v9945_v22 = vld [vmem:[%s11986_s3 + $0x58] sm:$0xff]  }
  0x29   : > { %8730 = vmatmul.mubr.msk.bf16.gmra.mrb[8].mxu0 %vm286_vm0, %v655_v51 }
  0x2a   : > { %8749 = vmatprep.mubr.msk.bf16.mxu0 %vm286_vm0, %v956_v54 }
  0x2d   : > { %8708 = vmatmul.mubr.msk.bf16.vlgmr.msra.gmra.mrb[12].mxu1 %vm286_vm0, %v459_v50 }
  0x2e   : > { %8711 = vmatprep.mubr.msk.bf16.mxu1 %vm286_vm0, %v460_v53  ;;  %8734 = vmatpush3.bf16.msra.mxu1 %v9921_v49 }
  0x2f   : > { %8761 = vmatprep.subr.bf16.mxu1 %v9922_v52 }
  0x31   : > { %8750 = vmatmul.mubr.msk.bf16.vlgmr.msra.gmra.mrb[12].mxu0 %vm286_vm0, %v957_v62 }
  0x32   : > { %8874 = vmatpush3.bf16.msra.mxu0 %v9926_v9  ;;  %8753 = vmatprep.mubr.msk.bf16.mxu0 %vm286_vm0, %v958_v23 }
  0x33   : > { %8875 = vmatprep.subr.bf16.mxu0 %v9928_v14 }
  0x35   : > { %8712 = vmatmul.mubr.msk.bf16.gmra.mrb[16].mxu1 %vm286_vm0, %v461_v61  ;;  %v9939_v61 = vld [vmem:[%s11986_s3 + $0x48] sm:$0xff]  }
  0x36   : > { %8715 = vmatprep.mubr.msk.bf16.mxu1 %vm286_vm0, %v462_v63  ;;  %8876 = vmatpush3.bf16.msra.mxu0 %v9928_v14 }
  0x37   : > { %8877 = vmatprep.subr.bf16.mxu0 %v9930_v16 }
  0x39   : > { %8754 = vmatmul.mubr.msk.bf16.gmra.mrb[16].mxu0 %vm286_vm0, %v959_v27 }
  0x3a   : > { %8878 = vmatpush3.bf16.msra.mxu0 %v9930_v16  ;;  %8757 = vmatprep.mubr.msk.bf16.mxu0 %vm286_vm0, %v960_v33  ;;  %v9942_v16 = vld [vmem:[%s11986_s3 + $0x50] sm:$0xff]  }
  0x3d   : > { %8716 = vmatmul.mubr.msk.bf16.gmra.mrb[20].mxu1 %vm286_vm0, %v463_v2 }
  0x3e   : > { %8735 = vmatprep.mubr.msk.bf16.mxu1 %vm10268_vm1, %v10267_v17 }
  0x41   : > { %8758 = vmatmul.mubr.msk.bf16.gmra.mrb[20].mxu0 %vm286_vm0, %v961_v36 }
  0x45   : > { %8736 = vmatmul.mubr.msk.bf16.vlgmr.msra.gmra.mrb[24].mxu1 %vm286_vm0, %v835_v5 }
  0x46   : > { %8762 = vmatpush3.bf16.msra.mxu1 %v9922_v52  ;;  %8739 = vmatprep.mubr.msk.bf16.mxu1 %vm10268_vm1, %v10267_v17 }
  0x47   : > { %8763 = vmatprep.subr.bf16.mxu1 %v9923_v6 }
  0x4a   : > { %8764 = vmatpush3.bf16.msra.mxu1 %v9923_v6 }
  0x4b   : > { %8765 = vmatprep.subr.bf16.mxu1 %v9924_v7 }
  0x4d   : > { %8740 = vmatmul.mubr.msk.bf16.gmra.mrb[28].mxu1 %vm286_vm0, %v836_v13 }
  0x4e   : > { %8766 = vmatpush3.bf16.msra.mxu1 %v9924_v7  ;;  %8743 = vmatprep.mubr.msk.bf16.mxu1 %vm10268_vm1, %v10267_v17  ;;  %v9932_v17 = vld [vmem:[%s11986_s3 + $0x118] sm:$0xff]  }
  0x4f   : > { %8767 = vmatprep.subr.bf16.mxu1 %v9925_v8  ;;  %8879 = vmatprep.subr.bf16.mxu0 %v9932_v17 }
  0x50   : > { %8880 = vmatpush3.bf16.msra.mxu0 %v9932_v17 }
  0x51   : > { %8881 = vmatprep.subr.bf16.mxu0 %v9934_v28 }
  0x52   : > { %8768 = vmatpush3.bf16.msra.mxu1 %v9925_v8 }
  0x53   : > { %8769 = vmatprep.subr.bf16.mxu1 %v9927_v10 }
  0x54   : > { %8882 = vmatpush3.bf16.msra.mxu0 %v9934_v28 }
  0x55   : > { %8744 = vmatmul.mubr.msk.bf16.gmra.mrb[32].mxu1 %vm286_vm0, %v837_v20  ;;  %8883 = vmatprep.subr.bf16.mxu0 %v9938_v30 }
  0x56   : > { %8770 = vmatpush3.bf16.msra.mxu1 %v9927_v10 }
  0x57   : > { %8771 = vmatprep.subr.bf16.mxu1 %v9929_v15 }
  0x58   : > { %8884 = vmatpush3.bf16.msra.mxu0 %v9938_v30 }
  0x59   : > { %8885 = vmatprep.subr.bf16.mxu0 %v9940_v37 }
  0x5a   : > { %8772 = vmatpush3.bf16.msra.mxu1 %v9929_v15 }
  0x5b   : > { %8773 = vmatprep.subr.bf16.mxu1 %v9931_v18 }
  0x5c   : > { %8886 = vmatpush3.bf16.msra.mxu0 %v9940_v37 }
  0x5d   : > { %8887 = vmatprep.subr.bf16.mxu0 %v9944_v38 }
  0x5e   : > { %8774 = vmatpush3.bf16.msra.mxu1 %v9931_v18 }
  0x5f   : > { %8775 = vmatprep.subr.bf16.mxu1 %v9933_v24 }
  0x60   : > { %8888 = vmatpush3.bf16.msra.mxu0 %v9944_v38 }
  0x61   : > { %8901 = vmatprep.subr.bf16.mxu0 %v10479_v39 }
  0x62   : > { %8776 = vmatpush3.bf16.msra.mxu1 %v9933_v24 }
  0x63   : > { %8789 = vmatprep.subr.bf16.mxu1 %v10458_v29 }
  0xe8   : > { %v8695_v40 = vpop.f32.mrb[0].mxu1 }
  0xe9   : > { %v339_v42 = vpop.f32.mrb[1].mxu1  ;;  %v348_v44 = vadd.f32 %v8695_v40, %v10485_v41 }
  0xea   : > { %v8696_v43 = vpop.f32.mrb[2].mxu1  ;;  %v340_v47 = vadd.f32 %v10485_v41, %v339_v42 }
  0xeb   : > { %v351_v45 = vadd.f32 %v8696_v43, %v10485_v41  ;;  %v342_v46 = vpop.f32.mrb[3].mxu1 }
  0xec   : > { %v343_v48 = vadd.f32 %v10485_v41, %v342_v46  ;;  %v9950_v46 = vld [vmem:[%s11986_s3 + $0x60] sm:$0xff]  }
  0xed   : > { %v8156_v49 = vpack.c.bf16 %v351_v45, %v348_v44 }
  0xee   : > { %v8151_v50 = vpack.c.bf16 %v343_v48, %v340_v47 }
  0xef   : > { %8248 = vst [vmem:[#allocation2 + $0x8] sm:$0xff] %v8156_v49  }
  0xf0   : > { %8152 = vst [vmem:[#allocation2] sm:$0xff] %v8151_v50   ;;  %v8699_v51 = vpop.f32.mrb[4].mxu1 }
  0xf1   : > { %v355_v52 = vpop.f32.mrb[5].mxu1  ;;  %v364_v54 = vadd.f32 %v8699_v51, %v10485_v41 }
  0xf2   : > { %v8700_v53 = vpop.f32.mrb[6].mxu1  ;;  %v356_v57 = vadd.f32 %v10485_v41, %v355_v52 }
  0xf3   : > { %v367_v55 = vadd.f32 %v8700_v53, %v10485_v41  ;;  %v358_v56 = vpop.f32.mrb[7].mxu1 }
  0xf4   : > { %v359_v58 = vadd.f32 %v10485_v41, %v358_v56 }
  0xf5   : > { %v8166_v59 = vpack.c.bf16 %v367_v55, %v364_v54  ;;  %v9955_v55 = vld [vmem:[%s11986_s3 + $0x148] sm:$0xff]  }
  0xf6   : > { %v8161_v60 = vpack.c.bf16 %v359_v58, %v356_v57  ;;  %v9937_v0 = vld [vmem:[#allocation2 + $0x8] sm:$0xff]  }
  0xf7   : > { %8250 = vst [vmem:[#allocation2 + $0x18] sm:$0xff] %v8166_v59   ;;  %v9935_v62 = vld [vmem:[#allocation2] sm:$0xff]   ;;  %v1726_v1 = vld [vmem:[#allocation2 + $0x8] sm:$0xe]  ;;  %v10498_v2 = vld [vmem:[#allocation2 + $0xc] sm:$0xf] }
  0xf8   : > { %8249 = vst [vmem:[#allocation2 + $0x10] sm:$0xff] %v8161_v60   ;;  %v8703_v63 = vpop.f32.mrb[8].mxu1  ;;  %8777 = vmatprep.mubr.bf16.mxu1 %v9935_v62  ;;  %v10502_v5 = vcombine.low %v1726_v1, %v10498_v2  ;;  %v1281_v6 = vld [vmem:[#allocation2] sm:$0xf]  ;;  %v10504_v7 = vld [vmem:[#allocation2 + $0x4] sm:$0xf] }
  0xf9   : > { %v380_v3 = vadd.f32 %v8703_v63, %v10485_v41  ;;  %v371_v4 = vpop.f32.mrb[9].mxu1  ;;  %v10506_v8 = vld [vmem:[#allocation2 + $0x8] sm:$0xff]   ;;  %8778 = vmatmul.mubr.bf16.vlgmr.msra.gmra.mrb[36].mxu1 %v9937_v0  ;;  %v7423_v11 = vcombine.low %v1281_v6, %v10504_v7 }
  0xfa   : > { %v372_v9 = vadd.f32 %v10485_v41, %v371_v4  ;;  %v8704_v10 = vpop.f32.mrb[10].mxu1  ;;  %8790 = vmatpush3.bf16.msra.mxu1 %v10458_v29  ;;  %v1972_v14 = vshrl.u32 %v10502_v5, 16  ;;  %v1975_v19 = vshll.u32 %v10502_v5, 16  ;;  %v1353_v20 = vshll.u32 %v10506_v8, 16  ;;  %v9956_v60 = vld [vmem:[%s11986_s3 + $0x68] sm:$0xff]  }
  0xfb   : > { %v383_v12 = vadd.f32 %v8704_v10, %v10485_v41  ;;  %v374_v13 = vpop.f32.mrb[11].mxu1  ;;  %8791 = vmatprep.subr.bf16.mxu1 %v9939_v61  ;;  %v1348_v23 = vshll.u32 %v7423_v11, 16  ;;  %v1346_v50 = vshrl.u32 %v7423_v11, 16 }
  0xfc   : > { %v375_v15 = vadd.f32 %v10485_v41, %v374_v13  ;;  %v1974_v25 = vrot.slane %v1972_v14, 1  ;;  %v1977_v33 = vrot.slane %v1975_v19, 2  ;;  %v10540_v59 = vrot.slane %v1353_v20, 1 }
  0xfd   : > { %v8176_v18 = vpack.c.bf16 %v383_v12, %v380_v3  ;;  %v1350_v42 = vrot.slane %v1348_v23, 1 }
  0xfe   : > { %v8171_v17 = vpack.c.bf16 %v375_v15, %v372_v9  ;;  %v9943_v21 = vld [vmem:[#allocation2 + $0x18] sm:$0xff]   ;;  %8792 = vmatpush3.bf16.msra.mxu1 %v9939_v61  ;;  %v1978_v52 = vor.u32 %v1977_v33, %v1974_v25 }
  0xff   : > { %8252 = vst [vmem:[#allocation2 + $0x28] sm:$0xff] %v8176_v18   ;;  %v9941_v24 = vld [vmem:[#allocation2 + $0x10] sm:$0xff]   ;;  %8793 = vmatprep.subr.bf16.mxu1 %v9942_v16  ;;  %v10525_v30 = vld [vmem:[#allocation2 + $0x18] sm:$0xff]   ;;  %v1351_v58 = vor.u32 %v1350_v42, %v1346_v50  ;;  %v9964_v50 = vld [vmem:[%s11986_s3 + $0x160] sm:$0xff]  }
 0x100   : > { %8251 = vst [vmem:[#allocation2 + $0x20] sm:$0xff] %v8171_v17   ;;  %v8709_v26 = vpop.f32.mrb[12].mxu1  ;;  %v10522_v27 = vld [vmem:[#allocation2 + $0x10] sm:$0xff]   ;;  %8781 = vmatprep.mubr.bf16.mxu1 %v9941_v24  ;;  %v1989_v38 = vshrl.u32 %v10525_v30, 16  ;;  %v1992_v40 = vshll.u32 %v10525_v30, 16 }
 0x101   : > { %v540_v28 = vadd.f32 %v8709_v26, %v10485_v41  ;;  %v531_v29 = vpop.f32.mrb[13].mxu1  ;;  %8782 = vmatmul.mubr.bf16.gmra.mrb[40].mxu1 %v9943_v21  ;;  %v1980_v34 = vshrl.u32 %v10522_v27, 16  ;;  %v1983_v35 = vshll.u32 %v10522_v27, 16  ;;  %v10555_v12 = vld [vmem:[#allocation2 + $0x10] sm:$0xff]   ;;  %v1356_v15 = vsel %vm1344_vm3, %v1351_v58, %v10540_v59 }
 0x102   : > { %v532_v31 = vadd.f32 %v10485_v41, %v531_v29  ;;  %v8710_v32 = vpop.f32.mrb[14].mxu1  ;;  %8794 = vmatpush3.bf16.msra.mxu1 %v9942_v16  ;;  %v1991_v48 = vrot.slane %v1989_v38, 1  ;;  %v1994_v49 = vrot.slane %v1992_v40, 2  ;;  %v9958_v21 = vld [vmem:[%s11986_s3 + $0x150] sm:$0xff]   ;;  %v1361_v29 = vshll.u32 %v10555_v12, 16  ;;  %v10584_v38 = vld [vmem:[#allocation2 + $0x18] sm:$0xff]  }
 0x103   : > { %v543_v36 = vadd.f32 %v8710_v32, %v10485_v41  ;;  %v534_v37 = vpop.f32.mrb[15].mxu1  ;;  %8795 = vmatprep.subr.bf16.mxu1 %v9945_v22  ;;  %v1982_v44 = vrot.slane %v1980_v34, 1  ;;  %v1985_v45 = vrot.slane %v1983_v35, 2  ;;  %v9962_v35 = vld [vmem:[%s11986_s3 + $0x78] sm:$0xff]  }
 0x104   : > { %v535_v43 = vadd.f32 %v10485_v41, %v534_v37  ;;  %v1995_v57 = vor.u32 %v1994_v49, %v1991_v48 }
 0x105   : > { %v8186_v47 = vpack.c.bf16 %v543_v36, %v540_v28  ;;  %v1986_v53 = vor.u32 %v1985_v45, %v1982_v44  ;;  %v9961_v28 = vld [vmem:[%s11986_s3 + $0x158] sm:$0xff]   ;;  %v2180_v44 = vld [vmem:[#allocation2 + $0x8] sm:$0xc]  ;;  %v1363_v45 = vrot.slane %v1361_v29, 1 }
 0x106   : > { %v8181_v51 = vpack.c.bf16 %v535_v43, %v532_v31  ;;  %v9952_v54 = vld [vmem:[#allocation2 + $0x28] sm:$0xff]   ;;  %8796 = vmatpush3.bf16.msra.mxu1 %v9945_v22  ;;  %v7535_v58 = vcombine.low %v2180_v44, %v10498_v2  ;;  %v1544_v44 = vld [vmem:[#allocation2] sm:$0xe] }
 0x107   : > { %8254 = vst [vmem:[#allocation2 + $0x38] sm:$0xff] %v8186_v47   ;;  %v9949_v56 = vld [vmem:[#allocation2 + $0x20] sm:$0xff]   ;;  %v1987_v62 = vsel %vm1970_vm2, %v1978_v52, %v1986_v53  ;;  %8797 = vmatprep.subr.bf16.mxu1 %v9950_v46  ;;  %v1996_v3 = vsel %vm1970_vm2, %v1986_v53, %v1995_v57  ;;  %v10550_v4 = vld [vmem:[#allocation2 + $0x28] sm:$0xff]   ;;  %v1369_v53 = vshll.u32 %v10584_v38, 16 }
 0x108   : > { %8253 = vst [vmem:[#allocation2 + $0x30] sm:$0xff] %v8181_v51   ;;  %v8713_v61 = vpop.f32.mrb[16].mxu1  ;;  %v10546_v63 = vld [vmem:[#allocation2 + $0x20] sm:$0xff]   ;;  %8889 = vmatprep.mubr.bf16.mxu0 %v1987_v62  ;;  %8785 = vmatprep.mubr.bf16.mxu1 %v9949_v56  ;;  %v2007_v16 = vshrl.u32 %v10550_v4, 16  ;;  %v2010_v18 = vshll.u32 %v10550_v4, 16  ;;  %v1365_v51 = vshrl.u32 %v10555_v12, 16 }
 0x109   : > { %v556_v0 = vadd.f32 %v8713_v61, %v10485_v41  ;;  %v547_v1 = vpop.f32.mrb[17].mxu1  ;;  %8890 = vmatmul.mubr.bf16.vlgmr.msra.gmra.mrb[24].mxu0 %v1996_v3  ;;  %8786 = vmatmul.mubr.bf16.gmra.mrb[44].mxu1 %v9952_v54  ;;  %v1998_v10 = vshrl.u32 %v10546_v63, 16  ;;  %v2001_v11 = vshll.u32 %v10546_v63, 16  ;;  %v10594_v54 = vld [vmem:[#allocation2 + $0x20] sm:$0xff]  }
 0x10a   : > { %v548_v6 = vadd.f32 %v10485_v41, %v547_v1  ;;  %v8714_v9 = vpop.f32.mrb[18].mxu1  ;;  %8902 = vmatpush3.bf16.msra.mxu0 %v10479_v39  ;;  %8798 = vmatpush3.bf16.msra.mxu1 %v9950_v46  ;;  %v9959_v39 = vld [vmem:[%s11986_s3 + $0x70] sm:$0xff]   ;;  %v2009_v23 = vrot.slane %v2007_v16, 1  ;;  %v2012_v24 = vrot.slane %v2010_v18, 2  ;;  %v1367_v61 = vor.u32 %v1365_v51, %v1363_v45  ;;  %v9971_v16 = vld [vmem:[%s11986_s3 + $0x88] sm:$0xff]  }
 0x10b   : > { %v559_v13 = vadd.f32 %v8714_v9, %v10485_v41  ;;  %v550_v14 = vpop.f32.mrb[19].mxu1  ;;  %8805 = vmatprep.mubr.bf16.mxu1 %v1356_v15  ;;  %8903 = vmatprep.subr.bf16.mxu0 %v9955_v55  ;;  %v2000_v20 = vrot.slane %v1998_v10, 1  ;;  %v2003_v17 = vrot.slane %v2001_v11, 2  ;;  %v1371_v10 = vrot.slane %v1369_v53, 1  ;;  %v10606_v11 = vld [vmem:[#allocation2 + $0x28] sm:$0xff]  }
 0x10c   : > { %v551_v19 = vadd.f32 %v10485_v41, %v550_v14  ;;  %8799 = vmatprep.subr.bf16.mxu1 %v9956_v60  ;;  %v2013_v32 = vor.u32 %v2012_v24, %v2009_v23  ;;  %v1377_v2 = vshll.u32 %v10594_v54, 16  ;;  %v9970_v15 = vld [vmem:[%s11986_s3 + $0x168] sm:$0xff]   ;;  %v9974_v23 = vld [vmem:[%s11986_s3 + $0x90] sm:$0xff]   ;;  %v7454_v53 = vcombine.low %v1544_v44, %v10504_v7  ;;  %v9980_v7 = vld [vmem:[%s11986_s3 + $0xa0] sm:$0xff]  }
 0x10d   : > { %v8196_v22 = vpack.c.bf16 %v559_v13, %v556_v0  ;;  %v2004_v26 = vor.u32 %v2003_v17, %v2000_v20  ;;  %v1372_v18 = vsel %vm1344_vm3, %v1367_v61, %v1371_v10  ;;  %v9972_v17 = vld [vmem:[%s11986_s3 + $0x170] sm:$0xff]  }
 0x10e   : > { %v8191_v25 = vpack.c.bf16 %v551_v19, %v548_v6  ;;  %v10574_v31 = vld [vmem:[#allocation2 + $0x38] ss:$0 sps:$4 sm:$0x33]   ;;  %8904 = vmatpush3.bf16.msra.mxu0 %v9955_v55  ;;  %8800 = vmatpush3.bf16.msra.mxu1 %v9956_v60  ;;  %v1357_v55 = vshrl.u32 %v10506_v8, 16  ;;  %v2203_v6 = vrot.slane %v10522_v27, 2  ;;  %v1381_v19 = vshrl.u32 %v10594_v54, 16 }
 0x10f   : > { %8256 = vst [vmem:[#allocation2 + $0x48] sm:$0xff] %v8196_v22   ;;  %v10576_v33 = vld [vmem:[#allocation2 + $0x30] sm:$0xff]   ;;  %v2005_v34 = vsel %vm1970_vm2, %v1995_v57, %v2004_v26  ;;  %8905 = vmatprep.subr.bf16.mxu0 %v9958_v21  ;;  %8801 = vmatprep.subr.bf16.mxu1 %v9959_v39  ;;  %v2025_v36 = vshrl.u32 %v10574_v31, 16  ;;  %v2028_v37 = vshll.u32 %v10574_v31, 16  ;;  %v2014_v40 = vsel %vm1970_vm2, %v2004_v26, %v2013_v32  ;;  %v9966_v57 = vld [vmem:[%s11986_s3 + $0x80] sm:$0xff]  }
 0x110   : > { %8255 = vst [vmem:[#allocation2 + $0x40] sm:$0xff] %v8191_v25   ;;  %8893 = vmatprep.mubr.bf16.mxu0 %v2005_v34  ;;  %v2016_v42 = vshrl.u32 %v10576_v33, 16  ;;  %v2019_v43 = vshll.u32 %v10576_v33, 16  ;;  %v8717_v60 = vpop.f32.mrb[20].mxu1  ;;  %v1359_v0 = vor.u32 %v1357_v55, %v10540_v59  ;;  %v2202_v59 = vrot.slane %v7535_v58, 2  ;;  %v9978_v55 = vld [vmem:[%s11986_s3 + $0x180] sm:$0xff]  }
 0x111   : > { %8894 = vmatmul.mubr.bf16.gmra.mrb[28].mxu0 %v2014_v40  ;;  %v2027_v46 = vrot.slane %v2025_v36, 1  ;;  %v2030_v47 = vrot.slane %v2028_v37, 2  ;;  %v563_v62 = vpop.f32.mrb[21].mxu1  ;;  %v1385_v22 = vshll.u32 %v10606_v11, 16  ;;  %v572_v25 = vadd.f32 %v8717_v60, %v10485_v41  ;;  %v10636_v37 = vpop.f32.mrb[0].mxu0 }
 0x112   : > { %8906 = vmatpush3.bf16.msra.mxu0 %v9958_v21  ;;  %8802 = vmatpush3.bf16.msra.mxu1 %v9959_v39  ;;  %v2018_v48 = vrot.slane %v2016_v42, 1  ;;  %v2021_v49 = vrot.slane %v2019_v43, 2  ;;  %v8718_v9 = vpop.f32.mrb[22].mxu1  ;;  %v1364_v14 = vsel %vm1344_vm3, %v1359_v0, %v1363_v45  ;;  %v2204_v20 = vsel %vm2201_vm4, %v2202_v59, %v2203_v6  ;;  %v10628_v24 = vld [vmem:[#allocation2 + $0x30] ss:$0 sps:$4 sm:$0x11]  }
 0x113   : > { %8907 = vmatprep.subr.bf16.mxu0 %v9961_v28  ;;  %8803 = vmatprep.subr.bf16.mxu1 %v9962_v35  ;;  %v2031_v52 = vor.u32 %v2030_v47, %v2027_v46  ;;  %v566_v13 = vpop.f32.mrb[23].mxu1  ;;  %v1373_v21 = vshrl.u32 %v10584_v38, 16  ;;  %v1379_v39 = vrot.slane %v1377_v2, 1  ;;  %v564_v29 = vadd.f32 %v10485_v41, %v563_v62  ;;  %v9976_v43 = vld [vmem:[%s11986_s3 + $0x178] sm:$0xff]   ;;  %v10654_v51 = vpop.f32.mrb[1].mxu0 }
 0x114   : > { %v2022_v56 = vor.u32 %v2021_v49, %v2018_v48  ;;  %v1790_v34 = vrot.slane %v10522_v27, 1  ;;  %v567_v36 = vadd.f32 %v10485_v41, %v566_v13  ;;  %v1387_v42 = vrot.slane %v1385_v22, 1  ;;  %v2363_v59 = vld [vmem:[#allocation2 + $0x14] sm:$0xf] }
 0x115   : > { %v1375_v26 = vor.u32 %v1373_v21, %v1371_v10  ;;  %v1393_v45 = vshll.u32 %v10628_v24, 16  ;;  %v1798_v58 = vrot.slane %v10576_v33, 1  ;;  %v2205_v60 = vrot.slane %v10525_v30, 2  ;;  %v9983_v10 = vld [vmem:[%s11986_s3 + $0xa8] sm:$0xff]   ;;  %v10704_v21 = vld [vmem:[#allocation2 + $0x30] sm:$0xff]  }
 0x116   : > { %8908 = vmatpush3.bf16.msra.mxu0 %v9961_v28  ;;  %8804 = vmatpush3.bf16.msra.mxu1 %v9962_v35  ;;  %v2023_v1 = vsel %vm1970_vm2, %v2013_v32, %v2022_v56  ;;  %v2032_v3 = vsel %vm1970_vm2, %v2022_v56, %v2031_v52  ;;  %v1383_v28 = vor.u32 %v1381_v19, %v1379_v39  ;;  %v1789_v32 = vrot.slane %v10502_v5, 1  ;;  %v10692_v19 = vld [vmem:[#allocation2 + $0x18] sm:$0xff]  }
 0x117   : > { %8897 = vmatprep.mubr.bf16.mxu0 %v2023_v1  ;;  %8909 = vmatprep.subr.bf16.mxu0 %v9964_v50  ;;  %v575_v35 = vadd.f32 %v8718_v9, %v10485_v41  ;;  %v1380_v40 = vsel %vm1344_vm3, %v1375_v26, %v1379_v39  ;;  %v1792_v5 = vrot.slane %v10525_v30, 1  ;;  %v9977_v41 = vld [vmem:[%s11986_s3 + $0x98] sm:$0xff]   ;;  %v8201_v48 = vpack.c.bf16 %v567_v36, %v564_v29 }
 0x118   : > { %8817 = vmatprep.subr.bf16.mxu1 %v9966_v57  ;;  %v10648_v46 = vsel %vm1565_vm5, %v1789_v32, %v1790_v34  ;;  %v1388_v49 = vsel %vm1344_vm3, %v1383_v28, %v1387_v42  ;;  %v1389_v52 = vshrl.u32 %v10606_v11, 16  ;;  %v1794_v56 = vrot.slane %v10546_v63, 1  ;;  %v10710_v26 = vld [vmem:[#allocation2 + $0x38] sm:$0xff]  }
 0x119   : > { %8806 = vmatmul.mubr.bf16.vlgmr.msra.gmra.mrb[36].mxu1 %v1364_v14  ;;  %8898 = vmatmul.mubr.bf16.gmra.mrb[32].mxu0 %v2032_v3  ;;  %v8206_v47 = vpack.c.bf16 %v575_v35, %v572_v25  ;;  %8257 = vst [vmem:[#allocation2 + $0x50] sm:$0xff] %v8201_v48   ;;  %v1395_v61 = vrot.slane %v1393_v45, 1  ;;  %v2207_v62 = vrot.slane %v10546_v63, 2  ;;  %v1566_v9 = vrot.slane %v7454_v53, 1  ;;  %v9982_v63 = vld [vmem:[%s11986_s3 + $0x188] sm:$0xff]   ;;  %v9985_v25 = vld [vmem:[%s11986_s3 + $0xb0] sm:$0xff]  }
 0x11a   : > { %8910 = vmatpush3.bf16.msra.mxu0 %v9964_v50  ;;  %8809 = vmatprep.mubr.bf16.mxu1 %v1372_v18  ;;  %v10652_v50 = vsel %vm1565_vm5, %v1790_v34, %v1792_v5  ;;  %v10670_v0 = vsel %vm1565_vm5, %v1792_v5, %v1794_v56  ;;  %v1391_v30 = vor.u32 %v1389_v52, %v1387_v42  ;;  %v1567_v14 = vrot.slane %v10506_v8, 1  ;;  %v9986_v34 = vld [vmem:[%s11986_s3 + $0x198] sm:$0xff]   ;;  %v9994_v8 = vld [vmem:[%s11986_s3 + $0x1b0] sm:$0xff]  }
 0x11b   : > { %8818 = vmatpush3.bf16.msra.mxu1 %v9966_v57  ;;  %8917 = vmatprep.mubr.bf16.mxu0 %v2204_v20  ;;  %8258 = vst [vmem:[#allocation2 + $0x58] sm:$0xff] %v8206_v47   ;;  %v1796_v57 = vrot.slane %v10550_v4, 1  ;;  %v2206_v2 = vsel %vm2201_vm4, %v2203_v6, %v2205_v60  ;;  %v2208_v18 = vsel %vm2201_vm4, %v2205_v60, %v2207_v62  ;;  %v9984_v6 = vld [vmem:[%s11986_s3 + $0x190] sm:$0xff]   ;;  %v10700_v20 = vld [vmem:[#allocation2 + $0x20] sm:$0xff]   ;;  %v2211_v28 = vrot.slane %v10576_v33, 2 }
 0x11c   : > { %8911 = vmatprep.subr.bf16.mxu0 %v9970_v15  ;;  %8819 = vmatprep.subr.bf16.mxu1 %v9971_v16  ;;  %v1396_v13 = vsel %vm1344_vm3, %v1391_v30, %v1395_v61  ;;  %v1568_v27 = vsel %vm1565_vm5, %v1566_v9, %v1567_v14  ;;  %v2839_v32 = vrot.slane %v10692_v19, 3  ;;  %v2841_v35 = vrot.slane %v10700_v20, 3  ;;  %v10019_v33 = vld [vmem:[%s11986_s3 + $0x210] sm:$0xff]  }
 0x11d   : > { %v10673_v1 = vsel %vm1565_vm5, %v1794_v56, %v1796_v57  ;;  %v10678_v3 = vsel %vm1565_vm5, %v1796_v57, %v1798_v58  ;;  %v2845_v44 = vrot.slane %v10704_v21, 3  ;;  %v2847_v47 = vrot.slane %v10710_v26, 3 }
 0x11e   : > { %8912 = vmatpush3.bf16.msra.mxu0 %v9970_v15  ;;  %v2816_v15 = vld [vmem:[#allocation2 + $0x10] sm:$0x8]  ;;  %v10733_v45 = vsel %vm2837_vm6, %v2839_v32, %v2841_v35 }
 0x11f   : > { %8820 = vmatpush3.bf16.msra.mxu1 %v9971_v16  ;;  %8913 = vmatprep.subr.bf16.mxu0 %v9972_v17  ;;  %v8724_v16 = vpop.f32.mrb[2].mxu0  ;;  %v7616_v39 = vcombine.low %v2816_v15, %v2363_v59  ;;  %v10752_v60 = vsel %vm2837_vm6, %v2845_v44, %v2847_v47 }
 0x120   : > { %8821 = vmatprep.subr.bf16.mxu1 %v9974_v23  ;;  %v726_v22 = vpop.f32.mrb[3].mxu0 }
 0x121   : > { %8810 = vmatmul.mubr.bf16.gmra.mrb[40].mxu1 %v1380_v40  ;;  %v2838_v29 = vrot.slane %v7616_v39, 3  ;;  %v8727_v36 = vpop.f32.mrb[4].mxu0  ;;  %v2362_v40 = vld [vmem:[#allocation2 + $0x10] sm:$0xc] }
 0x122   : > { %8914 = vmatpush3.bf16.msra.mxu0 %v9972_v17  ;;  %8813 = vmatprep.mubr.bf16.mxu1 %v1388_v49  ;;  %v10702_v17 = vld [vmem:[#allocation2 + $0x28] sm:$0xff]   ;;  %v739_v48 = vpop.f32.mrb[5].mxu0  ;;  %v10747_v57 = vcombine.low %v2362_v40, %v2363_v59 }
 0x123   : > { %8822 = vmatpush3.bf16.msra.mxu1 %v9974_v23  ;;  %8915 = vmatprep.subr.bf16.mxu0 %v9976_v43  ;;  %v2209_v23 = vrot.slane %v10550_v4, 2  ;;  %v10721_v4 = vld [vmem:[%s11985_s2] ss:$0 sm:$0xff]  ;;  %v10724_v42 = vsel %vm2837_vm6, %v2838_v29, %v2839_v32  ;;  %v8728_v56 = vpop.f32.mrb[6].mxu0 }
 0x124   : > { %8823 = vmatprep.subr.bf16.mxu1 %v9977_v41  ;;  %v724_v61 = vadd.f32 %v10721_v4, %v10654_v51  ;;  %v727_v30 = vadd.f32 %v10721_v4, %v726_v22  ;;  %v9989_v51 = vld [vmem:[%s11986_s3 + $0xc0] sm:$0xff]  }
 0x125   : > { %v2210_v5 = vsel %vm2201_vm4, %v2207_v62, %v2209_v23  ;;  %v2212_v49 = vsel %vm2201_vm4, %v2209_v23, %v2211_v28  ;;  %v735_v62 = vadd.f32 %v8724_v16, %v10721_v4  ;;  %v751_v16 = vadd.f32 %v8728_v56, %v10721_v4 }
 0x126   : > { %8916 = vmatpush3.bf16.msra.mxu0 %v9976_v43  ;;  %v2843_v43 = vrot.slane %v10702_v17, 3  ;;  %v8211_v15 = vpack.c.bf16 %v727_v30, %v724_v61 }
 0x127   : > { %8824 = vmatpush3.bf16.msra.mxu1 %v9977_v41  ;;  %8929 = vmatprep.subr.bf16.mxu0 %v9978_v55  ;;  %v9987_v41 = vld [vmem:[%s11986_s3 + $0xb8] sm:$0xff]  }
 0x128   : > { %8825 = vmatprep.subr.bf16.mxu1 %v9980_v7  ;;  %v10740_v52 = vsel %vm2837_vm6, %v2841_v35, %v2843_v43  ;;  %v10743_v53 = vsel %vm2837_vm6, %v2843_v43, %v2845_v44  ;;  %8259 = vst [vmem:[#allocation2 + $0x60] sm:$0xff] %v8211_v15   ;;  %v2428_v15 = vrot.slane %v10700_v20, 2 }
 0x129   : > { %8918 = vmatmul.mubr.bf16.vlgmr.msra.gmra.mrb[24].mxu0 %v2206_v2  ;;  %8814 = vmatmul.mubr.bf16.gmra.mrb[44].mxu1 %v1396_v13  ;;  %v748_v2 = vadd.f32 %v8727_v36, %v10721_v4 }
 0x12a   : > { %8921 = vmatprep.mubr.bf16.mxu0 %v2208_v18  ;;  %8930 = vmatpush3.bf16.msra.mxu0 %v9978_v55  ;;  %v732_v55 = vadd.f32 %v10636_v37, %v10721_v4  ;;  %v9988_v37 = vld [vmem:[%s11986_s3 + $0x1a0] sm:$0xff]   ;;  %v740_v18 = vadd.f32 %v10721_v4, %v739_v48 }
 0x12b   : > { %8826 = vmatpush3.bf16.msra.mxu1 %v9980_v7  ;;  %8833 = vmatprep.mubr.bf16.mxu1 %v1568_v27  ;;  %v742_v7 = vpop.f32.mrb[7].mxu0  ;;  %v8226_v23 = vpack.c.bf16 %v751_v16, %v748_v2  ;;  %v1577_v16 = vrot.slane %v10628_v24, 1  ;;  %v10003_v24 = vld [vmem:[%s11986_s3 + $0xe8] sm:$0xff]  }
 0x12c   : > { %8931 = vmatprep.subr.bf16.mxu0 %v9982_v63  ;;  %8827 = vmatprep.subr.bf16.mxu1 %v9983_v10  ;;  %v8731_v9 = vpop.f32.mrb[8].mxu0  ;;  %v8216_v59 = vpack.c.bf16 %v735_v62, %v732_v55  ;;  %v743_v39 = vadd.f32 %v10721_v4, %v742_v7  ;;  %v1573_v7 = vrot.slane %v10594_v54, 1  ;;  %v9996_v54 = vld [vmem:[%s11986_s3 + $0x1b8] sm:$0xff]  }
 0x12d   : > { %v755_v13 = vpop.f32.mrb[9].mxu0  ;;  %8262 = vst [vmem:[#allocation2 + $0x78] sm:$0xff] %v8226_v23   ;;  %v10005_v23 = vld [vmem:[%s11986_s3 + $0x1d0] sm:$0xff]  }
 0x12e   : > { %8932 = vmatpush3.bf16.msra.mxu0 %v9982_v63  ;;  %v2213_v63 = vrot.slane %v10574_v31, 2  ;;  %v8732_v27 = vpop.f32.mrb[10].mxu0  ;;  %v2425_v31 = vrot.slane %v10747_v57, 2  ;;  %8260 = vst [vmem:[#allocation2 + $0x68] sm:$0xff] %v8216_v59   ;;  %v8221_v35 = vpack.c.bf16 %v743_v39, %v740_v18  ;;  %v756_v36 = vadd.f32 %v10721_v4, %v755_v13  ;;  %v9997_v13 = vld [vmem:[%s11986_s3 + $0xd8] sm:$0xff]   ;;  %v9999_v59 = vld [vmem:[%s11986_s3 + $0x1c0] sm:$0xff]  }
 0x12f   : > { %8828 = vmatpush3.bf16.msra.mxu1 %v9983_v10  ;;  %8933 = vmatprep.subr.bf16.mxu0 %v9984_v6  ;;  %v1569_v10 = vrot.slane %v10555_v12, 1  ;;  %v1571_v12 = vrot.slane %v10584_v38, 1  ;;  %v758_v22 = vpop.f32.mrb[11].mxu0  ;;  %v9992_v38 = vld [vmem:[%s11986_s3 + $0x1a8] sm:$0xff]   ;;  %v767_v44 = vadd.f32 %v8732_v27, %v10721_v4  ;;  %v10000_v18 = vld [vmem:[%s11986_s3 + $0xe0] sm:$0xff]   ;;  %v2430_v27 = vrot.slane %v10702_v17, 2 }
 0x130   : > { %8829 = vmatprep.subr.bf16.mxu1 %v9985_v25  ;;  %v2214_v32 = vsel %vm2201_vm4, %v2211_v28, %v2213_v63  ;;  %v9993_v28 = vld [vmem:[%s11986_s3 + $0xc8] sm:$0xff]   ;;  %8261 = vst [vmem:[#allocation2 + $0x70] sm:$0xff] %v8221_v35   ;;  %v10795_v61 = vpop.f32.mrb[12].mxu0  ;;  %v10010_v35 = vld [vmem:[#allocation2 + $0x40] ss:$0 sps:$4 sm:$0x33]  }
 0x131   : > { %8922 = vmatmul.mubr.bf16.gmra.mrb[28].mxu0 %v2210_v5  ;;  %v1570_v43 = vsel %vm1565_vm5, %v1567_v14, %v1569_v10  ;;  %v759_v5 = vadd.f32 %v10721_v4, %v758_v22  ;;  %v1572_v48 = vsel %vm1565_vm5, %v1569_v10, %v1571_v12  ;;  %v10802_v30 = vpop.f32.mrb[13].mxu0  ;;  %v1574_v2 = vsel %vm1565_vm5, %v1571_v12, %v1573_v7 }
 0x132   : > { %8925 = vmatprep.mubr.bf16.mxu0 %v2212_v49  ;;  %8934 = vmatpush3.bf16.msra.mxu0 %v9984_v6  ;;  %v896_v6 = vpop.f32.mrb[24].mxu1  ;;  %v10805_v63 = vpop.f32.mrb[14].mxu0  ;;  %v2431_v39 = vsel %vm2201_vm4, %v2428_v15, %v2430_v27  ;;  %v2432_v22 = vrot.slane %v10704_v21, 2 }
 0x133   : > { %8830 = vmatpush3.bf16.msra.mxu1 %v9985_v25  ;;  %8935 = vmatprep.subr.bf16.mxu0 %v9986_v34  ;;  %v764_v25 = vadd.f32 %v8731_v9, %v10721_v4  ;;  %v8737_v29 = vpop.f32.mrb[25].mxu1  ;;  %v8231_v49 = vpack.c.bf16 %v759_v5, %v756_v36  ;;  %v897_v55 = vadd.f32 %v10721_v4, %v896_v6  ;;  %v1575_v9 = vrot.slane %v10606_v11, 1  ;;  %v10002_v6 = vld [vmem:[%s11986_s3 + $0x1c8] sm:$0xff]  }
 0x134   : > { %8831 = vmatprep.subr.bf16.mxu1 %v9987_v41  ;;  %v899_v40 = vpop.f32.mrb[26].mxu1  ;;  %v2434_v29 = vrot.slane %v10710_v26, 2  ;;  %v2616_v36 = vshrl.u32 %v10692_v19, 16 }
 0x135   : > { %v8236_v14 = vpack.c.bf16 %v767_v44, %v764_v25  ;;  %v8738_v56 = vpop.f32.mrb[27].mxu1  ;;  %8263 = vst [vmem:[#allocation2 + $0x80] sm:$0xff] %v8231_v49   ;;  %v900_v62 = vadd.f32 %v10721_v4, %v899_v40  ;;  %v1576_v11 = vsel %vm1565_vm5, %v1573_v7, %v1575_v9  ;;  %v1578_v12 = vsel %vm1565_vm5, %v1575_v9, %v1577_v16  ;;  %v10006_v25 = vld [vmem:[%s11986_s3 + $0xf0] sm:$0xff]   ;;  %v10018_v7 = vld [vmem:[%s11987_s4] sm:$0xff]  }
 0x136   : > { %8936 = vmatpush3.bf16.msra.mxu0 %v9986_v34  ;;  %v2426_v34 = vrot.slane %v10692_v19, 2  ;;  %v2433_v44 = vsel %vm2201_vm4, %v2430_v27, %v2432_v22  ;;  %v2436_v49 = vrot.slane %v10010_v35, 2  ;;  %v10099_v9 = vld [vmem:[#allocation2 + $0x40] sm:$0xff]   ;;  %v4239_v27 = vld [vmem:[#allocation2 + $0x38] sm:$0xc] }
 0x137   : > { %8832 = vmatpush3.bf16.msra.mxu1 %v9987_v41  ;;  %8937 = vmatprep.subr.bf16.mxu0 %v9988_v37  ;;  %8264 = vst [vmem:[#allocation2 + $0x88] sm:$0xff] %v8236_v14   ;;  %v8241_v10 = vpack.c.bf16 %v900_v62, %v897_v55  ;;  %v10011_v55 = vld [vmem:[%s11986_s3 + $0x1e0] sm:$0xff]  }
 0x138   : > { %8845 = vmatprep.subr.bf16.mxu1 %v9989_v51  ;;  %v2427_v41 = vsel %vm2201_vm4, %v2425_v31, %v2426_v34  ;;  %v2429_v31 = vsel %vm2201_vm4, %v2426_v34, %v2428_v15  ;;  %v2611_v34 = vshll.u32 %v10747_v57, 16  ;;  %v10012_v15 = vld [vmem:[%s11986_s3 + $0x1e8] sm:$0xff]  }
 0x139   : > { %8926 = vmatmul.mubr.bf16.gmra.mrb[32].mxu0 %v2214_v32  ;;  %8265 = vst [vmem:[#allocation2 + $0x90] sm:$0xff] %v8241_v10   ;;  %v2608_v32 = vshrl.u32 %v10747_v57, 16  ;;  %v10009_v57 = vld [vmem:[%s11986_s3 + $0xf8] sm:$0xff]  }
 0x13a   : > { %8834 = vmatmul.mubr.bf16.vlgmr.msra.gmra.mrb[36].mxu1 %v1570_v43  ;;  %8938 = vmatpush3.bf16.msra.mxu0 %v9988_v37  ;;  %v9995_v37 = vld [vmem:[%s11986_s3 + $0xd0] sm:$0xff]   ;;  %v2619_v43 = vshll.u32 %v10692_v19, 16  ;;  %v2618_v19 = vrot.slane %v2616_v36, 2 }
 0x13b   : > { %8945 = vmatprep.mubr.bf16.mxu0 %v2427_v41  ;;  %8837 = vmatprep.mubr.bf16.mxu1 %v1572_v48  ;;  %v2435_v41 = vsel %vm2201_vm4, %v2432_v22, %v2434_v29  ;;  %v2610_v48 = vrot.slane %v2608_v32, 2  ;;  %v10013_v22 = vld [vmem:[%s11986_s3 + $0x1f0] sm:$0xff]  }
 0x13c   : > { %8846 = vmatpush3.bf16.msra.mxu1 %v9989_v51  ;;  %8939 = vmatprep.subr.bf16.mxu0 %v9992_v38  ;;  %v10810_v51 = vpop.f32.mrb[15].mxu0  ;;  %v2621_v14 = vrot.slane %v2619_v43, 3 }
 0x13d   : > { %8847 = vmatprep.subr.bf16.mxu1 %v9993_v28 }
 0x13e   : > { %8940 = vmatpush3.bf16.msra.mxu0 %v9992_v38  ;;  %v10008_v38 = vld [vmem:[%s11986_s3 + $0x1d8] sm:$0xff]   ;;  %v10874_v10 = vor.u32 %v2621_v14, %v2618_v19 }
 0x13f   : > { %8941 = vmatprep.subr.bf16.mxu0 %v9994_v8 }
 0x140   : > { %8848 = vmatpush3.bf16.msra.mxu1 %v9993_v28 }
 0x141   : > { %8849 = vmatprep.subr.bf16.mxu1 %v9995_v37 }
 0x142   : > { %8838 = vmatmul.mubr.bf16.gmra.mrb[40].mxu1 %v1574_v2  ;;  %8942 = vmatpush3.bf16.msra.mxu0 %v9994_v8  ;;  %v2613_v8 = vrot.slane %v2611_v34, 3  ;;  %v2637_v34 = vshll.u32 %v10702_v17, 16 }
 0x143   : > { %8841 = vmatprep.mubr.bf16.mxu1 %v1576_v11  ;;  %8943 = vmatprep.subr.bf16.mxu0 %v9996_v54  ;;  %v10880_v11 = vld [vmem:[#allocation2 + $0x50] sm:$0xff]  }
 0x144   : > { %8850 = vmatpush3.bf16.msra.mxu1 %v9995_v37  ;;  %v2614_v56 = vor.u32 %v2613_v8, %v2610_v48  ;;  %v2639_v14 = vrot.slane %v2637_v34, 3  ;;  %v3012_v34 = vld [vmem:[%s10330_s10 + $0x83] sm:$0xff] }
 0x145   : > { %8851 = vmatprep.subr.bf16.mxu1 %v9997_v13 }
 0x146   : > { %8944 = vmatpush3.bf16.msra.mxu0 %v9996_v54  ;;  %v10110_v54 = vld [vmem:[#allocation2 + $0x48] sm:$0xff]   ;;  %v2623_v16 = vsel %vm2606_vm7, %v2614_v56, %v10874_v10 }
 0x147   : > { %8957 = vmatprep.subr.bf16.mxu0 %v9999_v59 }
 0x148   : > { %8852 = vmatpush3.bf16.msra.mxu1 %v9997_v13  ;;  %v10878_v13 = vld [vmem:[#allocation2 + $0x3c] sm:$0xf] }
 0x149   : > { %8946 = vmatmul.mubr.bf16.vlgmr.msra.gmra.mrb[24].mxu0 %v2429_v31  ;;  %8853 = vmatprep.subr.bf16.mxu1 %v10000_v18  ;;  %v7775_v31 = vcombine.low %v4239_v27, %v10878_v13  ;;  %v2655_v27 = vshll.u32 %v10710_v26, 16 }
 0x14a   : > { %8842 = vmatmul.mubr.bf16.gmra.mrb[44].mxu1 %v1578_v12  ;;  %8949 = vmatprep.mubr.bf16.mxu0 %v2431_v39  ;;  %v4260_v12 = vrot.slane %v10099_v9, 2  ;;  %v4262_v39 = vrot.slane %v10110_v54, 2  ;;  %v2646_v9 = vshll.u32 %v10704_v21, 16  ;;  %v3010_v54 = vld [vmem:[%s10330_s10 + $0x73] sm:$0xff] }
 0x14b   : > { %8958 = vmatpush3.bf16.msra.mxu0 %v9999_v59  ;;  %8861 = vmatprep.mubr.bf16.mxu1 %v10648_v46  ;;  %v10846_v46 = vpop.f32.mrb[16].mxu0  ;;  %v2437_v59 = vsel %vm2201_vm4, %v2434_v29, %v2436_v49  ;;  %v2628_v29 = vshll.u32 %v10700_v20, 16 }
 0x14c   : > { %8854 = vmatpush3.bf16.msra.mxu1 %v10000_v18  ;;  %8959 = vmatprep.subr.bf16.mxu0 %v10002_v6  ;;  %v10852_v40 = vpop.f32.mrb[17].mxu0  ;;  %v10905_v32 = vsel %vm2201_vm4, %v4260_v12, %v4262_v39 }
 0x14d   : > { %8855 = vmatprep.subr.bf16.mxu1 %v10003_v24  ;;  %v10855_v28 = vpop.f32.mrb[18].mxu0 }
 0x14e   : > { %v10861_v5 = vpop.f32.mrb[19].mxu0 }
 0x14f   : > { %8960 = vmatpush3.bf16.msra.mxu0 %v10002_v6  ;;  %v10870_v37 = vpop.f32.mrb[20].mxu0  ;;  %v10893_v6 = vld [vmem:[%s11986_s3] sm:$0xff]  }
 0x150   : > { %8856 = vmatpush3.bf16.msra.mxu1 %v10003_v24  ;;  %8961 = vmatprep.subr.bf16.mxu0 %v10005_v23  ;;  %v10872_v62 = vpop.f32.mrb[21].mxu0  ;;  %v4264_v24 = vrot.slane %v10880_v11, 2 }
 0x151   : > { %8950 = vmatmul.mubr.bf16.gmra.mrb[28].mxu0 %v2433_v44  ;;  %8857 = vmatprep.subr.bf16.mxu1 %v10006_v25  ;;  %v10876_v2 = vpop.f32.mrb[22].mxu0 }
 0x152   : > { %8953 = vmatprep.mubr.bf16.mxu0 %v2435_v41  ;;  %v10886_v18 = vpop.f32.mrb[23].mxu0 }
 0x153   : > { %8962 = vmatpush3.bf16.msra.mxu0 %v10005_v23  ;;  %v2625_v23 = vshrl.u32 %v10700_v20, 16  ;;  %v10014_v20 = vld [vmem:[%s11986_s3 + $0x1f8] sm:$0xff]  }
 0x154   : > { %8858 = vmatpush3.bf16.msra.mxu1 %v10006_v25  ;;  %8963 = vmatprep.subr.bf16.mxu0 %v10008_v38  ;;  %v4259_v25 = vrot.slane %v7775_v31, 2  ;;  %v10017_v31 = vld [vmem:[%s11986_s3 + $0x208] sm:$0xff]  }
 0x155   : > { %8859 = vmatprep.subr.bf16.mxu1 %v10009_v57  ;;  %v2627_v44 = vrot.slane %v2625_v23, 2 }
 0x156   : > { %v10916_v35 = vsel %vm2201_vm4, %v4259_v25, %v4260_v12 }
 0x157   : > { %8964 = vmatpush3.bf16.msra.mxu0 %v10008_v38  ;;  %v904_v38 = vpop.f32.mrb[28].mxu1 }
 0x158   : > { %8860 = vmatpush3.bf16.msra.mxu1 %v10009_v57  ;;  %8965 = vmatprep.subr.bf16.mxu0 %v10011_v55  ;;  %v905_v36 = vadd.f32 %v10721_v4, %v904_v38  ;;  %v8741_v43 = vpop.f32.mrb[29].mxu1  ;;  %v10016_v57 = vld [vmem:[#allocation2 + $0x38] ss:$0 sps:$4 sm:$0x11]  }
 0x159   : > { %8954 = vmatmul.mubr.bf16.gmra.mrb[32].mxu0 %v2437_v59  ;;  %9013 = vmatprep.subr.bf16.mxu1 %v10018_v7  ;;  %v907_v41 = vpop.f32.mrb[30].mxu1  ;;  %v3011_v59 = vld [vmem:[%s10330_s10 + $0x7b] sm:$0xff] }
 0x15a   : > { %8973 = vmatprep.mubr.bf16.mxu0 %v2623_v16  ;;  %v908_v48 = vadd.f32 %v10721_v4, %v907_v41  ;;  %v8742_v8 = vpop.f32.mrb[31].mxu1  ;;  %v3015_v41 = vld [vmem:[%s10330_s10 + $0x9b] sm:$0xff] }
 0x15b   : > { %8862 = vmatmul.mubr.bf16.vlgmr.msra.gmra.mrb[36].mxu1 %v10652_v50  ;;  %8966 = vmatpush3.bf16.msra.mxu0 %v10011_v55  ;;  %v10910_v50 = vsel %vm2201_vm4, %v4262_v39, %v4264_v24  ;;  %v10015_v55 = vld [vmem:[%s11986_s3 + $0x200] sm:$0xff]   ;;  %v912_v43 = vpop.f32.mrb[32].mxu1  ;;  %v10021_v8 = vld [vmem:[%s11986_s3 + $0x218] sm:$0xff]  }
 0x15c   : > { %8865 = vmatprep.mubr.bf16.mxu1 %v10670_v0  ;;  %8967 = vmatprep.subr.bf16.mxu0 %v10012_v15  ;;  %v2634_v0 = vshrl.u32 %v10702_v17, 16  ;;  %v2630_v17 = vrot.slane %v2628_v29, 3  ;;  %v8246_v49 = vpack.c.bf16 %v908_v48, %v905_v36  ;;  %v8745_v48 = vpop.f32.mrb[33].mxu1 }
 0x15d   : > { %9014 = vmatpush3.bf16.msra.mxu1 %v10018_v7  ;;  %v2643_v7 = vshrl.u32 %v10704_v21, 16  ;;  %v3022_v21 = vpack.c.bf16 %v3011_v59, %v3010_v54  ;;  %v10024_v59 = vld [vmem:[%s11986_s3 + $0x220] sm:$0xff]  }
 0x15e   : > { %9027 = vmatprep.subr.bf16.mxu1 %v10893_v6  ;;  %v2636_v19 = vrot.slane %v2634_v0, 2  ;;  %v2631_v56 = vor.u32 %v2630_v17, %v2627_v44  ;;  %8266 = vst [vmem:[#allocation2 + $0x98] sm:$0xff] %v8246_v49   ;;  %v2657_v0 = vrot.slane %v2655_v27, 3  ;;  %v913_v17 = vadd.f32 %v10721_v4, %v912_v43  ;;  %v10022_v49 = vld [vmem:[%s11986_s3 + $0x8] sm:$0xff]   ;;  %v10145_v48 = vld [vmem:[#allocation2 + $0x80] sm:$0xff]  }
 0x15f   : > { %8968 = vmatpush3.bf16.msra.mxu0 %v10012_v15  ;;  %v1800_v15 = vrot.slane %v10016_v57, 1  ;;  %v2645_v39 = vrot.slane %v2643_v7, 2  ;;  %v3014_v57 = vld [vmem:[%s10330_s10 + $0x93] sm:$0xff]  ;;  %v3017_v27 = vld [vmem:[%s10330_s10 + $0xab] sm:$0xff]  ;;  %v3020_v43 = vld [vmem:[%s10330_s10 + $0xc3] sm:$0xff] }
 0x160   : > { %8969 = vmatprep.subr.bf16.mxu0 %v10013_v22  ;;  %v2640_v16 = vor.u32 %v2639_v14, %v2636_v19  ;;  %v2632_v12 = vsel %vm2606_vm7, %v10874_v10, %v2631_v56  ;;  %v3013_v10 = vld [vmem:[%s10330_s10 + $0x8b] sm:$0xff]  ;;  %v915_v19 = vpop.f32.mrb[34].mxu1  ;;  %v8147_v7 = vpack.c.bf16 %v913_v17, %v913_v17  ;;  %v3024_v54 = vpack.c.bf16 %v3015_v41, %v3014_v57  ;;  %v10141_v57 = vld [vmem:[#allocation2 + $0x78] sm:$0xff]   ;;  %v10030_v17 = vld [vmem:[%s11986_s3 + $0x20] sm:$0xff]  }
 0x161   : > { %v1801_v23 = vsel %vm1565_vm5, %v1798_v58, %v1800_v15  ;;  %v3023_v44 = vpack.c.bf16 %v3013_v10, %v3012_v34  ;;  %v8746_v4 = vpop.f32.mrb[35].mxu1  ;;  %v10968_v15 = vld [vmem:[#allocation2 + $0x58] sm:$0xff]   ;;  %v10027_v10 = vld [vmem:[%s11986_s3 + $0x228] sm:$0xff]  }
 0x162   : > { %v2641_v25 = vsel %vm2606_vm7, %v2631_v56, %v2640_v16  ;;  %943 = vst [vmem:[#allocation2 + $0xa0] sm:$0xf] %v8147_v7  ;;  %v6316_v7 = vrot.slane %v10145_v48, 2  ;;  %v10031_v4 = vld [vmem:[#allocation2 + $0x30] sm:$0xff]   ;;  %v10040_v48 = vld [vmem:[%s11986_s3 + $0x48] sm:$0xff]  }
 0x163   : > { %8866 = vmatmul.mubr.bf16.gmra.mrb[40].mxu1 %v10673_v1  ;;  %8970 = vmatpush3.bf16.msra.mxu0 %v10013_v22  ;;  %v2652_v1 = vshrl.u32 %v10710_v26, 16  ;;  %v2648_v22 = vrot.slane %v2646_v9, 3 }
 0x164   : > { %8869 = vmatprep.mubr.bf16.mxu1 %v10678_v3  ;;  %8971 = vmatprep.subr.bf16.mxu0 %v10014_v20  ;;  %v10934_v3 = vld [vmem:[#allocation2 + $0x40] ss:$0 sps:$4 sm:$0x77]  }
 0x165   : > { %v2654_v29 = vrot.slane %v2652_v1, 2  ;;  %v2649_v38 = vor.u32 %v2648_v22, %v2645_v39  ;;  %v2661_v58 = vshrl.u32 %v10934_v3, 16  ;;  %v3016_v1 = vld [vmem:[%s10330_s10 + $0xa3] sm:$0xff] }
 0x166   : > { %v6291_v39 = vld [vmem:[#allocation2 + $0x68] sm:$0xc] }
 0x167   : > { %8972 = vmatpush3.bf16.msra.mxu0 %v10014_v20  ;;  %v2664_v20 = vshll.u32 %v10934_v3, 16  ;;  %v2658_v36 = vor.u32 %v2657_v0, %v2654_v29  ;;  %v2650_v14 = vsel %vm2606_vm7, %v2640_v16, %v2649_v38  ;;  %v5841_v16 = vld [vmem:[#allocation2 + $0x6c] sm:$0xf]  ;;  %v3019_v29 = vld [vmem:[%s10330_s10 + $0xbb] sm:$0xff]  ;;  %v10134_v0 = vld [vmem:[#allocation2 + $0x70] sm:$0xff]  }
 0x168   : > { %8985 = vmatprep.subr.bf16.mxu0 %v10015_v55  ;;  %v8015_v22 = vcombine.low %v6291_v39, %v5841_v16  ;;  %v6312_v41 = vrot.slane %v10134_v0, 2  ;;  %v10149_v16 = vld [vmem:[#allocation2 + $0x88] sm:$0xff]   ;;  %v4420_v39 = vld [vmem:[#allocation2 + $0x44] sm:$0xf] }
 0x169   : > { %v2666_v56 = vrot.slane %v2664_v20, 3  ;;  %v2659_v9 = vsel %vm2606_vm7, %v2649_v38, %v2658_v36  ;;  %v10028_v38 = vld [vmem:[%s11986_s3 + $0x18] sm:$0xff]   ;;  %v10167_v0 = vld [vmem:[#allocation2 + $0x48] sm:$0xff]  }
 0x16a   : > { %8974 = vmatmul.mubr.bf16.vlgmr.msra.gmra.mrb[24].mxu0 %v2632_v12  ;;  %v10976_v12 = vld [vmem:[#allocation2 + $0x60] sm:$0xff]   ;;  %v6311_v20 = vrot.slane %v8015_v22, 2 }
 0x16b   : > { %8870 = vmatmul.mubr.bf16.gmra.mrb[44].mxu1 %v1801_v23  ;;  %8977 = vmatprep.mubr.bf16.mxu0 %v2641_v25  ;;  %v3025_v23 = vpack.c.bf16 %v3017_v27, %v3016_v1  ;;  %v3018_v25 = vld [vmem:[%s10330_s10 + $0xb3] sm:$0xff]  ;;  %v6318_v27 = vrot.slane %v10149_v16, 2  ;;  %v4870_v22 = vld [vmem:[#allocation2 + $0x40] sm:$0x8]  ;;  %v2849_v16 = vrot.slane %v10934_v3, 3 }
 0x16c   : > { %8986 = vmatpush3.bf16.msra.mxu0 %v10015_v55  ;;  %9015 = vmatprep.mubr.msk.bf16.mxu1 %vm286_vm0, %v3022_v21  ;;  %v2663_v55 = vrot.slane %v2661_v58, 2  ;;  %v10025_v21 = vld [vmem:[%s11986_s3 + $0x10] sm:$0xff]   ;;  %v3026_v58 = vpack.c.bf16 %v3019_v29, %v3018_v25 }
 0x16d   : > { %8987 = vmatprep.subr.bf16.mxu0 %v10017_v31  ;;  %v11030_v1 = vld [vmem:[#allocation2 + $0x90] sm:$0xff]   ;;  %v11042_v25 = vsel %vm2201_vm4, %v6316_v7, %v6318_v27 }
 0x170   : > { %8988 = vmatpush3.bf16.msra.mxu0 %v10017_v31  ;;  %v2667_v31 = vor.u32 %v2666_v56, %v2663_v55  ;;  %v10033_v55 = vld [vmem:[%s11986_s3 + $0x28] sm:$0xff]  }
 0x171   : > { %8989 = vmatprep.subr.bf16.mxu0 %v10019_v33 }
 0x172   : > { %8978 = vmatmul.mubr.bf16.gmra.mrb[28].mxu0 %v2650_v14  ;;  %v2668_v34 = vsel %vm2606_vm7, %v2658_v36, %v2667_v31  ;;  %v6314_v14 = vrot.slane %v10141_v57, 2  ;;  %v11991_v31 = vrot.slane %v11030_v1, 2  ;;  %v10183_v57 = vld [vmem:[#allocation2 + $0x60] sm:$0xff]  }
 0x173   : > { %8981 = vmatprep.mubr.bf16.mxu0 %v2659_v9  ;;  %9016 = vmatmul.mubr.msk.bf16.vlgmr.msra.gmra.mrb[48].mxu1 %vm286_vm0, %v3023_v44  ;;  %v3021_v44 = vld [vmem:[%s10330_s10 + $0xcb] sm:$0xff] }
 0x174   : > { %8990 = vmatpush3.bf16.msra.mxu0 %v10019_v33  ;;  %9028 = vmatpush3.bf16.msra.mxu1 %v10893_v6  ;;  %v4266_v6 = vrot.slane %v10968_v15, 2  ;;  %v11992_v33 = vrot.slane %v10976_v12, 2  ;;  %v3027_v19 = vpack.c.bf16 %v3021_v44, %v3020_v43  ;;  %v11018_v56 = vsel %vm2201_vm4, %v6312_v41, %v6314_v14  ;;  %v10034_v9 = vld [vmem:[%s11986_s3 + $0x30] sm:$0xff]  }
 0x175   : > { %8991 = vmatprep.subr.bf16.mxu0 %v10021_v8  ;;  %9029 = vmatprep.subr.bf16.mxu1 %v10022_v49  ;;  %v11047_v29 = vsel %vm2201_vm4, %v6318_v27, %v11991_v31  ;;  %v11055_v43 = vld [vmem:[#allocation2 + $0x34] sm:$0xf]  ;;  %v4891_v44 = vrot.slane %v10167_v0, 3  ;;  %v10041_v27 = vld [vmem:[#allocation2 + $0x48] sm:$0xff]   ;;  %v6922_v0 = vld [vmem:[#allocation2 + $0x70] sm:$0x8] }
 0x176   : > { %9019 = vmatprep.mubr.msk.bf16.mxu1 %vm286_vm0, %v3024_v54  ;;  %v10997_v36 = vsel %vm2201_vm4, %v4266_v6, %v11992_v33  ;;  %v11025_v54 = vsel %vm2201_vm4, %v6314_v14, %v6316_v7  ;;  %v5063_v7 = vld [vmem:[%s10330_s10 + $0xdb] sm:$0xff]  ;;  %v11103_v26 = vsel %vm2201_vm4, %v4264_v24, %v4266_v6  ;;  %v10060_v31 = vld [vmem:[%s11986_s3 + $0x28] sm:$0xff]  }
 0x177   : > { %v10047_v24 = vld [vmem:[%s11986_s3 + $0x60] sm:$0xff]  }
 0x178   : > { %8992 = vmatpush3.bf16.msra.mxu0 %v10021_v8  ;;  %9030 = vmatpush3.bf16.msra.mxu1 %v10022_v49  ;;  %v11009_v8 = vsel %vm2201_vm4, %v6311_v20, %v6312_v41  ;;  %v10032_v49 = vld [vmem:[%s11986_s3 + $0x238] sm:$0xff]   ;;  %v3347_v20 = vld [vmem:[#allocation2 + $0x30] sm:$0xf]  ;;  %v11057_v41 = vld [vmem:[#allocation2 + $0x68] sm:$0xff]  }
 0x179   : > { %8993 = vmatprep.subr.bf16.mxu0 %v10024_v59  ;;  %9031 = vmatprep.subr.bf16.mxu1 %v10025_v21  ;;  %v7663_v14 = vcombine.low %v3347_v20, %v11055_v43  ;;  %v10211_v20 = vld [vmem:[#allocation2 + $0x88] sm:$0xff]   ;;  %v10061_v33 = vld [vmem:[#allocation2 + $0x60] sm:$0xff]  }
 0x17a   : > { %8982 = vmatmul.mubr.bf16.gmra.mrb[32].mxu0 %v2668_v34  ;;  %v7856_v34 = vcombine.low %v4870_v22, %v4420_v39  ;;  %v6472_v39 = vld [vmem:[#allocation2 + $0x74] sm:$0xf] }
 0x17b   : > { %9001 = vmatprep.mubr.bf16.mxu0 %v10724_v42  ;;  %9020 = vmatmul.mubr.msk.bf16.gmra.mrb[52].mxu1 %vm286_vm0, %v3025_v23  ;;  %v10029_v42 = vld [vmem:[%s11986_s3 + $0x230] sm:$0xff]   ;;  %v11039_v23 = vld [vmem:[%s11986_s3] sm:$0xff]  }
 0x17c   : > { %8994 = vmatpush3.bf16.msra.mxu0 %v10024_v59  ;;  %9032 = vmatpush3.bf16.msra.mxu1 %v10025_v21  ;;  %v10035_v59 = vld [vmem:[%s11987_s4] sm:$0xff]   ;;  %v10036_v21 = vld [vmem:[%s11986_s3 + $0x38] sm:$0xff]  }
 0x17d   : > { %8995 = vmatprep.subr.bf16.mxu0 %v10027_v10  ;;  %9033 = vmatprep.subr.bf16.mxu1 %v10028_v38 }
 0x17e   : > { %9023 = vmatprep.mubr.msk.bf16.mxu1 %vm286_vm0, %v3026_v58  ;;  %v10037_v58 = vld [vmem:[#allocation2 + $0x38] sm:$0xff]  }
 0x180   : > { %8996 = vmatpush3.bf16.msra.mxu0 %v10027_v10  ;;  %9034 = vmatpush3.bf16.msra.mxu1 %v10028_v38  ;;  %v10038_v10 = vld [vmem:[%s11986_s3 + $0x40] sm:$0xff]   ;;  %v10176_v38 = vld [vmem:[#allocation2 + $0x50] sm:$0xff]  }
 0x181   : > { %8997 = vmatprep.subr.bf16.mxu0 %v10029_v42  ;;  %9035 = vmatprep.subr.bf16.mxu1 %v10030_v17 }
 0x183   : > { %9024 = vmatmul.mubr.msk.bf16.gmra.mrb[56].mxu1 %vm286_vm0, %v3027_v19 }
 0x184   : > { %8998 = vmatpush3.bf16.msra.mxu0 %v10029_v42  ;;  %9036 = vmatpush3.bf16.msra.mxu1 %v10030_v17  ;;  %v4893_v42 = vrot.slane %v10176_v38, 3  ;;  %v10039_v17 = vld [vmem:[#allocation2 + $0x40] sm:$0xff]   ;;  %v10200_v38 = vld [vmem:[#allocation2 + $0x78] sm:$0xff]  }
 0x185   : > { %9043 = vmatprep.mubr.bf16.mxu1 %v10031_v4  ;;  %8999 = vmatprep.subr.bf16.mxu0 %v10032_v49 }
 0x186   : > { %9037 = vmatprep.subr.bf16.mxu1 %v10033_v55 }
 0x188   : > { %9000 = vmatpush3.bf16.msra.mxu0 %v10032_v49  ;;  %9038 = vmatpush3.bf16.msra.mxu1 %v10033_v55  ;;  %v11068_v49 = vsel %vm2837_vm6, %v4891_v44, %v4893_v42  ;;  %v5062_v55 = vld [vmem:[%s10330_s10 + $0xd3] sm:$0xff] }
 0x189   : > { %9039 = vmatprep.subr.bf16.mxu1 %v10034_v9  ;;  %9279 = vmatprep.subr.bf16.mxu0 %v10035_v59  ;;  %v5074_v3 = vpack.c.bf16 %v5063_v7, %v5062_v55  ;;  %v5065_v55 = vld [vmem:[%s10330_s10 + $0xeb] sm:$0xff]  ;;  %v3410_v7 = vshrl.u32 %v7663_v14, 16 }
 0x18b   : > { %9002 = vmatmul.mubr.bf16.vlgmr.msra.gmra.mrb[24].mxu0 %v10733_v45  ;;  %v4890_v45 = vrot.slane %v7856_v34, 3  ;;  %v10044_v34 = vld [vmem:[#allocation2 + $0x50] sm:$0xff]  }
 0x18c   : > { %9005 = vmatprep.mubr.bf16.mxu0 %v10740_v52  ;;  %9040 = vmatpush3.bf16.msra.mxu1 %v10034_v9  ;;  %v10179_v52 = vld [vmem:[#allocation2 + $0x58] sm:$0xff]   ;;  %v4897_v9 = vrot.slane %v10183_v57, 3  ;;  %v8096_v57 = vcombine.low %v6922_v0, %v6472_v39 }
 0x18d   : > { %9280 = vmatpush3.bf16.msra.mxu0 %v10035_v59  ;;  %9041 = vmatprep.subr.bf16.mxu1 %v10036_v21  ;;  %v11063_v19 = vsel %vm2837_vm6, %v4890_v45, %v4891_v44  ;;  %v4895_v4 = vrot.slane %v10179_v52, 3  ;;  %v11990_v59 = vrot.slane %v11057_v41, 3  ;;  %v11088_v45 = vld [vmem:[#allocation2 + $0x90] sm:$0xff]   ;;  %v2850_v44 = vsel %vm2837_vm6, %v2847_v47, %v2849_v16  ;;  %v10043_v52 = vld [vmem:[%s11986_s3 + $0x58] sm:$0xff]  }
 0x18e   : > { %9293 = vmatprep.subr.bf16.mxu0 %v11039_v23  ;;  %v6942_v16 = vrot.slane %v8096_v57, 3  ;;  %v6949_v11 = vrot.slane %v11088_v45, 3  ;;  %v5066_v39 = vld [vmem:[%s10330_s10 + $0xf3] sm:$0xff]  ;;  %v5067_v0 = vld [vmem:[%s10330_s10 + $0xfb] sm:$0xff] }
 0x18f   : > { %v11084_v22 = vsel %vm2837_vm6, %v4897_v9, %v11990_v59  ;;  %v11106_v47 = vsel %vm2837_vm6, %v4893_v42, %v4895_v4  ;;  %v10046_v42 = vld [vmem:[#allocation2 + $0x58] sm:$0xff]   ;;  %v5076_v57 = vpack.c.bf16 %v5067_v0, %v5066_v39  ;;  %v5072_v39 = vld [vmem:[%s10330_s10 + $0x123] sm:$0xff]  ;;  %v5073_v0 = vld [vmem:[%s10330_s10 + $0x12b] sm:$0xff] }
 0x190   : > { %9042 = vmatpush3.bf16.msra.mxu1 %v10036_v21  ;;  %v3412_v21 = vshll.u32 %v7663_v14, 16  ;;  %v6943_v14 = vrot.slane %v10200_v38, 3  ;;  %v10065_v45 = vld [vmem:[%s11986_s3 + $0x90] sm:$0xff]  }
 0x191   : > { %9055 = vmatprep.subr.bf16.mxu1 %v10038_v10 }
 0x193   : > { %9006 = vmatmul.mubr.bf16.gmra.mrb[28].mxu0 %v10743_v53  ;;  %9044 = vmatmul.mubr.bf16.vlgmr.msra.gmra.mrb[48].mxu1 %v10037_v58  ;;  %v10042_v53 = vld [vmem:[%s11986_s3 + $0x50] sm:$0xff]   ;;  %v10207_v58 = vld [vmem:[#allocation2 + $0x80] sm:$0xff]  }
 0x194   : > { %9009 = vmatprep.mubr.bf16.mxu0 %v10752_v60  ;;  %9047 = vmatprep.mubr.bf16.mxu1 %v10039_v17  ;;  %v11079_v60 = vsel %vm2837_vm6, %v4895_v4, %v4897_v9  ;;  %v5064_v17 = vld [vmem:[%s10330_s10 + $0xe3] sm:$0xff] }
 0x195   : > { %9056 = vmatpush3.bf16.msra.mxu1 %v10038_v10  ;;  %v11086_v10 = vld [vmem:[#allocation2 + $0x38] sm:$0xff]   ;;  %v5075_v6 = vpack.c.bf16 %v5065_v55, %v5064_v17  ;;  %v5069_v55 = vld [vmem:[%s10330_s10 + $0x10b] sm:$0xff] }
 0x196   : > { %9057 = vmatprep.subr.bf16.mxu1 %v10040_v48  ;;  %v3417_v9 = vshll.u32 %v11086_v10, 16 }
 0x199   : > { %9058 = vmatpush3.bf16.msra.mxu1 %v10040_v48  ;;  %v3414_v48 = vrot.slane %v3412_v21, 1  ;;  %v6947_v21 = vrot.slane %v10211_v20, 3  ;;  %v10050_v20 = vld [vmem:[%s11986_s3 + $0x8] sm:$0xff]  }
 0x19a   : > { %9059 = vmatprep.subr.bf16.mxu1 %v10042_v53 }
 0x19b   : > { %9010 = vmatmul.mubr.bf16.gmra.mrb[32].mxu0 %v2850_v44  ;;  %9048 = vmatmul.mubr.bf16.gmra.mrb[52].mxu1 %v10041_v27  ;;  %v6945_v27 = vrot.slane %v10207_v58, 3  ;;  %v3415_v4 = vor.u32 %v3414_v48, %v3410_v7  ;;  %v11128_v38 = vsel %vm2837_vm6, %v6947_v21, %v6949_v11  ;;  %v3419_v58 = vrot.slane %v3417_v9, 1  ;;  %v10051_v44 = vld [vmem:[%s11986_s3 + $0x68] sm:$0xff]   ;;  %v10052_v7 = vld [vmem:[%s11986_s3 + $0x10] sm:$0xff]   ;;  %v5071_v9 = vld [vmem:[%s10330_s10 + $0x11b] sm:$0xff] }
 0x19c   : > { %9051 = vmatprep.mubr.bf16.mxu1 %v10044_v34  ;;  %9281 = vmatprep.mubr.msk.bf16.mxu0 %vm286_vm0, %v5074_v3  ;;  %v11117_v34 = vsel %vm2837_vm6, %v6942_v16, %v6943_v14  ;;  %v5070_v48 = vld [vmem:[%s10330_s10 + $0x113] sm:$0xff] }
 0x19d   : > { %9060 = vmatpush3.bf16.msra.mxu1 %v10042_v53  ;;  %v11120_v53 = vsel %vm2837_vm6, %v6943_v14, %v6945_v27  ;;  %v11123_v3 = vsel %vm2837_vm6, %v6945_v27, %v6947_v21  ;;  %v3420_v17 = vsel %vm1344_vm3, %v3415_v4, %v3419_v58  ;;  %v10053_v16 = vld [vmem:[%s11986_s3 + $0x70] sm:$0xff]   ;;  %v5078_v27 = vpack.c.bf16 %v5071_v9, %v5070_v48  ;;  %v10054_v21 = vld [vmem:[%s11986_s3 + $0x18] sm:$0xff]  }
 0x19e   : > { %9061 = vmatprep.subr.bf16.mxu1 %v10043_v52  ;;  %v5079_v48 = vpack.c.bf16 %v5073_v0, %v5072_v39 }
 0x1a1   : > { %9062 = vmatpush3.bf16.msra.mxu1 %v10043_v52  ;;  %v5068_v52 = vld [vmem:[%s10330_s10 + $0x103] sm:$0xff] }
 0x1a2   : > { %9063 = vmatprep.subr.bf16.mxu1 %v10047_v24  ;;  %v5077_v14 = vpack.c.bf16 %v5069_v55, %v5068_v52  ;;  %v10058_v52 = vld [vmem:[%s11986_s3 + $0x80] sm:$0xff]  }
 0x1a3   : > { %9052 = vmatmul.mubr.bf16.gmra.mrb[56].mxu1 %v10046_v42  ;;  %9282 = vmatmul.mubr.msk.bf16.vlgmr.msra.gmra.mrb[36].mxu0 %vm286_vm0, %v5075_v6  ;;  %v11159_v42 = vld [vmem:[#allocation2 + $0x48] sm:$0xff]  }
 0x1a4   : > { %9294 = vmatpush3.bf16.msra.mxu0 %v11039_v23  ;;  %9071 = vmatprep.mubr.bf16.mxu1 %v3420_v17  ;;  %v11150_v23 = vld [vmem:[#allocation2 + $0x40] sm:$0xff]   ;;  %v3433_v55 = vshll.u32 %v11159_v42, 16 }
 0x1a5   : > { %9064 = vmatpush3.bf16.msra.mxu1 %v10047_v24  ;;  %9295 = vmatprep.subr.bf16.mxu0 %v10050_v20  ;;  %v10055_v24 = vld [vmem:[%s11986_s3 + $0x78] sm:$0xff]   ;;  %v3425_v6 = vshll.u32 %v11150_v23, 16  ;;  %v3429_v4 = vshrl.u32 %v11150_v23, 16 }
 0x1a6   : > { %9065 = vmatprep.subr.bf16.mxu1 %v10051_v44  ;;  %9285 = vmatprep.mubr.msk.bf16.mxu0 %vm286_vm0, %v5076_v57  ;;  %v11170_v57 = vld [vmem:[#allocation2 + $0x50] sm:$0xff]   ;;  %v3435_v59 = vrot.slane %v3433_v55, 1 }
 0x1a7   : > { %v3427_v17 = vrot.slane %v3425_v6, 1 }
 0x1a8   : > { %9296 = vmatpush3.bf16.msra.mxu0 %v10050_v20  ;;  %v3421_v20 = vshrl.u32 %v11086_v10, 16 }
 0x1a9   : > { %9066 = vmatpush3.bf16.msra.mxu1 %v10051_v44  ;;  %9297 = vmatprep.subr.bf16.mxu0 %v10052_v7  ;;  %v10056_v44 = vld [vmem:[%s11986_s3 + $0x20] sm:$0xff]   ;;  %v3431_v9 = vor.u32 %v3429_v4, %v3427_v17 }
 0x1aa   : > { %9067 = vmatprep.subr.bf16.mxu1 %v10053_v16 }
 0x1ab   : > { %9286 = vmatmul.mubr.msk.bf16.gmra.mrb[40].mxu0 %vm286_vm0, %v5077_v14  ;;  %v3441_v14 = vshll.u32 %v11170_v57, 16  ;;  %v3436_v0 = vsel %vm1344_vm3, %v3431_v9, %v3435_v59 }
 0x1ac   : > { %9298 = vmatpush3.bf16.msra.mxu0 %v10052_v7  ;;  %9289 = vmatprep.mubr.msk.bf16.mxu0 %vm286_vm0, %v5078_v27  ;;  %v11176_v7 = vld [vmem:[#allocation2 + $0x98] sm:$0xff]  }
 0x1ad   : > { %9068 = vmatpush3.bf16.msra.mxu1 %v10053_v16  ;;  %9299 = vmatprep.subr.bf16.mxu0 %v10054_v21  ;;  %v3423_v16 = vor.u32 %v3421_v20, %v3419_v58  ;;  %v11179_v27 = vld [vmem:[#allocation2 + $0x58] sm:$0xff]   ;;  %v11993_v6 = vrot.slane %v11176_v7, 3  ;;  %v10062_v58 = vld [vmem:[%s11986_s3 + $0x88] sm:$0xff]   ;;  %v10063_v20 = vld [vmem:[%s11986_s3 + $0x30] sm:$0xff]  }
 0x1ae   : > { %9069 = vmatprep.subr.bf16.mxu1 %v10055_v24  ;;  %v3449_v55 = vshll.u32 %v11179_v27, 16 }
 0x1af   : > { %v3428_v39 = vsel %vm1344_vm3, %v3423_v16, %v3427_v17  ;;  %v11197_v4 = vsel %vm2837_vm6, %v6949_v11, %v11993_v6  ;;  %v3443_v17 = vrot.slane %v3441_v14, 1  ;;  %v3608_v16 = vld [vmem:[#allocation2 + $0x30] sm:$0xe] }
 0x1b0   : > { %9300 = vmatpush3.bf16.msra.mxu0 %v10054_v21  ;;  %v3437_v21 = vshrl.u32 %v11159_v42, 16  ;;  %v3451_v9 = vrot.slane %v3449_v55, 1  ;;  %v5399_v55 = vld [vmem:[#allocation2 + $0x60] sm:$0xf] }
 0x1b1   : > { %9070 = vmatpush3.bf16.msra.mxu1 %v10055_v24  ;;  %9301 = vmatprep.subr.bf16.mxu0 %v10056_v44  ;;  %v3445_v24 = vshrl.u32 %v11170_v57, 16 }
 0x1b2   : > { %9083 = vmatprep.subr.bf16.mxu1 %v10058_v52  ;;  %v3439_v11 = vor.u32 %v3437_v21, %v3435_v59  ;;  %v7694_v21 = vcombine.low %v3608_v16, %v11055_v43  ;;  %v10073_v43 = vld [vmem:[#allocation2 + $0x70] sm:$0xff]   ;;  %v10075_v16 = vld [vmem:[%s11986_s3 + $0x48] sm:$0xff]  }
 0x1b3   : > { %9290 = vmatmul.mubr.msk.bf16.gmra.mrb[44].mxu0 %vm286_vm0, %v5079_v48  ;;  %v11207_v48 = vld [vmem:[#allocation2 + $0x60] ss:$0 sps:$4 sm:$0x11]  }
 0x1b4   : > { %9072 = vmatmul.mubr.bf16.vlgmr.msra.gmra.mrb[48].mxu1 %v3428_v39  ;;  %9302 = vmatpush3.bf16.msra.mxu0 %v10056_v44  ;;  %v3447_v44 = vor.u32 %v3445_v24, %v3443_v17  ;;  %v3444_v14 = vsel %vm1344_vm3, %v3439_v11, %v3443_v17  ;;  %v3453_v39 = vshrl.u32 %v11179_v27, 16  ;;  %v10072_v24 = vld [vmem:[%s11986_s3 + $0xa0] sm:$0xff]  }
 0x1b5   : > { %9075 = vmatprep.mubr.bf16.mxu1 %v3436_v0  ;;  %9084 = vmatpush3.bf16.msra.mxu1 %v10058_v52  ;;  %v10066_v52 = vld [vmem:[%s11986_s3 + $0x38] sm:$0xff]   ;;  %v11226_v11 = vld [vmem:[#allocation2 + $0x64] sm:$0xf] }
 0x1b6   : > { %9303 = vmatprep.subr.bf16.mxu0 %v10060_v31  ;;  %9309 = vmatprep.mubr.bf16.mxu0 %v10061_v33  ;;  %v10067_v33 = vld [vmem:[%s11986_s3 + $0x98] sm:$0xff]   ;;  %v3452_v59 = vsel %vm1344_vm3, %v3447_v44, %v3451_v9  ;;  %v3455_v0 = vor.u32 %v3453_v39, %v3451_v9  ;;  %v3629_v44 = vrot.slane %v11086_v10, 1 }
 0x1b7   : > { %9085 = vmatprep.subr.bf16.mxu1 %v10062_v58 }
 0x1b8   : > { %9304 = vmatpush3.bf16.msra.mxu0 %v10060_v31  ;;  %v3457_v31 = vshll.u32 %v11207_v48, 16 }
 0x1b9   : > { %9086 = vmatpush3.bf16.msra.mxu1 %v10062_v58  ;;  %9305 = vmatprep.subr.bf16.mxu0 %v10063_v20  ;;  %v10070_v58 = vld [vmem:[%s11986_s3 + $0x40] sm:$0xff]  }
 0x1ba   : > { %9087 = vmatprep.subr.bf16.mxu1 %v10065_v45  ;;  %v3459_v17 = vrot.slane %v3457_v31, 1  ;;  %v10077_v31 = vld [vmem:[#allocation2 + $0x78] sm:$0xff]  }
 0x1bc   : > { %9076 = vmatmul.mubr.bf16.gmra.mrb[52].mxu1 %v3444_v14  ;;  %9306 = vmatpush3.bf16.msra.mxu0 %v10063_v20  ;;  %v10069_v20 = vld [vmem:[#allocation2 + $0x68] sm:$0xff]   ;;  %v3460_v9 = vsel %vm1344_vm3, %v3455_v0, %v3459_v17  ;;  %v10078_v14 = vld [vmem:[%s11986_s3 + $0x50] sm:$0xff]   ;;  %v10082_v0 = vld [vmem:[%s11986_s3 + $0xb8] sm:$0xff]  }
 0x1bd   : > { %9088 = vmatpush3.bf16.msra.mxu1 %v10065_v45  ;;  %9307 = vmatprep.subr.bf16.mxu0 %v10066_v52  ;;  %v3628_v45 = vrot.slane %v7694_v21, 1  ;;  %v11244_v21 = vld [vmem:[#allocation2 + $0x68] sm:$0xff]  }
 0x1be   : > { %9089 = vmatprep.subr.bf16.mxu1 %v10067_v33  ;;  %9079 = vmatprep.mubr.bf16.mxu1 %v3452_v59  ;;  %v10079_v59 = vld [vmem:[%s11986_s3 + $0xb0] sm:$0xff]  }
 0x1bf   : > { %v3630_v10 = vsel %vm1565_vm5, %v3628_v45, %v3629_v44  ;;  %v10084_v45 = vld [vmem:[%s11986_s3 + $0x60] sm:$0xff]  }
 0x1c0   : > { %9308 = vmatpush3.bf16.msra.mxu0 %v10066_v52  ;;  %v10076_v52 = vld [vmem:[%s11986_s3 + $0xa8] sm:$0xff]  }
 0x1c1   : > { %9090 = vmatpush3.bf16.msra.mxu1 %v10067_v33  ;;  %9321 = vmatprep.subr.bf16.mxu0 %v10070_v58  ;;  %v7903_v33 = vcombine.low %v5399_v55, %v11226_v11 }
 0x1c2   : > { %9091 = vmatprep.subr.bf16.mxu1 %v10072_v24 }
 0x1c3   : > { %9310 = vmatmul.mubr.bf16.vlgmr.msra.gmra.mrb[36].mxu0 %v10069_v20  ;;  %v5464_v39 = vshll.u32 %v7903_v33, 16  ;;  %v5462_v17 = vshrl.u32 %v7903_v33, 16  ;;  %v5469_v20 = vshll.u32 %v11244_v21, 16  ;;  %v10083_v33 = vld [vmem:[#allocation2 + $0x88] sm:$0xff]  }
 0x1c4   : > { %9080 = vmatmul.mubr.bf16.gmra.mrb[56].mxu1 %v3460_v9  ;;  %9313 = vmatprep.mubr.bf16.mxu0 %v10073_v43  ;;  %v10085_v43 = vld [vmem:[%s11986_s3 + $0xc0] sm:$0xff]  }
 0x1c5   : > { %9322 = vmatpush3.bf16.msra.mxu0 %v10070_v58  ;;  %9092 = vmatpush3.bf16.msra.mxu1 %v10072_v24  ;;  %v10080_v58 = vld [vmem:[#allocation2 + $0x80] sm:$0xff]   ;;  %v10081_v24 = vld [vmem:[%s11986_s3 + $0x58] sm:$0xff]   ;;  %v5466_v55 = vrot.slane %v5464_v39, 1 }
 0x1c6   : > { %9099 = vmatprep.mubr.bf16.mxu1 %v3630_v10  ;;  %9323 = vmatprep.subr.bf16.mxu0 %v10075_v16  ;;  %v5471_v10 = vrot.slane %v5469_v20, 1  ;;  %v11284_v20 = vld [vmem:[#allocation2 + $0x78] sm:$0xff]  }
 0x1c7   : > { %9093 = vmatprep.subr.bf16.mxu1 %v10076_v52  ;;  %v5467_v9 = vor.u32 %v5466_v55, %v5462_v17  ;;  %v10092_v17 = vld [vmem:[%s11986_s3 + $0x78] sm:$0xff]  }
 0x1c9   : > { %9324 = vmatpush3.bf16.msra.mxu0 %v10075_v16  ;;  %9094 = vmatpush3.bf16.msra.mxu1 %v10076_v52  ;;  %v3631_v16 = vrot.slane %v11150_v23, 1  ;;  %v3633_v52 = vrot.slane %v11159_v42, 1  ;;  %v5472_v39 = vsel %vm1344_vm3, %v5467_v9, %v5471_v10  ;;  %v10089_v23 = vld [vmem:[%s11986_s3 + $0xc8] sm:$0xff]   ;;  %v3788_v9 = vld [vmem:[#allocation2 + $0x38] sm:$0xe] }
 0x1ca   : > { %9325 = vmatprep.subr.bf16.mxu0 %v10078_v14  ;;  %9095 = vmatprep.subr.bf16.mxu1 %v10079_v59 }
 0x1cb   : > { %9314 = vmatmul.mubr.bf16.gmra.mrb[40].mxu0 %v10077_v31  ;;  %v3634_v42 = vsel %vm1565_vm5, %v3631_v16, %v3633_v52  ;;  %v10090_v31 = vld [vmem:[%s11986_s3 + $0x70] sm:$0xff]  }
 0x1cc   : > { %9317 = vmatprep.mubr.bf16.mxu0 %v10080_v58  ;;  %v11273_v58 = vld [vmem:[#allocation2 + $0x70] sm:$0xff]  }
 0x1cd   : > { %9326 = vmatpush3.bf16.msra.mxu0 %v10078_v14  ;;  %9096 = vmatpush3.bf16.msra.mxu1 %v10079_v59  ;;  %v10088_v14 = vld [vmem:[%s11986_s3 + $0x68] sm:$0xff]   ;;  %v3632_v59 = vsel %vm1565_vm5, %v3629_v44, %v3631_v16  ;;  %v3635_v44 = vrot.slane %v11170_v57, 1  ;;  %v5477_v55 = vshll.u32 %v11273_v58, 16  ;;  %v5481_v16 = vshrl.u32 %v11273_v58, 16 }
 0x1ce   : > { %9327 = vmatprep.subr.bf16.mxu0 %v10081_v24  ;;  %9097 = vmatprep.subr.bf16.mxu1 %v10082_v0 }
 0x1cf   : > { %v3636_v57 = vsel %vm1565_vm5, %v3633_v52, %v3635_v44  ;;  %v10095_v52 = vld [vmem:[%s11986_s3 + $0x80] sm:$0xff]  }
 0x1d1   : > { %9328 = vmatpush3.bf16.msra.mxu0 %v10081_v24  ;;  %9098 = vmatpush3.bf16.msra.mxu1 %v10082_v0  ;;  %v10091_v24 = vld [vmem:[%s11986_s3 + $0xd0] sm:$0xff]   ;;  %v3637_v0 = vrot.slane %v11179_v27, 1 }
 0x1d2   : > { %9329 = vmatprep.subr.bf16.mxu0 %v10084_v45  ;;  %9111 = vmatprep.subr.bf16.mxu1 %v10085_v43 }
 0x1d3   : > { %9318 = vmatmul.mubr.bf16.gmra.mrb[44].mxu0 %v10083_v33  ;;  %v3638_v27 = vsel %vm1565_vm5, %v3635_v44, %v3637_v0  ;;  %v5479_v33 = vrot.slane %v5477_v55, 1 }
 0x1d4   : > { %9100 = vmatmul.mubr.bf16.vlgmr.msra.gmra.mrb[48].mxu1 %v3632_v59  ;;  %9337 = vmatprep.mubr.bf16.mxu0 %v5472_v39  ;;  %v11297_v59 = vld [vmem:[#allocation2 + $0x80] sm:$0xff]  }
 0x1d5   : > { %9330 = vmatpush3.bf16.msra.mxu0 %v10084_v45  ;;  %9103 = vmatprep.mubr.bf16.mxu1 %v3634_v42  ;;  %v5473_v45 = vshrl.u32 %v11244_v21, 16  ;;  %v10096_v42 = vld [vmem:[%s11986_s3 + $0xe0] sm:$0xff]   ;;  %v5483_v44 = vor.u32 %v5481_v16, %v5479_v33  ;;  %v5489_v16 = vshrl.u32 %v11284_v20, 16 }
 0x1d6   : > { %9112 = vmatpush3.bf16.msra.mxu1 %v10085_v43  ;;  %9331 = vmatprep.subr.bf16.mxu0 %v10088_v14  ;;  %v10093_v43 = vld [vmem:[%s11986_s3 + $0xd8] sm:$0xff]  }
 0x1d7   : > { %9113 = vmatprep.subr.bf16.mxu1 %v10089_v23  ;;  %v5475_v39 = vor.u32 %v5473_v45, %v5471_v10  ;;  %v5493_v10 = vshll.u32 %v11297_v59, 16  ;;  %v11310_v45 = vld [vmem:[#allocation2 + $0x88] sm:$0xff]  }
 0x1d9   : > { %9332 = vmatpush3.bf16.msra.mxu0 %v10088_v14  ;;  %v5485_v14 = vshll.u32 %v11284_v20, 16 }
 0x1da   : > { %9114 = vmatpush3.bf16.msra.mxu1 %v10089_v23  ;;  %9333 = vmatprep.subr.bf16.mxu0 %v10090_v31  ;;  %v3639_v23 = vrot.slane %v11207_v48, 1  ;;  %v5480_v48 = vsel %vm1344_vm3, %v5475_v39, %v5479_v33  ;;  %v5497_v33 = vshrl.u32 %v11297_v59, 16  ;;  %v10103_v39 = vld [vmem:[%s11986_s3 + $0x90] sm:$0xff]  }
 0x1db   : > { %9115 = vmatprep.subr.bf16.mxu1 %v10091_v24 }
 0x1dc   : > { %9104 = vmatmul.mubr.bf16.gmra.mrb[52].mxu1 %v3636_v57  ;;  %v5487_v57 = vrot.slane %v5485_v14, 1  ;;  %v5495_v14 = vrot.slane %v5493_v10, 1  ;;  %v10106_v10 = vld [vmem:[%s11986_s3 + $0x98] sm:$0xff]  }
 0x1dd   : > { %9334 = vmatpush3.bf16.msra.mxu0 %v10090_v31  ;;  %9107 = vmatprep.mubr.bf16.mxu1 %v3638_v27  ;;  %v11304_v31 = vcombine.low %v3788_v9, %v10878_v13  ;;  %v3640_v27 = vsel %vm1565_vm5, %v3637_v0, %v3639_v23  ;;  %v5501_v23 = vshll.u32 %v11310_v45, 16 }
 0x1de   : > { %9116 = vmatpush3.bf16.msra.mxu1 %v10091_v24  ;;  %9335 = vmatprep.subr.bf16.mxu0 %v10092_v17  ;;  %v11306_v24 = vld [vmem:[#allocation2 + $0x40] sm:$0xff]   ;;  %v5488_v9 = vsel %vm1344_vm3, %v5483_v44, %v5487_v57  ;;  %v5491_v44 = vor.u32 %v5489_v16, %v5487_v57  ;;  %v10107_v57 = vld [vmem:[%s11986_s3 + $0xf8] sm:$0xff]   ;;  %v5505_v16 = vshrl.u32 %v11310_v45, 16 }
 0x1df   : > { %9117 = vmatprep.subr.bf16.mxu1 %v10093_v43  ;;  %v3851_v55 = vrot.slane %v11306_v24, 1  ;;  %v3850_v13 = vrot.slane %v11304_v31, 1 }
 0x1e1   : > { %9336 = vmatpush3.bf16.msra.mxu0 %v10092_v17  ;;  %v10100_v17 = vld [vmem:[%s11986_s3 + $0x88] sm:$0xff]   ;;  %v3852_v0 = vsel %vm1565_vm5, %v3850_v13, %v3851_v55  ;;  %v5660_v13 = vld [vmem:[#allocation2 + $0x60] sm:$0xe] }
 0x1e2   : > { %9118 = vmatpush3.bf16.msra.mxu1 %v10093_v43  ;;  %9349 = vmatprep.subr.bf16.mxu0 %v10095_v52  ;;  %v10101_v43 = vld [vmem:[%s11986_s3 + $0xe8] sm:$0xff]  }
 0x1e3   : > { %9119 = vmatprep.subr.bf16.mxu1 %v10096_v42 }
 0x1e4   : > { %9338 = vmatmul.mubr.bf16.vlgmr.msra.gmra.mrb[36].mxu0 %v5480_v48  ;;  %9108 = vmatmul.mubr.bf16.gmra.mrb[56].mxu1 %v3640_v27  ;;  %v11334_v48 = vld [vmem:[#allocation2 + $0x90] ss:$0 sps:$4 sm:$0x11]   ;;  %v5499_v27 = vor.u32 %v5497_v33, %v5495_v14 }
 0x1e5   : > { %9341 = vmatprep.mubr.bf16.mxu0 %v5488_v9  ;;  %9350 = vmatpush3.bf16.msra.mxu0 %v10095_v52  ;;  %v10104_v52 = vld [vmem:[%s11986_s3 + $0xf0] sm:$0xff]   ;;  %v5496_v9 = vsel %vm1344_vm3, %v5491_v44, %v5495_v14  ;;  %v5509_v33 = vshll.u32 %v11334_v48, 16  ;;  %v10111_v44 = vld [vmem:[%s11986_s3 + $0x100] sm:$0xff]  }
 0x1e6   : > { %9120 = vmatpush3.bf16.msra.mxu1 %v10096_v42  ;;  %9127 = vmatprep.mubr.bf16.mxu1 %v3852_v0  ;;  %v5503_v42 = vrot.slane %v5501_v23, 1  ;;  %v10109_v0 = vld [vmem:[%s11986_s3 + $0xa0] sm:$0xff]  }
 0x1e7   : > { %9351 = vmatprep.subr.bf16.mxu0 %v10100_v17  ;;  %9121 = vmatprep.subr.bf16.mxu1 %v10101_v43  ;;  %v5511_v23 = vrot.slane %v5509_v33, 1 }
 0x1e8   : > { %v5507_v14 = vor.u32 %v5505_v16, %v5503_v42  ;;  %v10114_v16 = vld [vmem:[%s11986_s3 + $0xa8] sm:$0xff]  }
 0x1e9   : > { %9352 = vmatpush3.bf16.msra.mxu0 %v10100_v17  ;;  %v5504_v17 = vsel %vm1344_vm3, %v5499_v27, %v5503_v42 }
 0x1ea   : > { %9122 = vmatpush3.bf16.msra.mxu1 %v10101_v43  ;;  %9353 = vmatprep.subr.bf16.mxu0 %v10103_v39  ;;  %v7934_v43 = vcombine.low %v5660_v13, %v11226_v11  ;;  %v5681_v11 = vrot.slane %v11244_v21, 1  ;;  %v5512_v42 = vsel %vm1344_vm3, %v5507_v14, %v5511_v23  ;;  %v10115_v21 = vld [vmem:[%s11986_s3 + $0x108] sm:$0xff]   ;;  %v4039_v14 = vshrl.u32 %v11306_v24, 16 }
 0x1eb   : > { %9123 = vmatprep.subr.bf16.mxu1 %v10104_v52  ;;  %v4042_v23 = vshll.u32 %v11306_v24, 16 }
 0x1ec   : > { %9342 = vmatmul.mubr.bf16.gmra.mrb[40].mxu0 %v5496_v9  ;;  %v11353_v9 = vld [vmem:[#allocation2 + $0x48] sm:$0xff]  }
 0x1ed   : > { %9345 = vmatprep.mubr.bf16.mxu0 %v5504_v17  ;;  %9354 = vmatpush3.bf16.msra.mxu0 %v10103_v39  ;;  %v3853_v27 = vrot.slane %v11353_v9, 1  ;;  %v5680_v39 = vrot.slane %v7934_v43, 1  ;;  %v10116_v17 = vld [vmem:[%s11986_s3 + $0xb0] sm:$0xff]   ;;  %v3857_v43 = vrot.slane %v10968_v15, 1  ;;  %v10121_v15 = vld [vmem:[%s11986_s3 + $0x118] sm:$0xff]  }
 0x1ee   : > { %9124 = vmatpush3.bf16.msra.mxu1 %v10104_v52  ;;  %9355 = vmatprep.subr.bf16.mxu0 %v10106_v10  ;;  %v11357_v52 = vld [vmem:[#allocation2 + $0x50] sm:$0xff]  }
 0x1ef   : > { %9125 = vmatprep.subr.bf16.mxu1 %v10107_v57  ;;  %v3855_v13 = vrot.slane %v11357_v52, 1 }
 0x1f1   : > { %9356 = vmatpush3.bf16.msra.mxu0 %v10106_v10  ;;  %v3854_v10 = vsel %vm1565_vm5, %v3851_v55, %v3853_v27  ;;  %v3856_v33 = vsel %vm1565_vm5, %v3853_v27, %v3855_v13  ;;  %v10118_v55 = vld [vmem:[%s11986_s3 + $0x110] sm:$0xff]   ;;  %v4031_v27 = vshrl.u32 %v11304_v31, 16 }
 0x1f2   : > { %9126 = vmatpush3.bf16.msra.mxu1 %v10107_v57  ;;  %9357 = vmatprep.subr.bf16.mxu0 %v10109_v0  ;;  %v5682_v57 = vsel %vm1565_vm5, %v5680_v39, %v5681_v11  ;;  %v4034_v39 = vshll.u32 %v11304_v31, 16  ;;  %v10122_v31 = vld [vmem:[%s11986_s3 + $0xc0] sm:$0xff]  }
 0x1f3   : > { %9139 = vmatprep.subr.bf16.mxu1 %v10111_v44 }
 0x1f4   : > { %9346 = vmatmul.mubr.bf16.gmra.mrb[44].mxu0 %v5512_v42  ;;  %v3858_v42 = vsel %vm1565_vm5, %v3855_v13, %v3857_v43  ;;  %v5683_v13 = vrot.slane %v11273_v58, 1  ;;  %v10125_v58 = vld [vmem:[%s11986_s3 + $0xc8] sm:$0xff]  }
 0x1f5   : > { %9128 = vmatmul.mubr.bf16.vlgmr.msra.gmra.mrb[48].mxu1 %v3854_v10  ;;  %9358 = vmatpush3.bf16.msra.mxu0 %v10109_v0  ;;  %v3859_v0 = vrot.slane %v10976_v12, 1  ;;  %v4041_v10 = vrot.slane %v4039_v14, 1 }
 0x1f6   : > { %9365 = vmatprep.mubr.bf16.mxu0 %v5682_v57  ;;  %9131 = vmatprep.mubr.bf16.mxu1 %v3856_v33  ;;  %v4044_v57 = vrot.slane %v4042_v23, 2  ;;  %v4036_v33 = vrot.slane %v4034_v39, 2  ;;  %v5684_v23 = vsel %vm1565_vm5, %v5681_v11, %v5683_v13 }
 0x1f7   : > { %9140 = vmatpush3.bf16.msra.mxu1 %v10111_v44  ;;  %9359 = vmatprep.subr.bf16.mxu0 %v10114_v16  ;;  %v10120_v44 = vld [vmem:[%s11986_s3 + $0xb8] sm:$0xff]   ;;  %v3860_v24 = vsel %vm1565_vm5, %v3857_v43, %v3859_v0  ;;  %v5685_v43 = vrot.slane %v11284_v20, 1  ;;  %v10126_v20 = vld [vmem:[%s11986_s3 + $0x128] sm:$0xff]  }
 0x1f8   : > { %9141 = vmatprep.subr.bf16.mxu1 %v10115_v21  ;;  %v11400_v14 = vor.u32 %v4044_v57, %v4041_v10  ;;  %v4057_v10 = vshrl.u32 %v11357_v52, 16 }
 0x1f9   : > { %9360 = vmatpush3.bf16.msra.mxu0 %v10114_v16  ;;  %v10123_v16 = vld [vmem:[#allocation2 + $0x68] ss:$0 sps:$4 sm:$0x11]   ;;  %v5686_v39 = vsel %vm1565_vm5, %v5683_v13, %v5685_v43  ;;  %v10239_v13 = vld [vmem:[#allocation2 + $0x6c] sm:$0xf] }
 0x1fa   : > { %9361 = vmatprep.subr.bf16.mxu0 %v10116_v17  ;;  %v3861_v6 = vrot.slane %v10123_v16, 1  ;;  %v4051_v16 = vshll.u32 %v11353_v9, 16 }
 0x1fb   : > { %9142 = vmatpush3.bf16.msra.mxu1 %v10115_v21  ;;  %v4033_v21 = vrot.slane %v4031_v27, 1 }
 0x1fc   : > { %9143 = vmatprep.subr.bf16.mxu1 %v10118_v55  ;;  %v3862_v27 = vsel %vm1565_vm5, %v3859_v0, %v3861_v6  ;;  %v10127_v6 = vld [vmem:[%s11986_s3 + $0xd0] sm:$0xff]  }
 0x1fd   : > { %9132 = vmatmul.mubr.bf16.gmra.mrb[52].mxu1 %v3858_v42  ;;  %9362 = vmatpush3.bf16.msra.mxu0 %v10116_v17  ;;  %v10124_v17 = vld [vmem:[%s11986_s3 + $0x120] sm:$0xff]   ;;  %v10128_v0 = vld [vmem:[%s11986_s3 + $0x130] sm:$0xff]   ;;  %v5689_v42 = vrot.slane %v11310_v45, 1 }
 0x1fe   : > { %9135 = vmatprep.mubr.bf16.mxu1 %v3860_v24  ;;  %9363 = vmatprep.subr.bf16.mxu0 %v10120_v44  ;;  %v5840_v24 = vld [vmem:[#allocation2 + $0x68] sm:$0xe] }
 0x1ff   : > { %9144 = vmatpush3.bf16.msra.mxu1 %v10118_v55  ;;  %v4037_v55 = vor.u32 %v4036_v33, %v4033_v21  ;;  %v11433_v21 = vcombine.low %v5840_v24, %v10239_v13  ;;  %v4053_v33 = vrot.slane %v4051_v16, 2 }
 0x200   : > { %9145 = vmatprep.subr.bf16.mxu1 %v10121_v15 }
 0x201   : > { %9364 = vmatpush3.bf16.msra.mxu0 %v10120_v44  ;;  %v4046_v11 = vsel %vm1970_vm2, %v4037_v55, %v11400_v14  ;;  %v5687_v44 = vrot.slane %v11297_v59, 1  ;;  %v4060_v59 = vshll.u32 %v11357_v52, 16  ;;  %v10131_v55 = vld [vmem:[%s11986_s3 + $0xe0] sm:$0xff]  }
 0x202   : > { %9377 = vmatprep.subr.bf16.mxu0 %v10122_v31 }
 0x203   : > { %9146 = vmatpush3.bf16.msra.mxu1 %v10121_v15  ;;  %v4048_v15 = vshrl.u32 %v11353_v9, 16  ;;  %v5688_v57 = vsel %vm1565_vm5, %v5685_v43, %v5687_v44  ;;  %v5690_v45 = vsel %vm1565_vm5, %v5687_v44, %v5689_v42  ;;  %v10130_v9 = vld [vmem:[%s11986_s3 + $0x138] sm:$0xff]   ;;  %v4062_v43 = vrot.slane %v4060_v59, 2 }
 0x204   : > { %9366 = vmatmul.mubr.bf16.vlgmr.msra.gmra.mrb[36].mxu0 %v5684_v23  ;;  %9147 = vmatprep.subr.bf16.mxu1 %v10124_v17  ;;  %v5691_v23 = vrot.slane %v11334_v48, 1 }
 0x205   : > { %9136 = vmatmul.mubr.bf16.gmra.mrb[56].mxu1 %v3862_v27  ;;  %9369 = vmatprep.mubr.bf16.mxu0 %v5686_v39  ;;  %v4050_v52 = vrot.slane %v4048_v15, 1  ;;  %v5902_v27 = vrot.slane %v11433_v21, 1  ;;  %v11443_v39 = vld [vmem:[#allocation2 + $0x70] sm:$0xff]   ;;  %v10242_v15 = vld [vmem:[#allocation2 + $0x60] sm:$0xff]  }
 0x206   : > { %9378 = vmatpush3.bf16.msra.mxu0 %v10122_v31  ;;  %9155 = vmatprep.mubr.bf16.mxu1 %v4046_v11  ;;  %v10129_v31 = vld [vmem:[%s11986_s3 + $0xd8] sm:$0xff]   ;;  %v4075_v16 = vshrl.u32 %v10242_v15, 16  ;;  %v4078_v24 = vshll.u32 %v10242_v15, 16 }
 0x207   : > { %9148 = vmatpush3.bf16.msra.mxu1 %v10124_v17  ;;  %9379 = vmatprep.subr.bf16.mxu0 %v10125_v58  ;;  %v4059_v17 = vrot.slane %v4057_v10, 1  ;;  %v4054_v11 = vor.u32 %v4053_v33, %v4050_v52  ;;  %v5692_v10 = vsel %vm1565_vm5, %v5689_v42, %v5691_v23 }
 0x208   : > { %9149 = vmatprep.subr.bf16.mxu1 %v10126_v20  ;;  %v4077_v33 = vrot.slane %v4075_v16, 1 }
 0x209   : > { %v4063_v44 = vor.u32 %v4062_v43, %v4059_v17  ;;  %v4080_v17 = vrot.slane %v4078_v24, 2  ;;  %v10137_v43 = vld [vmem:[%s11986_s3 + $0xf0] sm:$0xff]   ;;  %v10142_v24 = vld [vmem:[%s11986_s3 + $0x100] sm:$0xff]  }
 0x20a   : > { %9380 = vmatpush3.bf16.msra.mxu0 %v10125_v58  ;;  %v10132_v58 = vld [vmem:[%s11986_s3 + $0x140] sm:$0xff]  }
 0x20b   : > { %9150 = vmatpush3.bf16.msra.mxu1 %v10126_v20  ;;  %9381 = vmatprep.subr.bf16.mxu0 %v10127_v6  ;;  %v5903_v20 = vrot.slane %v11443_v39, 1  ;;  %v4064_v42 = vsel %vm1970_vm2, %v4054_v11, %v4063_v44 }
 0x20c   : > { %9370 = vmatmul.mubr.bf16.gmra.mrb[40].mxu0 %v5688_v57  ;;  %9151 = vmatprep.subr.bf16.mxu1 %v10128_v0  ;;  %v10135_v57 = vld [vmem:[%s11986_s3 + $0xe8] sm:$0xff]  }
 0x20d   : > { %9373 = vmatprep.mubr.bf16.mxu0 %v5690_v45  ;;  %v5904_v59 = vsel %vm1565_vm5, %v5902_v27, %v5903_v20  ;;  %v4055_v45 = vsel %vm1970_vm2, %v11400_v14, %v4054_v11  ;;  %v10138_v14 = vld [vmem:[%s11986_s3 + $0x150] sm:$0xff]   ;;  %v4081_v11 = vor.u32 %v4080_v17, %v4077_v33  ;;  %v10148_v17 = vld [vmem:[%s11986_s3 + $0x168] sm:$0xff]  }
 0x20e   : > { %9382 = vmatpush3.bf16.msra.mxu0 %v10127_v6  ;;  %v10241_v6 = vld [vmem:[#allocation2 + $0x58] sm:$0xff]  }
 0x20f   : > { %9152 = vmatpush3.bf16.msra.mxu1 %v10128_v0  ;;  %9383 = vmatprep.subr.bf16.mxu0 %v10129_v31  ;;  %v4066_v48 = vshrl.u32 %v10241_v6, 16  ;;  %v4069_v0 = vshll.u32 %v10241_v6, 16  ;;  %v10140_v6 = vld [vmem:[%s11986_s3 + $0x158] sm:$0xff]  }
 0x210   : > { %9153 = vmatprep.subr.bf16.mxu1 %v10130_v9 }
 0x211   : > { %v4068_v13 = vrot.slane %v4066_v48, 1  ;;  %v4071_v52 = vrot.slane %v4069_v0, 2 }
 0x212   : > { %9384 = vmatpush3.bf16.msra.mxu0 %v10129_v31  ;;  %v10136_v31 = vld [vmem:[%s11986_s3 + $0x148] sm:$0xff]  }
 0x213   : > { %9154 = vmatpush3.bf16.msra.mxu1 %v10130_v9  ;;  %9385 = vmatprep.subr.bf16.mxu0 %v10131_v55  ;;  %v11459_v9 = vld [vmem:[#allocation2 + $0x68] ss:$0 sps:$4 sm:$0x33]   ;;  %v4072_v27 = vor.u32 %v4071_v52, %v4068_v13 }
 0x214   : > { %9374 = vmatmul.mubr.bf16.gmra.mrb[44].mxu0 %v5692_v10  ;;  %9167 = vmatprep.subr.bf16.mxu1 %v10132_v58  ;;  %v4084_v23 = vshrl.u32 %v11459_v9, 16  ;;  %v11480_v10 = vld [vmem:[#allocation2 + $0x78] sm:$0xff]   ;;  %v10147_v13 = vld [vmem:[%s11986_s3 + $0x108] sm:$0xff]  }
 0x215   : > { %9393 = vmatprep.mubr.bf16.mxu0 %v5904_v59  ;;  %v4073_v48 = vsel %vm1970_vm2, %v4063_v44, %v4072_v27  ;;  %v4082_v16 = vsel %vm1970_vm2, %v4072_v27, %v4081_v11  ;;  %v5905_v59 = vrot.slane %v11480_v10, 1  ;;  %v10144_v44 = vld [vmem:[%s11986_s3 + $0x160] sm:$0xff]  }
 0x216   : > { %9156 = vmatmul.mubr.bf16.vlgmr.msra.gmra.mrb[48].mxu1 %v4055_v45  ;;  %9386 = vmatpush3.bf16.msra.mxu0 %v10131_v55  ;;  %v4087_v55 = vshll.u32 %v11459_v9, 16  ;;  %v4086_v0 = vrot.slane %v4084_v23, 1  ;;  %v10151_v23 = vld [vmem:[%s11986_s3 + $0x170] sm:$0xff]   ;;  %v11514_v27 = vld [vmem:[%s11988_s5] ss:$0 sm:$0xff] }
 0x217   : > { %9159 = vmatprep.mubr.bf16.mxu1 %v4064_v42  ;;  %9168 = vmatpush3.bf16.msra.mxu1 %v10132_v58  ;;  %v10139_v58 = vld [vmem:[%s11986_s3 + $0xf8] sm:$0xff]   ;;  %v5906_v42 = vsel %vm1565_vm5, %v5903_v20, %v5905_v59  ;;  %v11501_v20 = vld [vmem:[#allocation2 + $0x88] sm:$0xff]  }
 0x218   : > { %9387 = vmatprep.subr.bf16.mxu0 %v10135_v57  ;;  %9169 = vmatprep.subr.bf16.mxu1 %v10136_v31  ;;  %v4089_v15 = vrot.slane %v4087_v55, 2  ;;  %v6083_v55 = vshrl.u32 %v11433_v21, 16 }
 0x21a   : > { %9388 = vmatpush3.bf16.msra.mxu0 %v10135_v57  ;;  %v4090_v57 = vor.u32 %v4089_v15, %v4086_v0  ;;  %v1038_v0 = vadd.f32 %v10795_v61, %v11514_v27 }
 0x21b   : > { %9170 = vmatpush3.bf16.msra.mxu1 %v10136_v31  ;;  %9389 = vmatprep.subr.bf16.mxu0 %v10137_v43  ;;  %v11486_v31 = vld [vmem:[#allocation2 + $0x80] sm:$0xff]  }
 0x21c   : > { %9171 = vmatprep.subr.bf16.mxu1 %v10138_v14  ;;  %v5907_v45 = vrot.slane %v11486_v31, 1  ;;  %v4091_v52 = vsel %vm1970_vm2, %v4081_v11, %v4090_v57 }
 0x21e   : > { %9160 = vmatmul.mubr.bf16.gmra.mrb[52].mxu1 %v4073_v48  ;;  %9390 = vmatpush3.bf16.msra.mxu0 %v10137_v43  ;;  %v5908_v33 = vsel %vm1565_vm5, %v5905_v59, %v5907_v45  ;;  %v5909_v43 = vrot.slane %v11501_v20, 1  ;;  %v6094_v48 = vshll.u32 %v11443_v39, 16  ;;  %v6085_v59 = vrot.slane %v6083_v55, 1 }
 0x21f   : > { %9163 = vmatprep.mubr.bf16.mxu1 %v4082_v16  ;;  %9172 = vmatpush3.bf16.msra.mxu1 %v10138_v14  ;;  %v10150_v14 = vld [vmem:[%s11986_s3 + $0x110] sm:$0xff]   ;;  %v10153_v16 = vld [vmem:[%s11986_s3 + $0x118] sm:$0xff]  }
 0x220   : > { %9391 = vmatprep.subr.bf16.mxu0 %v10139_v58  ;;  %9173 = vmatprep.subr.bf16.mxu1 %v10140_v6  ;;  %v5910_v15 = vsel %vm1565_vm5, %v5907_v45, %v5909_v43  ;;  %v6096_v61 = vrot.slane %v6094_v48, 2  ;;  %v1030_v45 = vadd.f32 %v11514_v27, %v10802_v30  ;;  %v10156_v30 = vld [vmem:[%s11986_s3 + $0x120] sm:$0xff]  }
 0x222   : > { %9392 = vmatpush3.bf16.msra.mxu0 %v10139_v58  ;;  %v6086_v58 = vshll.u32 %v11433_v21, 16  ;;  %v10154_v21 = vld [vmem:[%s11986_s3 + $0x178] sm:$0xff]  }
 0x223   : > { %9174 = vmatpush3.bf16.msra.mxu1 %v10140_v6  ;;  %9405 = vmatprep.subr.bf16.mxu0 %v10142_v24  ;;  %v6091_v6 = vshrl.u32 %v11443_v39, 16 }
 0x224   : > { %9175 = vmatprep.subr.bf16.mxu1 %v10144_v44 }
 0x225   : > { %9394 = vmatmul.mubr.bf16.vlgmr.msra.gmra.mrb[36].mxu0 %v5906_v42  ;;  %v6093_v57 = vrot.slane %v6091_v6, 1 }
 0x226   : > { %9164 = vmatmul.mubr.bf16.gmra.mrb[56].mxu1 %v4091_v52  ;;  %9397 = vmatprep.mubr.bf16.mxu0 %v5908_v33 }
 0x227   : > { %9406 = vmatpush3.bf16.msra.mxu0 %v10142_v24  ;;  %9176 = vmatpush3.bf16.msra.mxu1 %v10144_v44  ;;  %v10155_v24 = vld [vmem:[#allocation2 + $0x98] ss:$0 sps:$4 sm:$0x11]   ;;  %v6088_v44 = vrot.slane %v6086_v58, 2  ;;  %v11550_v48 = vor.u32 %v6096_v61, %v6093_v57  ;;  %v1049_v57 = vadd.f32 %v11514_v27, %v10861_v5  ;;  %v6103_v5 = vshll.u32 %v11480_v10, 16 }
 0x228   : > { %9183 = vmatprep.mubr.bf16.mxu1 %v10916_v35  ;;  %9407 = vmatprep.subr.bf16.mxu0 %v10147_v13  ;;  %v11516_v35 = vld [vmem:[#allocation2 + $0x90] sm:$0xff]   ;;  %v5913_v58 = vrot.slane %v10155_v24, 1  ;;  %v1054_v24 = vadd.f32 %v10846_v46, %v11514_v27 }
 0x229   : > { %9177 = vmatprep.subr.bf16.mxu1 %v10148_v17  ;;  %v5911_v11 = vrot.slane %v11516_v35, 1  ;;  %v6089_v6 = vor.u32 %v6088_v44, %v6085_v59 }
 0x22b   : > { %9408 = vmatpush3.bf16.msra.mxu0 %v10147_v13  ;;  %9178 = vmatpush3.bf16.msra.mxu1 %v10148_v17  ;;  %v5912_v39 = vsel %vm1565_vm5, %v5909_v43, %v5911_v11  ;;  %v1041_v13 = vadd.f32 %v10805_v63, %v11514_v27  ;;  %v1033_v17 = vadd.f32 %v11514_v27, %v10810_v51  ;;  %v10157_v63 = vld [vmem:[%s11986_s3 + $0x180] sm:$0xff]  }
 0x22c   : > { %9409 = vmatprep.subr.bf16.mxu0 %v10150_v14  ;;  %9179 = vmatprep.subr.bf16.mxu1 %v10151_v23  ;;  %v6098_v59 = vsel %vm1970_vm2, %v6089_v6, %v11550_v48 }
 0x22d   : > { %9398 = vmatmul.mubr.bf16.gmra.mrb[40].mxu0 %v5910_v15  ;;  %v10158_v15 = vld [vmem:[%s11986_s3 + $0x128] sm:$0xff]  }
 0x22e   : > { %9401 = vmatprep.mubr.bf16.mxu0 %v5912_v39  ;;  %v8863_v42 = vpop.f32.mrb[36].mxu1  ;;  %v1057_v39 = vadd.f32 %v10855_v28, %v11514_v27 }
 0x22f   : > { %9410 = vmatpush3.bf16.msra.mxu0 %v10150_v14  ;;  %9180 = vmatpush3.bf16.msra.mxu1 %v10151_v23  ;;  %v11536_v52 = vadd.f32 %v8863_v42, %v1038_v0  ;;  %v1890_v33 = vpop.f32.mrb[37].mxu1  ;;  %v5914_v0 = vsel %vm1565_vm5, %v5911_v11, %v5913_v58  ;;  %v1046_v11 = vadd.f32 %v11514_v27, %v10852_v40  ;;  %v6100_v42 = vshrl.u32 %v11480_v10, 16  ;;  %v4419_v58 = vld [vmem:[#allocation2 + $0x40] sm:$0xc]  ;;  %v10163_v10 = vld [vmem:[%s11986_s3 + $0x198] sm:$0xff]  }
 0x230   : > { %9411 = vmatprep.subr.bf16.mxu0 %v10153_v16  ;;  %9181 = vmatprep.subr.bf16.mxu1 %v10154_v21  ;;  %v11540_v43 = vadd.f32 %v1890_v33, %v1030_v45  ;;  %v8864_v55 = vpop.f32.mrb[38].mxu1  ;;  %v6109_v33 = vshrl.u32 %v11486_v31, 16 }
 0x231   : > { %v11548_v14 = vadd.f32 %v8864_v55, %v1041_v13  ;;  %v1893_v23 = vpop.f32.mrb[39].mxu1  ;;  %v10162_v55 = vld [vmem:[%s11986_s3 + $0x138] sm:$0xff]  }
 0x232   : > { %v11552_v51 = vadd.f32 %v1893_v23, %v1033_v17  ;;  %v6112_v17 = vshll.u32 %v11486_v31, 16  ;;  %v6105_v23 = vrot.slane %v6103_v5, 2  ;;  %v1062_v31 = vadd.f32 %v11514_v27, %v10872_v62 }
 0x233   : > { %9412 = vmatpush3.bf16.msra.mxu0 %v10153_v16  ;;  %9182 = vmatpush3.bf16.msra.mxu1 %v10154_v21  ;;  %v10159_v16 = vld [vmem:[%s11986_s3 + $0x188] sm:$0xff]   ;;  %v1065_v62 = vadd.f32 %v11514_v27, %v10886_v18  ;;  %v10165_v18 = vld [vmem:[%s11986_s3 + $0x1a0] sm:$0xff]  }
 0x234   : > { %9413 = vmatprep.subr.bf16.mxu0 %v10156_v30  ;;  %9195 = vmatprep.subr.bf16.mxu1 %v10157_v63 }
 0x235   : > { %9402 = vmatmul.mubr.bf16.gmra.mrb[44].mxu0 %v5914_v0  ;;  %v6111_v0 = vrot.slane %v6109_v33, 1  ;;  %v11629_v33 = vld [vmem:[#allocation2 + $0x48] sm:$0xff]  }
 0x236   : > { %9184 = vmatmul.mubr.bf16.vlgmr.msra.gmra.mrb[48].mxu1 %v10905_v32  ;;  %9421 = vmatprep.mubr.bf16.mxu0 %v6098_v59  ;;  %v8867_v21 = vpop.f32.mrb[40].mxu1  ;;  %v10160_v32 = vld [vmem:[%s11986_s3 + $0x130] sm:$0xff]  }
 0x237   : > { %9414 = vmatpush3.bf16.msra.mxu0 %v10156_v30  ;;  %9187 = vmatprep.mubr.bf16.mxu1 %v10910_v50  ;;  %v11571_v46 = vadd.f32 %v8867_v21, %v1054_v24  ;;  %v1906_v44 = vpop.f32.mrb[41].mxu1  ;;  %v10161_v50 = vld [vmem:[%s11986_s3 + $0x190] sm:$0xff]   ;;  %v1070_v30 = vadd.f32 %v10870_v37, %v11514_v27  ;;  %v1073_v24 = vadd.f32 %v10876_v2, %v11514_v27  ;;  %v10164_v2 = vld [vmem:[%s11986_s3 + $0x140] sm:$0xff]   ;;  %v6121_v27 = vshll.u32 %v11501_v20, 16 }
 0x238   : > { %9196 = vmatpush3.bf16.msra.mxu1 %v10157_v63  ;;  %9415 = vmatprep.subr.bf16.mxu0 %v10158_v15  ;;  %v11575_v61 = vadd.f32 %v1906_v44, %v1046_v11  ;;  %v8868_v40 = vpop.f32.mrb[42].mxu1  ;;  %v6102_v63 = vrot.slane %v6100_v42, 1  ;;  %v6130_v42 = vshll.u32 %v11516_v35, 16 }
 0x239   : > { %9197 = vmatprep.subr.bf16.mxu1 %v10159_v16  ;;  %v11580_v28 = vadd.f32 %v8868_v40, %v1057_v39  ;;  %v1909_v45 = vpop.f32.mrb[43].mxu1  ;;  %v4270_v40 = vrot.slane %v11459_v9, 2  ;;  %v4482_v9 = vrot.slane %v11629_v33, 2 }
 0x23a   : > { %v11587_v13 = vadd.f32 %v1909_v45, %v1049_v57  ;;  %v6106_v57 = vor.u32 %v6105_v23, %v6102_v63  ;;  %v6123_v63 = vrot.slane %v6121_v27, 2  ;;  %v10177_v27 = vld [vmem:[%s11986_s3 + $0x1c0] sm:$0xff]  }
 0x23b   : > { %9416 = vmatpush3.bf16.msra.mxu0 %v10158_v15  ;;  %v6114_v15 = vrot.slane %v6112_v17, 2 }
 0x23c   : > { %9198 = vmatpush3.bf16.msra.mxu1 %v10159_v16  ;;  %9417 = vmatprep.subr.bf16.mxu0 %v10160_v32  ;;  %v10247_v16 = vld [vmem:[#allocation2 + $0x44] sm:$0xf] }
 0x23d   : > { %9199 = vmatprep.subr.bf16.mxu1 %v10161_v50  ;;  %v11607_v11 = vcombine.low %v4419_v58, %v10247_v16  ;;  %v6115_v45 = vor.u32 %v6114_v15, %v6111_v0  ;;  %v11994_v58 = vrot.slane %v10976_v12, 2  ;;  %v6132_v12 = vrot.slane %v6130_v42, 2  ;;  %v10171_v15 = vld [vmem:[%s11986_s3 + $0x1b0] sm:$0xff]  }
 0x23e   : > { %9188 = vmatmul.mubr.bf16.gmra.mrb[52].mxu1 %v11103_v26  ;;  %v8871_v6 = vpop.f32.mrb[44].mxu1 }
 0x23f   : > { %9418 = vmatpush3.bf16.msra.mxu0 %v10160_v32  ;;  %9191 = vmatprep.mubr.bf16.mxu1 %v10997_v36  ;;  %v11605_v37 = vadd.f32 %v8871_v6, %v1070_v30  ;;  %v1922_v59 = vpop.f32.mrb[45].mxu1  ;;  %v6118_v36 = vshrl.u32 %v11501_v20, 16  ;;  %v4481_v5 = vrot.slane %v11607_v11, 2  ;;  %v6107_v20 = vsel %vm1970_vm2, %v11550_v48, %v6106_v57  ;;  %v10170_v6 = vld [vmem:[%s11986_s3 + $0x150] sm:$0xff]  }
 0x240   : > { %9200 = vmatpush3.bf16.msra.mxu1 %v10161_v50  ;;  %9419 = vmatprep.subr.bf16.mxu0 %v10162_v55  ;;  %v11611_v26 = vadd.f32 %v1922_v59, %v1062_v31  ;;  %v8872_v21 = vpop.f32.mrb[46].mxu1  ;;  %v6127_v50 = vshrl.u32 %v11516_v35, 16  ;;  %v4271_v30 = vsel %vm2201_vm4, %v11994_v58, %v4270_v40  ;;  %v10168_v35 = vld [vmem:[%s11986_s3 + $0x148] sm:$0xff]   ;;  %v6116_v48 = vsel %vm1970_vm2, %v6106_v57, %v6115_v45  ;;  %v10175_v40 = vld [vmem:[%s11986_s3 + $0x160] sm:$0xff]  }
 0x241   : > { %9201 = vmatprep.subr.bf16.mxu1 %v10163_v10  ;;  %v11617_v39 = vadd.f32 %v8872_v21, %v1073_v24  ;;  %v1925_v44 = vpop.f32.mrb[47].mxu1  ;;  %v6120_v17 = vrot.slane %v6118_v36, 1  ;;  %v4483_v31 = vsel %vm2201_vm4, %v4481_v5, %v4482_v9  ;;  %v11673_v5 = vld [vmem:[#allocation2 + $0x58] sm:$0xff]  }
 0x242   : > { %v11624_v32 = vadd.f32 %v1925_v44, %v1065_v62  ;;  %v6129_v23 = vrot.slane %v6127_v50, 1  ;;  %v10172_v62 = vld [vmem:[%s11986_s3 + $0x158] sm:$0xff]  }
 0x243   : > { %9420 = vmatpush3.bf16.msra.mxu0 %v10162_v55  ;;  %v10169_v55 = vld [vmem:[%s11986_s3 + $0x1a8] sm:$0xff]   ;;  %v6124_v0 = vor.u32 %v6123_v63, %v6120_v17  ;;  %v4486_v17 = vrot.slane %v11673_v5, 2  ;;  %v4662_v63 = vshrl.u32 %v11607_v11, 16 }
 0x244   : > { %9202 = vmatpush3.bf16.msra.mxu1 %v10163_v10  ;;  %9433 = vmatprep.subr.bf16.mxu0 %v10164_v2  ;;  %v11643_v10 = vld [vmem:[#allocation2 + $0x98] ss:$0 sps:$4 sm:$0x33]   ;;  %v6133_v16 = vor.u32 %v6132_v12, %v6129_v23  ;;  %v10184_v23 = vld [vmem:[%s11986_s3 + $0x1d0] sm:$0xff]   ;;  %v11696_v12 = vld [vmem:[#allocation2 + $0x68] sm:$0xff]  }
 0x245   : > { %9203 = vmatprep.subr.bf16.mxu1 %v10165_v18  ;;  %v6136_v24 = vshrl.u32 %v11643_v10, 16  ;;  %v6139_v59 = vshll.u32 %v11643_v10, 16  ;;  %v6125_v21 = vsel %vm1970_vm2, %v6115_v45, %v6124_v0  ;;  %v11669_v45 = vld [vmem:[#allocation2 + $0x50] sm:$0xff]  }
 0x246   : > { %9422 = vmatmul.mubr.bf16.vlgmr.msra.gmra.mrb[36].mxu0 %v6107_v20  ;;  %9192 = vmatmul.mubr.bf16.gmra.mrb[56].mxu1 %v4271_v30  ;;  %v6134_v57 = vsel %vm1970_vm2, %v6124_v0, %v6133_v16  ;;  %v4484_v50 = vrot.slane %v11669_v45, 2  ;;  %v10180_v20 = vld [vmem:[%s11986_s3 + $0x168] sm:$0xff]   ;;  %v4673_v0 = vshll.u32 %v11629_v33, 16 }
 0x247   : > { %9425 = vmatprep.mubr.bf16.mxu0 %v6116_v48  ;;  %9434 = vmatpush3.bf16.msra.mxu0 %v10164_v2  ;;  %v10173_v2 = vld [vmem:[%s11986_s3 + $0x1b8] sm:$0xff]   ;;  %v6138_v36 = vrot.slane %v6136_v24, 1  ;;  %v6141_v44 = vrot.slane %v6139_v59, 2  ;;  %v10181_v30 = vld [vmem:[%s11986_s3 + $0x1c8] sm:$0xff]   ;;  %v4664_v24 = vrot.slane %v4662_v63, 2 }
 0x248   : > { %9204 = vmatpush3.bf16.msra.mxu1 %v10165_v18  ;;  %9211 = vmatprep.mubr.bf16.mxu1 %v4483_v31  ;;  %v4485_v58 = vsel %vm2201_vm4, %v4482_v9, %v4484_v50  ;;  %v11689_v9 = vld [vmem:[#allocation2 + $0x60] sm:$0xff]   ;;  %v4490_v31 = vrot.slane %v11696_v12, 2 }
 0x249   : > { %9435 = vmatprep.subr.bf16.mxu0 %v10168_v35  ;;  %9205 = vmatprep.subr.bf16.mxu1 %v10169_v55  ;;  %v6142_v18 = vor.u32 %v6141_v44, %v6138_v36  ;;  %v4488_v48 = vrot.slane %v11689_v9, 2 }
 0x24b   : > { %9436 = vmatpush3.bf16.msra.mxu0 %v10168_v35  ;;  %v6143_v42 = vsel %vm1970_vm2, %v6133_v16, %v6142_v18  ;;  %v4487_v35 = vsel %vm2201_vm4, %v4484_v50, %v4486_v17  ;;  %v4489_v59 = vsel %vm2201_vm4, %v4486_v17, %v4488_v48  ;;  %v10187_v16 = vld [vmem:[%s11986_s3 + $0x1d8] sm:$0xff]   ;;  %v10188_v18 = vld [vmem:[%s11986_s3 + $0x180] sm:$0xff]  }
 0x24c   : > { %9206 = vmatpush3.bf16.msra.mxu1 %v10169_v55  ;;  %9437 = vmatprep.subr.bf16.mxu0 %v10170_v6  ;;  %v10182_v55 = vld [vmem:[%s11986_s3 + $0x170] sm:$0xff]  }
 0x24d   : > { %9207 = vmatprep.subr.bf16.mxu1 %v10171_v15 }
 0x24e   : > { %9426 = vmatmul.mubr.bf16.gmra.mrb[40].mxu0 %v6125_v21 }
 0x24f   : > { %9429 = vmatprep.mubr.bf16.mxu0 %v6134_v57  ;;  %9438 = vmatpush3.bf16.msra.mxu0 %v10170_v6  ;;  %v4670_v6 = vshrl.u32 %v11629_v33, 16  ;;  %v4491_v33 = vsel %vm2201_vm4, %v4488_v48, %v4490_v31  ;;  %v4675_v57 = vrot.slane %v4673_v0, 3  ;;  %v4682_v0 = vshll.u32 %v11669_v45, 16 }
 0x250   : > { %9208 = vmatpush3.bf16.msra.mxu1 %v10171_v15  ;;  %9439 = vmatprep.subr.bf16.mxu0 %v10172_v62  ;;  %v10186_v15 = vld [vmem:[%s11986_s3 + $0x178] sm:$0xff]  }
 0x251   : > { %9209 = vmatprep.subr.bf16.mxu1 %v10173_v2  ;;  %v4672_v44 = vrot.slane %v4670_v6, 2  ;;  %v4679_v6 = vshrl.u32 %v11669_v45, 16  ;;  %v4688_v45 = vshrl.u32 %v11673_v5, 16 }
 0x253   : > { %9440 = vmatpush3.bf16.msra.mxu0 %v10172_v62  ;;  %v10189_v62 = vld [vmem:[#allocation2 + $0x70] ss:$0 sps:$4 sm:$0x33]  }
 0x254   : > { %9210 = vmatpush3.bf16.msra.mxu1 %v10173_v2  ;;  %9441 = vmatprep.subr.bf16.mxu0 %v10175_v40  ;;  %v4492_v17 = vrot.slane %v10189_v62, 2 }
 0x255   : > { %9223 = vmatprep.subr.bf16.mxu1 %v10177_v27 }
 0x256   : > { %9430 = vmatmul.mubr.bf16.gmra.mrb[44].mxu0 %v6143_v42 }
 0x257   : > { %9212 = vmatmul.mubr.bf16.vlgmr.msra.gmra.mrb[48].mxu1 %v4485_v58  ;;  %9442 = vmatpush3.bf16.msra.mxu0 %v10175_v40 }
 0x258   : > { %9449 = vmatprep.mubr.bf16.mxu0 %v11009_v8  ;;  %9215 = vmatprep.mubr.bf16.mxu1 %v4487_v35  ;;  %v4665_v8 = vshll.u32 %v11607_v11, 16  ;;  %v10192_v35 = vld [vmem:[%s11986_s3 + $0x1e8] sm:$0xff]  }
 0x259   : > { %9224 = vmatpush3.bf16.msra.mxu1 %v10177_v27  ;;  %9443 = vmatprep.subr.bf16.mxu0 %v10180_v20 }
 0x25a   : > { %9225 = vmatprep.subr.bf16.mxu1 %v10181_v30  ;;  %v4667_v21 = vrot.slane %v4665_v8, 3 }
 0x25b   : > { %9444 = vmatpush3.bf16.msra.mxu0 %v10180_v20  ;;  %v10190_v20 = vld [vmem:[%s11986_s3 + $0x1e0] sm:$0xff]  }
 0x25c   : > { %9445 = vmatprep.subr.bf16.mxu0 %v10182_v55  ;;  %v4668_v58 = vor.u32 %v4667_v21, %v4664_v24  ;;  %v10196_v24 = vld [vmem:[%s11986_s3 + $0x1f8] sm:$0xff]   ;;  %v4681_v21 = vrot.slane %v4679_v6, 2 }
 0x25d   : > { %9226 = vmatpush3.bf16.msra.mxu1 %v10181_v30  ;;  %v11721_v30 = vor.u32 %v4675_v57, %v4672_v44  ;;  %v6322_v57 = vrot.slane %v11643_v10, 2  ;;  %v10198_v10 = vld [vmem:[%s11986_s3 + $0x200] sm:$0xff]  }
 0x25e   : > { %9227 = vmatprep.subr.bf16.mxu1 %v10184_v23  ;;  %v9003_v11 = vpop.f32.mrb[24].mxu0 }
 0x25f   : > { %9216 = vmatmul.mubr.bf16.gmra.mrb[52].mxu1 %v4489_v59  ;;  %9446 = vmatpush3.bf16.msra.mxu0 %v10182_v55  ;;  %v9547_v2 = vadd.f32 %v11536_v52, %v9003_v11  ;;  %v2939_v36 = vpop.f32.mrb[25].mxu0  ;;  %v4677_v55 = vsel %vm2606_vm7, %v4668_v58, %v11721_v30  ;;  %v10253_v59 = vld [vmem:[#allocation2 + $0x74] sm:$0xf] }
 0x260   : > { %9219 = vmatprep.mubr.bf16.mxu1 %v4491_v33  ;;  %9447 = vmatprep.subr.bf16.mxu0 %v10186_v15  ;;  %v9004_v40 = vpop.f32.mrb[26].mxu0  ;;  %v9550_v27 = vadd.f32 %v11540_v43, %v2939_v36  ;;  %v10191_v43 = vld [vmem:[%s11986_s3 + $0x188] sm:$0xff]   ;;  %v4684_v33 = vrot.slane %v4682_v0, 3 }
 0x261   : > { %9228 = vmatpush3.bf16.msra.mxu1 %v10184_v23  ;;  %v11715_v50 = vadd.f32 %v11548_v14, %v9004_v40  ;;  %v2942_v42 = vpop.f32.mrb[27].mxu0  ;;  %v4493_v14 = vsel %vm2201_vm4, %v4490_v31, %v4492_v17  ;;  %v4700_v17 = vshll.u32 %v11689_v9, 16 }
 0x262   : > { %9229 = vmatprep.subr.bf16.mxu1 %v10187_v16  ;;  %v9556_v52 = vadd.f32 %v11552_v51, %v2942_v42  ;;  %7150 = vxpose.xlu0.b32.start [1/16] (narrow) %v9550_v27, 16  ;;  %v4685_v42 = vor.u32 %v4684_v33, %v4681_v21  ;;  %v11837_v33 = vld [vmem:[#allocation2 + $0x88] sm:$0xff]  }
 0x263   : > { %9448 = vmatpush3.bf16.msra.mxu0 %v10186_v15  ;;  %v10195_v15 = vld [vmem:[%s11986_s3 + $0x198] sm:$0xff]  }
 0x264   : > { %9461 = vmatprep.subr.bf16.mxu0 %v10188_v18 }
 0x265   : > { %9230 = vmatpush3.bf16.msra.mxu1 %v10187_v16  ;;  %v4691_v16 = vshll.u32 %v11673_v5, 16 }
 0x266   : > { %9450 = vmatmul.mubr.bf16.vlgmr.msra.gmra.mrb[36].mxu0 %v11018_v56  ;;  %9231 = vmatprep.subr.bf16.mxu1 %v10190_v20  ;;  %v9007_v51 = vpop.f32.mrb[28].mxu0 }
 0x267   : > { %9220 = vmatmul.mubr.bf16.gmra.mrb[56].mxu1 %v4493_v14  ;;  %9453 = vmatprep.mubr.bf16.mxu0 %v11025_v54  ;;  %v11735_v63 = vadd.f32 %v11571_v46, %v9007_v51  ;;  %v2955_v48 = vpop.f32.mrb[29].mxu0  ;;  %v10193_v54 = vld [vmem:[%s11986_s3 + $0x190] sm:$0xff]   ;;  %v4693_v27 = vrot.slane %v4691_v16, 3 }
 0x268   : > { %9462 = vmatpush3.bf16.msra.mxu0 %v10188_v18  ;;  %9239 = vmatprep.mubr.bf16.mxu1 %v4677_v55  ;;  %v9562_v56 = vadd.f32 %v11575_v61, %v2955_v48  ;;  %v9008_v23 = vpop.f32.mrb[30].mxu0  ;;  %v10194_v61 = vld [vmem:[%s11986_s3 + $0x1f0] sm:$0xff]   ;;  %v4690_v18 = vrot.slane %v4688_v45, 2  ;;  %v11831_v45 = vld [vmem:[#allocation2 + $0x80] sm:$0xff]  }
 0x269   : > { %9232 = vmatpush3.bf16.msra.mxu1 %v10190_v20  ;;  %9463 = vmatprep.subr.bf16.mxu0 %v10191_v43  ;;  %v11739_v8 = vadd.f32 %v11580_v28, %v9008_v23  ;;  %v2958_v31 = vpop.f32.mrb[31].mxu0  ;;  %v6471_v28 = vld [vmem:[#allocation2 + $0x70] sm:$0xc]  ;;  %v4709_v20 = vshll.u32 %v11696_v12, 16  ;;  %v6536_v16 = vrot.slane %v11831_v45, 2 }
 0x26a   : > { %7151 = vxpose.xlu0.b32.cont [2/16] (narrow) %v9556_v52, 16  ;;  %9233 = vmatprep.subr.bf16.mxu1 %v10192_v35  ;;  %v11745_v46 = vadd.f32 %v11587_v13, %v2958_v31  ;;  %v11759_v11 = vcombine.low %v6471_v28, %v10253_v59  ;;  %v4697_v52 = vshrl.u32 %v11689_v9, 16  ;;  %v4694_v14 = vor.u32 %v4693_v27, %v4690_v18  ;;  %v10201_v9 = vld [vmem:[%s11986_s3 + $0x1a8] sm:$0xff]   ;;  %v11806_v55 = vld [vmem:[#allocation2 + $0x70] ss:$0 sps:$4 sm:$0x77]  }
 0x26b   : > { %v4711_v23 = vrot.slane %v4709_v20, 3  ;;  %v10204_v31 = vld [vmem:[%s11986_s3 + $0x210] sm:$0xff]   ;;  %v4718_v6 = vshll.u32 %v11806_v55, 16 }
 0x26c   : > { %9464 = vmatpush3.bf16.msra.mxu0 %v10191_v43  ;;  %v4699_v51 = vrot.slane %v4697_v52, 2  ;;  %v4695_v48 = vsel %vm2606_vm7, %v4685_v42, %v4694_v14  ;;  %v10216_v18 = vld [vmem:[%s11986_s3 + $0x1d0] sm:$0xff]   ;;  %v6717_v52 = vshll.u32 %v11759_v11, 16 }
 0x26d   : > { %9234 = vmatpush3.bf16.msra.mxu1 %v10192_v35  ;;  %9465 = vmatprep.subr.bf16.mxu0 %v10193_v54  ;;  %v4702_v35 = vrot.slane %v4700_v17, 3  ;;  %v10217_v27 = vld [vmem:[%s11986_s3 + $0x230] sm:$0xff]  }
 0x26e   : > { %9454 = vmatmul.mubr.bf16.gmra.mrb[40].mxu0 %v11042_v25  ;;  %7152 = vxpose.xlu0.b32.cont [3/16] (narrow) %v9547_v2, 16  ;;  %v9011_v13 = vpop.f32.mrb[32].mxu0 }
 0x26f   : > { %9235 = vmatprep.subr.bf16.mxu1 %v10194_v61  ;;  %9457 = vmatprep.mubr.bf16.mxu0 %v11047_v29  ;;  %v11765_v62 = vadd.f32 %v11605_v37, %v9011_v13  ;;  %v2971_v25 = vpop.f32.mrb[33].mxu0  ;;  %v10197_v29 = vld [vmem:[%s11986_s3 + $0x1a0] sm:$0xff]   ;;  %v11777_v37 = vld [vmem:[#allocation2 + $0x78] sm:$0xff]  }
 0x270   : > { %9466 = vmatpush3.bf16.msra.mxu0 %v10193_v54  ;;  %v11768_v2 = vadd.f32 %v11611_v26, %v2971_v25  ;;  %v9012_v36 = vpop.f32.mrb[34].mxu0  ;;  %v6534_v40 = vrot.slane %v11777_v37, 2  ;;  %v4703_v54 = vor.u32 %v4702_v35, %v4699_v51  ;;  %v10210_v25 = vld [vmem:[%s11986_s3 + $0x220] sm:$0xff]   ;;  %v6722_v17 = vshrl.u32 %v11777_v37, 16 }
 0x271   : > { %9236 = vmatpush3.bf16.msra.mxu1 %v10194_v61  ;;  %9467 = vmatprep.subr.bf16.mxu0 %v10195_v15  ;;  %v11771_v44 = vadd.f32 %v11617_v39, %v9012_v36  ;;  %v2974_v5 = vpop.f32.mrb[35].mxu0  ;;  %v6533_v39 = vrot.slane %v11759_v11, 2  ;;  %v4715_v61 = vshrl.u32 %v11806_v55, 16  ;;  %v6538_v36 = vrot.slane %v11837_v33, 2 }
 0x272   : > { %7153 = vxpose.xlu0.b32.cont [4/16] (narrow) %v11715_v50, 16  ;;  %9237 = vmatprep.subr.bf16.mxu1 %v10196_v24  ;;  %v11782_v26 = vadd.f32 %v11624_v32, %v2974_v5  ;;  %v4706_v50 = vshrl.u32 %v11696_v12, 16  ;;  %v11995_v32 = vrot.slane %v11030_v1, 2  ;;  %v4686_v12 = vsel %vm2606_vm7, %v11721_v30, %v4685_v42  ;;  %v10202_v1 = vld [vmem:[%s11986_s3 + $0x208] sm:$0xff]   ;;  %v10203_v30 = vld [vmem:[%s11986_s3 + $0x1b0] sm:$0xff]  }
 0x273   : > { %v6535_v43 = vsel %vm2201_vm4, %v6533_v39, %v6534_v40  ;;  %v4704_v28 = vsel %vm2606_vm7, %v4694_v14, %v4703_v54  ;;  %v4717_v13 = vrot.slane %v4715_v61, 2  ;;  %v10213_v5 = vld [vmem:[%s11986_s3 + $0x1c8] sm:$0xff]   ;;  %v6714_v42 = vshrl.u32 %v11759_v11, 16 }
 0x274   : > { %9468 = vmatpush3.bf16.msra.mxu0 %v10195_v15  ;;  %v6323_v58 = vsel %vm2201_vm4, %v11995_v32, %v6322_v57  ;;  %v10206_v15 = vld [vmem:[%s11986_s3 + $0x218] sm:$0xff]   ;;  %v10214_v39 = vld [vmem:[%s11986_s3 + $0x228] sm:$0xff]   ;;  %v6724_v14 = vrot.slane %v6722_v17, 2 }
 0x275   : > { %9238 = vmatpush3.bf16.msra.mxu1 %v10196_v24  ;;  %9469 = vmatprep.subr.bf16.mxu0 %v10197_v29  ;;  %v4720_v24 = vrot.slane %v4718_v6, 3  ;;  %v10220_v32 = vld [vmem:[%s11986_s3 + $0x238] sm:$0xff]   ;;  %v6716_v11 = vrot.slane %v6714_v42, 2  ;;  %v10233_v17 = vld [vmem:[%s11986_s3 + $0x228] sm:$0xff]  }
 0x276   : > { %9458 = vmatmul.mubr.bf16.gmra.mrb[44].mxu0 %v6323_v58  ;;  %7154 = vxpose.xlu0.b32.cont [5/16] (narrow) %v9562_v56, 16  ;;  %v4708_v56 = vrot.slane %v4706_v50, 2  ;;  %v6725_v50 = vshll.u32 %v11777_v37, 16  ;;  %v10221_v58 = vld [vmem:[#allocation2 + $0xa0] ss:$0 sps:$4 sm:$0x33]  }
 0x277   : > { %9251 = vmatprep.subr.bf16.mxu1 %v10198_v10  ;;  %9477 = vmatprep.mubr.bf16.mxu0 %v6535_v43  ;;  %v4721_v21 = vor.u32 %v4720_v24, %v4717_v13  ;;  %v6719_v43 = vrot.slane %v6717_v52, 3 }
 0x278   : > { %9240 = vmatmul.mubr.bf16.vlgmr.msra.gmra.mrb[48].mxu1 %v4686_v12  ;;  %9470 = vmatpush3.bf16.msra.mxu0 %v10197_v29  ;;  %v4712_v0 = vor.u32 %v4711_v23, %v4708_v56  ;;  %v6539_v29 = vsel %vm2201_vm4, %v6536_v16, %v6538_v36  ;;  %v6544_v12 = vrot.slane %v10221_v58, 2  ;;  %v6731_v23 = vshrl.u32 %v11831_v45, 16 }
 0x279   : > { %9243 = vmatprep.mubr.bf16.mxu1 %v4695_v48  ;;  %9252 = vmatpush3.bf16.msra.mxu1 %v10198_v10  ;;  %v11864_v10 = vld [vmem:[#allocation2 + $0x98] sm:$0xff]   ;;  %v6720_v51 = vor.u32 %v6719_v43, %v6716_v11  ;;  %v10223_v48 = vld [vmem:[%s11986_s3 + $0x1e8] sm:$0xff]   ;;  %v11950_v11 = vld [vmem:[%s11988_s5] ss:$0 sm:$0xff] }
 0x27a   : > { %9471 = vmatprep.subr.bf16.mxu0 %v10201_v9  ;;  %7155 = vxpose.xlu0.b32.cont [6/16] (narrow) %v11745_v46, 16  ;;  %v10205_v46 = vld [vmem:[%s11986_s3 + $0x1b8] sm:$0xff]   ;;  %v4713_v59 = vsel %vm2606_vm7, %v4703_v54, %v4712_v0  ;;  %v4722_v57 = vsel %vm2606_vm7, %v4712_v0, %v4721_v21  ;;  %v6743_v54 = vshll.u32 %v11837_v33, 16 }
 0x27b   : > { %9253 = vmatprep.subr.bf16.mxu1 %v10202_v1 }
 0x27c   : > { %9472 = vmatpush3.bf16.msra.mxu0 %v10201_v9  ;;  %v6727_v9 = vrot.slane %v6725_v50, 3  ;;  %v6745_v0 = vrot.slane %v6743_v54, 3 }
 0x27d   : > { %9254 = vmatpush3.bf16.msra.mxu1 %v10202_v1  ;;  %9473 = vmatprep.subr.bf16.mxu0 %v10203_v30  ;;  %v10222_v1 = vld [vmem:[%s11986_s3 + $0x1e0] sm:$0xff]  }
 0x27e   : > { %7156 = vxpose.xlu0.b32.cont [7/16] (narrow) %v11735_v63, 16  ;;  %9255 = vmatprep.subr.bf16.mxu1 %v10204_v31  ;;  %v10208_v63 = vld [vmem:[%s11986_s3 + $0x1c0] sm:$0xff]   ;;  %v6728_v35 = vor.u32 %v6727_v9, %v6724_v14 }
 0x280   : > { %9244 = vmatmul.mubr.bf16.gmra.mrb[52].mxu1 %v4704_v28  ;;  %9474 = vmatpush3.bf16.msra.mxu0 %v10203_v30  ;;  %v6729_v56 = vsel %vm2606_vm7, %v6720_v51, %v6728_v35  ;;  %v6734_v30 = vshll.u32 %v11831_v45, 16 }
 0x281   : > { %9247 = vmatprep.mubr.bf16.mxu1 %v4713_v59  ;;  %9256 = vmatpush3.bf16.msra.mxu1 %v10204_v31  ;;  %v6740_v31 = vshrl.u32 %v11837_v33, 16  ;;  %v10230_v33 = vld [vmem:[#allocation2 + $0xa0] ss:$0 sps:$4 sm:$0x77]  }
 0x282   : > { %9475 = vmatprep.subr.bf16.mxu0 %v10205_v46  ;;  %7157 = vxpose.xlu0.b32.cont [8/16] (narrow) %v11739_v8, 16  ;;  %v6537_v8 = vsel %vm2201_vm4, %v6534_v40, %v6536_v16  ;;  %v6736_v61 = vrot.slane %v6734_v30, 3  ;;  %v11996_v16 = vrot.slane %v11057_v41, 3  ;;  %v6767_v41 = vshrl.u32 %v10230_v33, 16 }
 0x283   : > { %9257 = vmatprep.subr.bf16.mxu1 %v10206_v15  ;;  %v6742_v6 = vrot.slane %v6740_v31, 2 }
 0x284   : > { %9476 = vmatpush3.bf16.msra.mxu0 %v10205_v46  ;;  %v10226_v46 = vld [vmem:[%s11986_s3 + $0x200] sm:$0xff]  }
 0x285   : > { %9258 = vmatpush3.bf16.msra.mxu1 %v10206_v15  ;;  %9489 = vmatprep.subr.bf16.mxu0 %v10208_v63  ;;  %v4901_v15 = vrot.slane %v11806_v55, 3  ;;  %v6746_v59 = vor.u32 %v6745_v0, %v6742_v6 }
 0x286   : > { %7158 = vxpose.xlu0.b32.cont [9/16] (narrow) %v11768_v2, 16  ;;  %9259 = vmatprep.subr.bf16.mxu1 %v10210_v25  ;;  %v11853_v2 = vld [vmem:[#allocation2 + $0x90] sm:$0xff]  }
 0x287   : > { %9478 = vmatmul.mubr.bf16.vlgmr.msra.gmra.mrb[36].mxu0 %v6537_v8  ;;  %v6540_v40 = vrot.slane %v11853_v2, 2  ;;  %v6749_v13 = vshrl.u32 %v11853_v2, 16  ;;  %v6752_v24 = vshll.u32 %v11853_v2, 16  ;;  %v4902_v55 = vsel %vm2837_vm6, %v11996_v16, %v4901_v15 }
 0x288   : > { %9248 = vmatmul.mubr.bf16.gmra.mrb[56].mxu1 %v4722_v57  ;;  %9481 = vmatprep.mubr.bf16.mxu0 %v6539_v29  ;;  %v10228_v57 = vld [vmem:[%s11986_s3 + $0x210] sm:$0xff]  }
 0x289   : > { %9490 = vmatpush3.bf16.msra.mxu0 %v10208_v63  ;;  %9260 = vmatpush3.bf16.msra.mxu1 %v10210_v25  ;;  %v6541_v20 = vsel %vm2201_vm4, %v6538_v36, %v6540_v40  ;;  %v6761_v63 = vshll.u32 %v11864_v10, 16  ;;  %v6751_v25 = vrot.slane %v6749_v13, 2  ;;  %v6754_v21 = vrot.slane %v6752_v24, 3 }
 0x28a   : > { %9267 = vmatprep.mubr.bf16.mxu1 %v11063_v19  ;;  %9491 = vmatprep.subr.bf16.mxu0 %v10213_v5  ;;  %v6542_v19 = vrot.slane %v11864_v10, 2 }
 0x28b   : > { %7159 = vxpose.xlu0.b32.cont [10/16] (narrow) %v11782_v26, 16  ;;  %9261 = vmatprep.subr.bf16.mxu1 %v10214_v39  ;;  %v10219_v26 = vld [vmem:[%s11986_s3 + $0x1d8] sm:$0xff]   ;;  %v6755_v29 = vor.u32 %v6754_v21, %v6751_v25 }
 0x28c   : > { %v6543_v37 = vsel %vm2201_vm4, %v6540_v40, %v6542_v19  ;;  %v10229_v40 = vld [vmem:[%s11986_s3 + $0x218] sm:$0xff]  }
 0x28d   : > { %9492 = vmatpush3.bf16.msra.mxu0 %v10213_v5  ;;  %9262 = vmatpush3.bf16.msra.mxu1 %v10214_v39  ;;  %v6763_v5 = vrot.slane %v6761_v63, 3  ;;  %v6770_v39 = vshll.u32 %v10230_v33, 16 }
 0x28e   : > { %9493 = vmatprep.subr.bf16.mxu0 %v10216_v18  ;;  %9263 = vmatprep.subr.bf16.mxu1 %v10217_v27 }
 0x28f   : > { %9482 = vmatmul.mubr.bf16.gmra.mrb[40].mxu0 %v6541_v20  ;;  %7160 = vxpose.xlu0.b32.cont [11/16] (narrow) %v11765_v62, 16  ;;  %v6545_v62 = vsel %vm2201_vm4, %v6542_v19, %v6544_v12  ;;  %v6772_v42 = vrot.slane %v6770_v39, 3  ;;  %v10231_v19 = vld [vmem:[%s11986_s3 + $0x220] sm:$0xff]   ;;  %v10234_v20 = vld [vmem:[%s11986_s3 + $0x230] sm:$0xff]  }
 0x290   : > { %9485 = vmatprep.mubr.bf16.mxu0 %v6543_v37 }
 0x291   : > { %9494 = vmatpush3.bf16.msra.mxu0 %v10216_v18  ;;  %9264 = vmatpush3.bf16.msra.mxu1 %v10217_v27  ;;  %v6756_v18 = vsel %vm2606_vm7, %v6746_v59, %v6755_v29  ;;  %v6769_v27 = vrot.slane %v6767_v41, 2 }
 0x292   : > { %9495 = vmatprep.subr.bf16.mxu0 %v10219_v26  ;;  %9265 = vmatprep.subr.bf16.mxu1 %v10220_v32 }
 0x293   : > { %7161 = vxpose.xlu0.b32.cont [12/16] (narrow) %v11771_v44, 16  ;;  %v10224_v44 = vld [vmem:[%s11986_s3 + $0x1f0] sm:$0xff]   ;;  %v6773_v52 = vor.u32 %v6772_v42, %v6769_v27 }
 0x295   : > { %9496 = vmatpush3.bf16.msra.mxu0 %v10219_v26  ;;  %9266 = vmatpush3.bf16.msra.mxu1 %v10220_v32  ;;  %v10235_v26 = vld [vmem:[%s11986_s3 + $0x238] sm:$0xff]   ;;  %v11997_v32 = vrot.slane %v11176_v7, 3 }
 0x296   : > { %9497 = vmatprep.subr.bf16.mxu0 %v10222_v1 }
 0x297   : > { %9486 = vmatmul.mubr.bf16.gmra.mrb[44].mxu0 %v6545_v62 }
 0x298   : > { %9268 = vmatmul.mubr.bf16.vlgmr.msra.gmra.mrb[48].mxu1 %v11068_v49  ;;  %9505 = vmatprep.mubr.bf16.mxu0 %v6729_v56  ;;  %v10225_v49 = vld [vmem:[%s11986_s3 + $0x1f8] sm:$0xff]  }
 0x299   : > { %9498 = vmatpush3.bf16.msra.mxu0 %v10222_v1  ;;  %9271 = vmatprep.mubr.bf16.mxu1 %v11106_v47  ;;  %v6733_v47 = vrot.slane %v6731_v23, 2 }
 0x29a   : > { %9499 = vmatprep.subr.bf16.mxu0 %v10223_v48 }
 0x29b   : > { %v6737_v28 = vor.u32 %v6736_v61, %v6733_v47 }
 0x29d   : > { %9500 = vmatpush3.bf16.msra.mxu0 %v10223_v48  ;;  %v6738_v45 = vsel %vm2606_vm7, %v6728_v35, %v6737_v28  ;;  %v6747_v36 = vsel %vm2606_vm7, %v6737_v28, %v6746_v59 }
 0x29e   : > { %9501 = vmatprep.subr.bf16.mxu0 %v10224_v44 }
 0x2a0   : > { %9272 = vmatmul.mubr.bf16.gmra.mrb[52].mxu1 %v11079_v60  ;;  %v6758_v60 = vshrl.u32 %v11864_v10, 16 }
 0x2a1   : > { %9502 = vmatpush3.bf16.msra.mxu0 %v10224_v44  ;;  %9275 = vmatprep.mubr.bf16.mxu1 %v11084_v22  ;;  %v10227_v22 = vld [vmem:[%s11986_s3 + $0x208] sm:$0xff]  }
 0x2a2   : > { %9503 = vmatprep.subr.bf16.mxu0 %v10225_v49  ;;  %v6760_v8 = vrot.slane %v6758_v60, 2 }
 0x2a4   : > { %v6764_v2 = vor.u32 %v6763_v5, %v6760_v8 }
 0x2a5   : > { %9504 = vmatpush3.bf16.msra.mxu0 %v10225_v49 }
 0x2a6   : > { %9517 = vmatprep.subr.bf16.mxu0 %v10226_v46  ;;  %v6765_v10 = vsel %vm2606_vm7, %v6755_v29, %v6764_v2  ;;  %v6774_v50 = vsel %vm2606_vm7, %v6764_v2, %v6773_v52 }
 0x2a8   : > { %9506 = vmatmul.mubr.bf16.vlgmr.msra.gmra.mrb[36].mxu0 %v6738_v45  ;;  %9276 = vmatmul.mubr.bf16.gmra.mrb[56].mxu1 %v4902_v55 }
 0x2a9   : > { %9509 = vmatprep.mubr.bf16.mxu0 %v6747_v36  ;;  %9518 = vmatpush3.bf16.msra.mxu0 %v10226_v46 }
 0x2aa   : > { %9519 = vmatprep.subr.bf16.mxu0 %v10227_v22 }
 0x2ad   : > { %9520 = vmatpush3.bf16.msra.mxu0 %v10227_v22 }
 0x2ae   : > { %9521 = vmatprep.subr.bf16.mxu0 %v10228_v57 }
 0x2b0   : > { %9510 = vmatmul.mubr.bf16.gmra.mrb[40].mxu0 %v6756_v18 }
 0x2b1   : > { %9513 = vmatprep.mubr.bf16.mxu0 %v6765_v10  ;;  %9522 = vmatpush3.bf16.msra.mxu0 %v10228_v57 }
 0x2b2   : > { %9523 = vmatprep.subr.bf16.mxu0 %v10229_v40 }
 0x2b5   : > { %9524 = vmatpush3.bf16.msra.mxu0 %v10229_v40 }
 0x2b6   : > { %9525 = vmatprep.subr.bf16.mxu0 %v10231_v19 }
 0x2b8   : > { %9514 = vmatmul.mubr.bf16.gmra.mrb[44].mxu0 %v6774_v50 }
 0x2b9   : > { %9526 = vmatpush3.bf16.msra.mxu0 %v10231_v19  ;;  %9533 = vmatprep.mubr.bf16.mxu0 %v11117_v34  ;;  %v6953_v34 = vrot.slane %v10230_v33, 3 }
 0x2ba   : > { %9527 = vmatprep.subr.bf16.mxu0 %v10233_v17 }
 0x2bb   : > { %v6954_v58 = vsel %vm2837_vm6, %v11997_v32, %v6953_v34 }
 0x2bd   : > { %9528 = vmatpush3.bf16.msra.mxu0 %v10233_v17 }
 0x2be   : > { %9529 = vmatprep.subr.bf16.mxu0 %v10234_v20 }
 0x2c1   : > { %9530 = vmatpush3.bf16.msra.mxu0 %v10234_v20 }
 0x2c2   : > { %9531 = vmatprep.subr.bf16.mxu0 %v10235_v26 }
 0x2c5   : > { %9532 = vmatpush3.bf16.msra.mxu0 %v10235_v26 }
 0x2c8   : > { %9534 = vmatmul.mubr.bf16.vlgmr.msra.gmra.mrb[36].mxu0 %v11120_v53 }
 0x2c9   : > { %9537 = vmatprep.mubr.bf16.mxu0 %v11123_v3 }
 0x2d0   : > { %9538 = vmatmul.mubr.bf16.gmra.mrb[40].mxu0 %v11128_v38 }
 0x2d1   : > { %9541 = vmatprep.mubr.bf16.mxu0 %v11197_v4 }
 0x2d8   : > { %9542 = vmatmul.mubr.bf16.gmra.mrb[44].mxu0 %v6954_v58 }
 0x36b   : > { %v9269_v37 = vpop.f32.mrb[48].mxu1 }
 0x36c   : > { %v4991_v43 = vpop.f32.mrb[49].mxu1  ;;  %v9581_v9 = vadd.f32 %v9269_v37, %v11950_v11 }
 0x36d   : > { %v9582_v53 = vadd.f32 %v11950_v11, %v4991_v43  ;;  %v9270_v3 = vpop.f32.mrb[50].mxu1 }
 0x36e   : > { %v4994_v14 = vpop.f32.mrb[51].mxu1  ;;  %v9583_v35 = vadd.f32 %v9270_v3, %v11950_v11 }
 0x36f   : > { %7162 = vxpose.xlu0.b32.cont [13/16] (narrow) %v9582_v53, 16  ;;  %v9584_v38 = vadd.f32 %v11950_v11, %v4994_v14 }
 0x373   : > { %v9273_v4 = vpop.f32.mrb[52].mxu1  ;;  %7163 = vxpose.xlu0.b32.cont [14/16] (narrow) %v9584_v38, 16 }
 0x374   : > { %v5007_v7 = vpop.f32.mrb[53].mxu1  ;;  %v9585_v44 = vadd.f32 %v9273_v4, %v11950_v11 }
 0x375   : > { %v9274_v12 = vpop.f32.mrb[54].mxu1  ;;  %v9586_v1 = vadd.f32 %v11950_v11, %v5007_v7 }
 0x376   : > { %v5010_v51 = vpop.f32.mrb[55].mxu1  ;;  %v9587_v31 = vadd.f32 %v9274_v12, %v11950_v11 }
 0x377   : > { %7182 = vxpose.xlu1.b32.start [1/16] (narrow) %v9586_v1, 16  ;;  %7164 = vxpose.xlu0.b32.cont [15/16] (narrow) %v9581_v9, 16  ;;  %v9588_v62 = vadd.f32 %v11950_v11, %v5010_v51 }
 0x37b   : > { %7183 = vxpose.xlu1.b32.cont [2/16] (narrow) %v9588_v62, 16  ;;  %v9277_v48 = vpop.f32.mrb[56].mxu1  ;;  %7165 = vxpose.xlu0.b32.end [16/16] (narrow) %v9583_v35, 16 }
 0x37c   : > { %v5023_v56 = vpop.f32.mrb[57].mxu1  ;;  %v9589_v47 = vadd.f32 %v9277_v48, %v11950_v11 }
 0x37d   : > { %v9278_v23 = vpop.f32.mrb[58].mxu1  ;;  %v9590_v54 = vadd.f32 %v11950_v11, %v5023_v56 }
 0x37e   : > { %v5026_v30 = vpop.f32.mrb[59].mxu1  ;;  %v9591_v61 = vadd.f32 %v9278_v23, %v11950_v11 }
 0x37f   : > { %7184 = vxpose.xlu1.b32.cont [3/16] (narrow) %v9585_v44, 16  ;;  %v9592_v49 = vadd.f32 %v11950_v11, %v5026_v30 }
 0x383   : > { %7185 = vxpose.xlu1.b32.cont [4/16] (narrow) %v9587_v31, 16 }
 0x387   : > { %7186 = vxpose.xlu1.b32.cont [5/16] (narrow) %v9590_v54, 16 }
 0x38b   : > { %7187 = vxpose.xlu1.b32.cont [6/16] (narrow) %v9592_v49, 16 }
 0x38f   : > { %7188 = vxpose.xlu1.b32.cont [7/16] (narrow) %v9589_v47, 16 }
 0x393   : > { %7189 = vxpose.xlu1.b32.cont [8/16] (narrow) %v9591_v61, 16 }
 0x39b   : > { %v9535_v6 = vpop.f32.mrb[36].mxu0 }
 0x39c   : > { %v7043_v0 = vpop.f32.mrb[37].mxu0  ;;  %v9593_v60 = vadd.f32 %v9535_v6, %v11950_v11 }
 0x39d   : > { %v9594_v46 = vadd.f32 %v11950_v11, %v7043_v0  ;;  %v9536_v28 = vpop.f32.mrb[38].mxu0 }
 0x39e   : > { %v7046_v15 = vpop.f32.mrb[39].mxu0  ;;  %v9595_v45 = vadd.f32 %v9536_v28, %v11950_v11 }
 0x39f   : > { %7190 = vxpose.xlu1.b32.cont [9/16] (narrow) %v9594_v46, 16  ;;  %v9596_v13 = vadd.f32 %v11950_v11, %v7046_v15 }
 0x3a3   : > { %v9539_v24 = vpop.f32.mrb[40].mxu0  ;;  %7191 = vxpose.xlu1.b32.cont [10/16] (narrow) %v9596_v13, 16 }
 0x3a4   : > { %v7059_v59 = vpop.f32.mrb[41].mxu0  ;;  %v9597_v57 = vadd.f32 %v9539_v24, %v11950_v11 }
 0x3a5   : > { %v9540_v63 = vpop.f32.mrb[42].mxu0  ;;  %v9598_v25 = vadd.f32 %v11950_v11, %v7059_v59 }
 0x3a6   : > { %v7062_v22 = vpop.f32.mrb[43].mxu0  ;;  %v9599_v41 = vadd.f32 %v9540_v63, %v11950_v11 }
 0x3a7   : > { %7192 = vxpose.xlu1.b32.cont [11/16] (narrow) %v9593_v60, 16  ;;  %v9600_v8 = vadd.f32 %v11950_v11, %v7062_v22 }
 0x3ab   : > { %v9543_v16 = vpop.f32.mrb[44].mxu0  ;;  %7193 = vxpose.xlu1.b32.cont [12/16] (narrow) %v9595_v45, 16 }
 0x3ac   : > { %v7075_v55 = vpop.f32.mrb[45].mxu0  ;;  %v9601_v29 = vadd.f32 %v9543_v16, %v11950_v11 }
 0x3ad   : > { %v9602_v21 = vadd.f32 %v11950_v11, %v7075_v55  ;;  %v9544_v33 = vpop.f32.mrb[46].mxu0 }
 0x3ae   : > { %v7078_v36 = vpop.f32.mrb[47].mxu0  ;;  %v9603_v39 = vadd.f32 %v9544_v33, %v11950_v11 }
 0x3af   : > { %7194 = vxpose.xlu1.b32.cont [13/16] (narrow) %v9598_v25, 16  ;;  %7214 = vxpose.xlu0.b32.start [1/4] (short) (narrow) %v9602_v21, 16  ;;  %v9604_v5 = vadd.f32 %v11950_v11, %v7078_v36 }
 0x3b3   : > { %7195 = vxpose.xlu1.b32.cont [14/16] (narrow) %v9600_v8, 16  ;;  %7215 = vxpose.xlu0.b32.cont [2/4] (short) (narrow) %v9604_v5, 16 }
 0x3b7   : > { %7196 = vxpose.xlu1.b32.cont [15/16] (narrow) %v9597_v57, 16  ;;  %7216 = vxpose.xlu0.b32.cont [3/4] (short) (narrow) %v9601_v29, 16 }
 0x3bb   : > { %7197 = vxpose.xlu1.b32.end [16/16] (narrow) %v9599_v41, 16  ;;  %7217 = vxpose.xlu0.b32.end [4/4] (short) (narrow) %v9603_v39, 16 }
 0x3bf   : > { %v7166_v2 = vpop.trf.xlu0 }
 0x3c0   : > { %7246 = vst [vmem:[%s251_s30] sm:$0xff] %v7166_v2 }
 0x3c3   : > { %v7167_v40 = vpop.trf.xlu0 }
 0x3c4   : > { %7250 = vst [vmem:[%s251_s30 + $0x18] sm:$0xff] %v7167_v40 }
 0x3ff   : > { %v7198_v18 = vpop.trf.xlu1 }
 0x400   : > { %7247 = vst [vmem:[%s251_s30 + $0x8] sm:$0xff] %v7198_v18 }
 0x403   : > { %v7199_v27 = vpop.trf.xlu1 }
 0x404   : > { %7251 = vst [vmem:[%s251_s30 + $0x20] sm:$0xff] %v7199_v27 }
 0x42f   : > { %v7230_v42 = vpop.trf.xlu0 }
 0x430   : > { %7249 = vst.msk [vmem:[%s251_s30 + $0x10] sm:$0xff] %vm7248_vm8, %v7230_v42 }
 0x433   : > { %v7231_v10 = vpop.trf.xlu0 }
 0x434   : > { %7252 = vst.msk [vmem:[%s251_s30 + $0x28] sm:$0xff] %vm7248_vm8, %v7231_v10 }
 0x435 PF: > { %s16_s21 = sadd.s32 1, %s10265_s21  }
 0x436   : > { %p13_p4 = scmp.ge.s32.totalorder %s16_s21, 4  }
 0x438   :  { %15 = sbr.rel (!%p13_p4) target bundleno = 1 (0x1), region = 82 }

</bundles_post_ra>
